<compile_context>
chip_gen: v7x
topology: tpu7x:2x2x1
jax: 0.10.0
libtpu: 0.0.40
codegen_flags: <defaults>
</compile_context>

<pallas_src>
import functools
import math

import jax
import jax.numpy as jnp
from jax.experimental import pallas as pl
from jax.experimental.pallas import tpu as pltpu


def _layer_norm(x, gamma, beta, eps=1e-5):
    mean = jnp.mean(x, axis=-1, keepdims=True)
    var = jnp.mean((x - mean) ** 2, axis=-1, keepdims=True)
    return (x - mean) * jax.lax.rsqrt(var + eps) * gamma + beta


def encoder_layer_kernel(
    x_ref, mask_ref,
    wqkv_ref, bqkv_ref, wo_ref, bo_ref,
    gamma_ref, beta_ref,
    w1_ref, b1_ref, w2_ref, b2_ref,
    out_ref,
    ctx_ref,                      # VMEM scratch (Bt*S, H) bf16: per-head ctx slabs
    *, num_heads: int, approx_softmax: bool,
):
    Bt, S, H = x_ref.shape
    hd = H // num_heads
    scale = jnp.float32(1.0 / math.sqrt(hd))

    # Residual path kept in f32; MXU operands in bf16.
    x = x_ref[...].astype(jnp.float32).reshape(Bt * S, H)
    x_bf = x.astype(jnp.bfloat16)

    # ---- fused Q/K/V projection: one (Bt*S, H) @ (H, 3H) matmul ----
    # Bias add in f32, then a SINGLE cast to bf16 (no f32 q/k/v copies kept).
    qkv = jnp.dot(x_bf, wqkv_ref[...], preferred_element_type=jnp.float32)
    qkv = (qkv + bqkv_ref[...]).astype(jnp.bfloat16).reshape(Bt, S, 3 * H)
    q = qkv[:, :, :H]
    k = qkv[:, :, H:2 * H]
    v = qkv[:, :, 2 * H:]

    # Additive mask bias built once per block: (Bt, 1, S); 0 = keep, -1e10 = masked.
    mask_bias = jnp.where(mask_ref[...] == 0,
                          jnp.float32(-1e10), jnp.float32(0.0))

    # ---- multi-head self-attention (batched over the batch block per head) ----
    # TODO(synk): batch all heads into one einsum / head grid axis when hd is a
    #   multiple of 128; with hd < 128 the per-head K under-fills the MXU either way.
    # TODO(synk): for large S, switch to a KV-tile loop with online softmax
    #   (m/l/acc scratch) so scores stay O(Tq*S) instead of the full (Bt,S,S) block.
    for h in range(num_heads):            # static unroll; num_heads is small
        sl = slice(h * hd, (h + 1) * hd)
        qh, kh, vh = q[:, :, sl], k[:, :, sl], v[:, :, sl]       # (Bt, S, hd) bf16
        scores = jnp.einsum('bqd,bkd->bqk', qh, kh,
                            preferred_element_type=jnp.float32) * scale
        scores = scores + mask_bias                              # (Bt, S, S)
        m = jnp.max(scores, axis=-1, keepdims=True)
        p = jnp.exp(scores - m)
        denom = jnp.sum(p, axis=-1, keepdims=True)
        if approx_softmax:
            p = p * pl.reciprocal(denom, approx=True)            # EUP, ~2^-12 rel err
        else:
            p = p / denom
        ctx_h = jnp.einsum('bqk,bkd->bqd', p.astype(jnp.bfloat16), vh,
                           preferred_element_type=jnp.float32)   # (Bt, S, hd)
        # Write straight into the shared VMEM scratch (no per-head list + concat).
        ctx_ref[:, sl] = ctx_h.reshape(Bt * S, hd).astype(jnp.bfloat16)

    # ONE output-projection matmul over the concatenated heads (K = H).
    attended = jnp.dot(ctx_ref[...], wo_ref[...],
                       preferred_element_type=jnp.float32) + bo_ref[...]

    gamma = gamma_ref[...]
    beta = beta_ref[...]

    # residual + layernorm (dropout = identity in eval mode)
    new_src = _layer_norm(x + attended, gamma, beta)

    # ---- positionwise feed-forward: relu(x @ W1 + b1) @ W2 + b2 ----
    # TODO(synk): stream W1/W2 in PF-chunks (reduction grid axis / emit_pipeline)
    #   once Bt*S*PF*4 bytes approaches ~25% of the usable VMEM budget.
    h1 = jnp.dot(new_src.astype(jnp.bfloat16), w1_ref[...],
                 preferred_element_type=jnp.float32) + b1_ref[...]
    h1 = jnp.maximum(h1, 0.0)
    ff = jnp.dot(h1.astype(jnp.bfloat16), w2_ref[...],
                 preferred_element_type=jnp.float32) + b2_ref[...]

    # residual + (same shared) layernorm
    out = _layer_norm(new_src + ff, gamma, beta)
    out_ref[...] = out.reshape(Bt, S, H).astype(out_ref.dtype)


def _vmem_limit_bytes():
    """Scoped-VMEM limit derived from the chip: ~75% of physical VMEM, capped
    at 100 MiB.  => ~48 MiB on v7x (64 MiB/TC), ~96 MiB on v5e/v6e (128 MiB)."""
    cap = 128 * 1024 * 1024
    try:
        cap = int(pltpu.get_tpu_info().vmem_capacity_bytes)
    except Exception:
        pass  # fall back to the conservative 128 MiB assumption
    return min(int(cap * 0.75), 100 * 1024 * 1024)


def _estimate_block_vmem(bt, s, h, pf, nh):
    """Rough per-grid-step VMEM footprint (bytes) for block size bt."""
    rows = bt * s
    weights = 2 * (4 * h * h + 2 * h * pf)             # bf16, single-buffered
    io = 2 * 2 * rows * h * 4                          # in+out blocks, double-buffered f32
    qkv = 2 * rows * 3 * h * 2                         # f32 dot result (transient) + bf16 copy
    attn = 2 * bt * nh * s * s * 4 + rows * h * 2      # scores + p (f32) + ctx scratch bf16
    ffn = 2 * rows * h * 4 + 2 * rows * pf * 4         # new_src/out f32 + h1 f32/bf16
    return weights + io + qkv + attn + ffn


def _choose_batch_block(n, s, h, pf, nh, vmem_limit,
                        target_rows=512, max_rows=2048):
    """Largest divisor of n whose block fits the VMEM budget, stopping once
    >= target_rows matmul rows/step are reached.  Capped at n//2 so the
    'parallel' grid axis has >= 2 steps (both v7x TensorCores get work)."""
    budget = int(0.8 * vmem_limit)
    best = 1
    for bt in range(1, n + 1):
        if n % bt:
            continue
        if n > 1 and bt > n // 2:
            break
        if bt * s > max_rows or _estimate_block_vmem(bt, s, h, pf, nh) > budget:
            break
        best = bt
        if bt * s >= target_rows:
            break
    return best


def _build_call(N, S, H, PF, NH, Bt, out_dtype, weight_mode, vmem_limit,
                approx_softmax):
    grid = (N // Bt,)

    def invariant(shape):
        idx = lambda i, nd=len(shape): (0,) * nd
        if weight_mode is None:
            return pl.BlockSpec(shape, idx)
        # Grid-invariant block: single-buffer to halve its VMEM footprint.
        return pl.BlockSpec(shape, idx, pipeline_mode=weight_mode)

    in_specs = [
        pl.BlockSpec((Bt, S, H), lambda i: (i, 0, 0)),     # src (batch block)
        pl.BlockSpec((Bt, 1, S), lambda i: (i, 0, 0)),     # mask (batch block)
        invariant((H, 3 * H)), invariant((1, 3 * H)),      # Wqkv, bqkv
        invariant((H, H)), invariant((1, H)),              # Wo, bo
        invariant((1, H)), invariant((1, H)),              # gamma, beta
        invariant((H, PF)), invariant((1, PF)),            # W1, b1
        invariant((PF, H)), invariant((1, H)),             # W2, b2
    ]
    out_spec = pl.BlockSpec((Bt, S, H), lambda i: (i, 0, 0))

    hd = H // NH
    flops = (2 * N * S * (4 * H * H + 2 * H * PF)          # projections + FFN
             + 4 * N * NH * S * S * hd)                    # scores + context
    transcendentals = N * NH * S * S                       # softmax exp
    bytes_accessed = (
        2 * N * S * H * 4                                  # src in + out (f32)
        + N * S * 4                                        # mask
        + (4 * H * H + 2 * H * PF) * 2                     # bf16 weights
        + (3 * H + H + 2 * H + PF + H) * 4                 # biases + LN params
    )

    kernel = functools.partial(encoder_layer_kernel, num_heads=NH,
                               approx_softmax=approx_softmax)
    return pl.pallas_call(
        kernel,
        out_shape=jax.ShapeDtypeStruct((N, S, H), out_dtype),
        grid_spec=pltpu.PrefetchScalarGridSpec(
            num_scalar_prefetch=0,
            grid=grid,
            in_specs=in_specs,
            out_specs=out_spec,
            scratch_shapes=[pltpu.VMEM((Bt * S, H), jnp.bfloat16)],
        ),
        compiler_params=pltpu.CompilerParams(
            dimension_semantics=("parallel",),
            vmem_limit_bytes=vmem_limit,
        ),
        cost_estimate=pl.CostEstimate(
            flops=flops,
            transcendentals=transcendentals,
            bytes_accessed=bytes_accessed,
        ),
    )


def encoder_layer(src, src_mask, params, num_heads, *, approx_softmax=True):
    N, S, H = src.shape
    PF = params["w1"].shape[1]

    # Fused QKV weight/bias; weights cast to bf16 host-side (halves HBM DMA
    # bytes and VMEM footprint); biases / LN params stay f32.
    # TODO(synk): optional fp8 weight path (per-channel scales) for v7x.
    wqkv = jnp.concatenate(
        [params["wq"], params["wk"], params["wv"]], axis=1).astype(jnp.bfloat16)
    bqkv = jnp.concatenate([params["bq"], params["bk"], params["bv"]], axis=1)
    wo = params["wo"].astype(jnp.bfloat16)
    w1 = params["w1"].astype(jnp.bfloat16)
    w2 = params["w2"].astype(jnp.bfloat16)

    # (N, 1, 1, S) -> (N, 1, S): ready to broadcast against (Bt, S, S) scores.
    mask3d = src_mask.reshape(N, 1, S).astype(jnp.int32)

    vmem_limit = _vmem_limit_bytes()
    Bt = _choose_batch_block(N, S, H, PF, num_heads, vmem_limit)

    args = (src, mask3d,
            wqkv, bqkv, wo, params["bo"],
            params["ln_gamma"], params["ln_beta"],
            w1, params["b1"], w2, params["b2"])

    # Try single-buffered (Buffered(1)) grid-invariant weights first; fall back
    # to default double-buffering if this jax/Mosaic build rejects it.
    for weight_mode in (pl.Buffered(1), None):
        try:
            call = _build_call(N, S, H, PF, num_heads, Bt, src.dtype,
                               weight_mode, vmem_limit, approx_softmax)
            return call(*args)
        except Exception:
            if weight_mode is None:
                raise
    raise AssertionError("unreachable")


def _encoder_layer_reference(src, src_mask, params, num_heads):
    """Pure-JAX f32 reference mirroring the PyTorch module (eval mode)."""
    N, S, H = src.shape
    hd = H // num_heads

    def linear(x, w, b):
        return x @ w + b

    def ln(x):
        mu = jnp.mean(x, axis=-1, keepdims=True)
        var = jnp.mean((x - mu) ** 2, axis=-1, keepdims=True)
        return (x - mu) / jnp.sqrt(var + 1e-5) * params["ln_gamma"] + params["ln_beta"]

    def split(a):
        return a.reshape(N, S, num_heads, hd).transpose(0, 2, 1, 3)

    q = split(linear(src, params["wq"], params["bq"]))
    k = split(linear(src, params["wk"], params["bk"]))
    v = split(linear(src, params["wv"], params["bv"]))
    scores = jnp.einsum('nhqd,nhkd->nhqk', q, k) / jnp.sqrt(jnp.float32(hd))
    scores = jnp.where(src_mask == 0, jnp.float32(-1e10), scores)
    p = jax.nn.softmax(scores, axis=-1)
    ctx = jnp.einsum('nhqk,nhkd->nhqd', p, v).transpose(0, 2, 1, 3).reshape(N, S, H)
    attended = linear(ctx, params["wo"], params["bo"])
    new_src = ln(src + attended)
    h1 = jax.nn.relu(linear(new_src, params["w1"], params["b1"]))
    ff = linear(h1, params["w2"], params["b2"])
    return ln(new_src + ff)


def init_params(key, hidden_size, pf_dim):
    keys = jax.random.split(key, 8)
    s = 0.02
    H, PF = hidden_size, pf_dim
    return {
        "wq": s * jax.random.normal(keys[0], (H, H), jnp.float32),
        "bq": jnp.zeros((1, H), jnp.float32),
        "wk": s * jax.random.normal(keys[1], (H, H), jnp.float32),
        "bk": jnp.zeros((1, H), jnp.float32),
        "wv": s * jax.random.normal(keys[2], (H, H), jnp.float32),
        "bv": jnp.zeros((1, H), jnp.float32),
        "wo": s * jax.random.normal(keys[3], (H, H), jnp.float32),
        "bo": jnp.zeros((1, H), jnp.float32),
        "ln_gamma": jnp.ones((1, H), jnp.float32),
        "ln_beta": jnp.zeros((1, H), jnp.float32),
        "w1": s * jax.random.normal(keys[4], (H, PF), jnp.float32),
        "b1": jnp.zeros((1, PF), jnp.float32),
        "w2": s * jax.random.normal(keys[5], (PF, H), jnp.float32),
        "b2": jnp.zeros((1, H), jnp.float32),
    }


if __name__ == "__main__":
    N, S, H, NH, PF = 2, 8, 32, 4, 64

    key = jax.random.PRNGKey(0)
    k_src, k_param = jax.random.split(key)
    src = jax.random.normal(k_src, (N, S, H), jnp.float32)
    # mask: 1 = valid, 0 = padded (second sequence has last 3 positions padded)
    src_mask = jnp.ones((N, 1, 1, S), jnp.int32)
    src_mask = src_mask.at[1, 0, 0, 5:].set(0)

    params = init_params(k_param, H, PF)

    out = encoder_layer(src, src_mask, params, NH)
    jax.block_until_ready(out)

    assert out.shape == src.shape
    assert bool(jnp.all(jnp.isfinite(out)))
    # bf16 mixed precision + approx softmax reciprocal => compare with tolerance.
    ref = _encoder_layer_reference(src, src_mask, params, NH)
    max_err = float(jnp.max(jnp.abs(out - ref)))
    assert max_err < 5e-2, f"max abs error vs f32 reference: {max_err}"
    print("KERNEL_OK")
</pallas_src>

<mosaic_0001>
module attributes {stable_mosaic.version = 11 : i64} {
  func.func @encoder_layer_kernel(%arg0: i32, %arg1: memref<1x8x32xf32, #tpu.memory_space<vmem>>, %arg2: memref<1x1x8xi32, #tpu.memory_space<vmem>>, %arg3: memref<32x96xbf16, #tpu.memory_space<vmem>>, %arg4: memref<1x96xf32, #tpu.memory_space<vmem>>, %arg5: memref<32x32xbf16, #tpu.memory_space<vmem>>, %arg6: memref<1x32xf32, #tpu.memory_space<vmem>>, %arg7: memref<1x32xf32, #tpu.memory_space<vmem>>, %arg8: memref<1x32xf32, #tpu.memory_space<vmem>>, %arg9: memref<32x64xbf16, #tpu.memory_space<vmem>>, %arg10: memref<1x64xf32, #tpu.memory_space<vmem>>, %arg11: memref<64x32xbf16, #tpu.memory_space<vmem>>, %arg12: memref<1x32xf32, #tpu.memory_space<vmem>>, %arg13: memref<1x8x32xf32, #tpu.memory_space<vmem>>, %arg14: memref<8x32xbf16, #tpu.memory_space<vmem>>) attributes {dimension_semantics = [#tpu.dimension_semantics<parallel>], iteration_bounds = array<i64: 2>, scalar_prefetch = 0 : i64, scratch_operands = 1 : i64, tpu.core_type = #tpu.core_type<tc>, window_params = [{transform_indices = @transform_0, window_bounds = array<i64: 1, 8, 32>}, {transform_indices = @transform_1, window_bounds = array<i64: 1, 1, 8>}, {pipeline_mode = #tpu.pipeline_mode<synchronous>, transform_indices = @transform_2, window_bounds = array<i64: 32, 96>}, {pipeline_mode = #tpu.pipeline_mode<synchronous>, transform_indices = @transform_3, window_bounds = array<i64: 1, 96>}, {pipeline_mode = #tpu.pipeline_mode<synchronous>, transform_indices = @transform_4, window_bounds = array<i64: 32, 32>}, {pipeline_mode = #tpu.pipeline_mode<synchronous>, transform_indices = @transform_5, window_bounds = array<i64: 1, 32>}, {pipeline_mode = #tpu.pipeline_mode<synchronous>, transform_indices = @transform_6, window_bounds = array<i64: 1, 32>}, {pipeline_mode = #tpu.pipeline_mode<synchronous>, transform_indices = @transform_7, window_bounds = array<i64: 1, 32>}, {pipeline_mode = #tpu.pipeline_mode<synchronous>, transform_indices = @transform_8, window_bounds = array<i64: 32, 64>}, {pipeline_mode = #tpu.pipeline_mode<synchronous>, transform_indices = @transform_9, window_bounds = array<i64: 1, 64>}, {pipeline_mode = #tpu.pipeline_mode<synchronous>, transform_indices = @transform_10, window_bounds = array<i64: 64, 32>}, {pipeline_mode = #tpu.pipeline_mode<synchronous>, transform_indices = @transform_11, window_bounds = array<i64: 1, 32>}, {transform_indices = @transform_12, window_bounds = array<i64: 1, 8, 32>}]} {
    %c0 = arith.constant 0 : index
    %c0_0 = arith.constant 0 : index
    %c0_1 = arith.constant 0 : index
    %0 = vector.load %arg1[%c0, %c0_0, %c0_1] : memref<1x8x32xf32, #tpu.memory_space<vmem>>, vector<1x8x32xf32>
    %1 = vector.shape_cast %0 : vector<1x8x32xf32> to vector<8x32xf32>
    %2 = arith.truncf %1 : vector<8x32xf32> to vector<8x32xbf16>
    %c0_2 = arith.constant 0 : index
    %c0_3 = arith.constant 0 : index
    %3 = vector.load %arg3[%c0_2, %c0_3] : memref<32x96xbf16, #tpu.memory_space<vmem>>, vector<32x96xbf16>
    %cst = arith.constant dense<0.000000e+00> : vector<8x96xf32>
    %4 = tpu.matmul %2, %3, %cst {dimension_numbers = #tpu.dot_dimension_numbers<[1], [0], [0], [1], [0, 0, 1, 1], [], []>} : vector<8x32xbf16>, vector<32x96xbf16>, vector<8x96xf32> -> vector<8x96xf32>
    %c0_4 = arith.constant 0 : index
    %c0_5 = arith.constant 0 : index
    %5 = vector.load %arg4[%c0_4, %c0_5] : memref<1x96xf32, #tpu.memory_space<vmem>>, vector<1x96xf32>
    %6 = vector.broadcast %5 : vector<1x96xf32> to vector<8x96xf32>
    %7 = arith.addf %4, %6 : vector<8x96xf32>
    %8 = arith.truncf %7 : vector<8x96xf32> to vector<8x96xbf16>
    %9 = vector.shape_cast %8 : vector<8x96xbf16> to vector<1x8x96xbf16>
    %10 = vector.extract_strided_slice %9 {offsets = [0, 0, 0], sizes = [1, 8, 32], strides = [1, 1, 1]} : vector<1x8x96xbf16> to vector<1x8x32xbf16>
    %11 = vector.extract_strided_slice %9 {offsets = [0, 0, 32], sizes = [1, 8, 32], strides = [1, 1, 1]} : vector<1x8x96xbf16> to vector<1x8x32xbf16>
    %12 = vector.extract_strided_slice %9 {offsets = [0, 0, 64], sizes = [1, 8, 32], strides = [1, 1, 1]} : vector<1x8x96xbf16> to vector<1x8x32xbf16>
    %c0_6 = arith.constant 0 : index
    %c0_7 = arith.constant 0 : index
    %c0_8 = arith.constant 0 : index
    %13 = vector.load %arg2[%c0_6, %c0_7, %c0_8] : memref<1x1x8xi32, #tpu.memory_space<vmem>>, vector<1x1x8xi32>
    %c0_i32 = arith.constant 0 : i32
    %14 = vector.broadcast %c0_i32 : i32 to vector<1x1x8xi32>
    %15 = arith.cmpi eq, %13, %14 : vector<1x1x8xi32>
    %cst_9 = arith.constant -1.000000e+10 : f32
    %cst_10 = arith.constant 0.000000e+00 : f32
    %16 = vector.broadcast %cst_9 : f32 to vector<1x1x8xf32>
    %17 = vector.broadcast %cst_10 : f32 to vector<1x1x8xf32>
    %18 = arith.select %15, %16, %17 : vector<1x1x8xi1>, vector<1x1x8xf32>
    %19 = vector.extract_strided_slice %10 {offsets = [0, 0, 0], sizes = [1, 8, 8], strides = [1, 1, 1]} : vector<1x8x32xbf16> to vector<1x8x8xbf16>
    %20 = vector.extract_strided_slice %11 {offsets = [0, 0, 0], sizes = [1, 8, 8], strides = [1, 1, 1]} : vector<1x8x32xbf16> to vector<1x8x8xbf16>
    %21 = vector.extract_strided_slice %12 {offsets = [0, 0, 0], sizes = [1, 8, 8], strides = [1, 1, 1]} : vector<1x8x32xbf16> to vector<1x8x8xbf16>
    "tpu.trace_start"() <{level = 10 : i32, message = "bqd,bkd->bqk"}> : () -> ()
    %cst_11 = arith.constant dense<0.000000e+00> : vector<1x8x8xf32>
    %22 = tpu.matmul %19, %20, %cst_11 {dimension_numbers = #tpu.dot_dimension_numbers<[2], [2], [1], [1], [0, 0, 0, 1, 1, 1], [0], [0]>} : vector<1x8x8xbf16>, vector<1x8x8xbf16>, vector<1x8x8xf32> -> vector<1x8x8xf32>
    "tpu.trace_stop"() : () -> ()
    %cst_12 = arith.constant 0.353553385 : f32
    %23 = vector.broadcast %cst_12 : f32 to vector<1x8x8xf32>
    %24 = arith.mulf %22, %23 : vector<1x8x8xf32>
    %25 = vector.broadcast %18 : vector<1x1x8xf32> to vector<1x8x8xf32>
    %26 = arith.addf %24, %25 : vector<1x8x8xf32>
    %cst_13 = arith.constant dense<0xFF800000> : vector<1x8xf32>
    %27 = vector.multi_reduction <maximumf>, %26, %cst_13 [2] : vector<1x8x8xf32> to vector<1x8xf32>
    %28 = vector.shape_cast %27 : vector<1x8xf32> to vector<1x8x1xf32>
    %29 = vector.broadcast %28 : vector<1x8x1xf32> to vector<1x8x8xf32>
    %30 = arith.subf %26, %29 : vector<1x8x8xf32>
    %31 = math.exp %30 : vector<1x8x8xf32>
    %cst_14 = arith.constant dense<0.000000e+00> : vector<1x8xf32>
    %32 = vector.multi_reduction <add>, %31, %cst_14 [2] : vector<1x8x8xf32> to vector<1x8xf32>
    %33 = vector.shape_cast %32 : vector<1x8xf32> to vector<1x8x1xf32>
    %34 = tpu.reciprocal %33 {approx = true} : vector<1x8x1xf32> -> vector<1x8x1xf32>
    %35 = vector.broadcast %34 : vector<1x8x1xf32> to vector<1x8x8xf32>
    %36 = arith.mulf %31, %35 : vector<1x8x8xf32>
    %37 = arith.truncf %36 : vector<1x8x8xf32> to vector<1x8x8xbf16>
    "tpu.trace_start"() <{level = 10 : i32, message = "bqk,bkd->bqd"}> : () -> ()
    %cst_15 = arith.constant dense<0.000000e+00> : vector<1x8x8xf32>
    %38 = tpu.matmul %37, %21, %cst_15 {dimension_numbers = #tpu.dot_dimension_numbers<[2], [1], [1], [2], [0, 0, 0, 1, 1, 2], [0], [0]>} : vector<1x8x8xbf16>, vector<1x8x8xbf16>, vector<1x8x8xf32> -> vector<1x8x8xf32>
    "tpu.trace_stop"() : () -> ()
    %39 = vector.shape_cast %38 : vector<1x8x8xf32> to vector<8x8xf32>
    %40 = arith.truncf %39 : vector<8x8xf32> to vector<8x8xbf16>
    %c0_16 = arith.constant 0 : index
    %c0_17 = arith.constant 0 : index
    %41 = vector.load %arg14[%c0_16, %c0_17] : memref<8x32xbf16, #tpu.memory_space<vmem>>, vector<8x8xbf16>
    tpu.vector_store %arg14[%c0_16, %c0_17], %40 {strides = array<i32>} : memref<8x32xbf16, #tpu.memory_space<vmem>>, vector<8x8xbf16>,
    %42 = vector.extract_strided_slice %10 {offsets = [0, 0, 8], sizes = [1, 8, 8], strides = [1, 1, 1]} : vector<1x8x32xbf16> to vector<1x8x8xbf16>
    %43 = vector.extract_strided_slice %11 {offsets = [0, 0, 8], sizes = [1, 8, 8], strides = [1, 1, 1]} : vector<1x8x32xbf16> to vector<1x8x8xbf16>
    %44 = vector.extract_strided_slice %12 {offsets = [0, 0, 8], sizes = [1, 8, 8], strides = [1, 1, 1]} : vector<1x8x32xbf16> to vector<1x8x8xbf16>
    "tpu.trace_start"() <{level = 10 : i32, message = "bqd,bkd->bqk"}> : () -> ()
    %cst_18 = arith.constant dense<0.000000e+00> : vector<1x8x8xf32>
    %45 = tpu.matmul %42, %43, %cst_18 {dimension_numbers = #tpu.dot_dimension_numbers<[2], [2], [1], [1], [0, 0, 0, 1, 1, 1], [0], [0]>} : vector<1x8x8xbf16>, vector<1x8x8xbf16>, vector<1x8x8xf32> -> vector<1x8x8xf32>
    "tpu.trace_stop"() : () -> ()
    %cst_19 = arith.constant 0.353553385 : f32
    %46 = vector.broadcast %cst_19 : f32 to vector<1x8x8xf32>
    %47 = arith.mulf %45, %46 : vector<1x8x8xf32>
    %48 = vector.broadcast %18 : vector<1x1x8xf32> to vector<1x8x8xf32>
    %49 = arith.addf %47, %48 : vector<1x8x8xf32>
    %cst_20 = arith.constant dense<0xFF800000> : vector<1x8xf32>
    %50 = vector.multi_reduction <maximumf>, %49, %cst_20 [2] : vector<1x8x8xf32> to vector<1x8xf32>
    %51 = vector.shape_cast %50 : vector<1x8xf32> to vector<1x8x1xf32>
    %52 = vector.broadcast %51 : vector<1x8x1xf32> to vector<1x8x8xf32>
    %53 = arith.subf %49, %52 : vector<1x8x8xf32>
    %54 = math.exp %53 : vector<1x8x8xf32>
    %cst_21 = arith.constant dense<0.000000e+00> : vector<1x8xf32>
    %55 = vector.multi_reduction <add>, %54, %cst_21 [2] : vector<1x8x8xf32> to vector<1x8xf32>
    %56 = vector.shape_cast %55 : vector<1x8xf32> to vector<1x8x1xf32>
    %57 = tpu.reciprocal %56 {approx = true} : vector<1x8x1xf32> -> vector<1x8x1xf32>
    %58 = vector.broadcast %57 : vector<1x8x1xf32> to vector<1x8x8xf32>
    %59 = arith.mulf %54, %58 : vector<1x8x8xf32>
    %60 = arith.truncf %59 : vector<1x8x8xf32> to vector<1x8x8xbf16>
    "tpu.trace_start"() <{level = 10 : i32, message = "bqk,bkd->bqd"}> : () -> ()
    %cst_22 = arith.constant dense<0.000000e+00> : vector<1x8x8xf32>
    %61 = tpu.matmul %60, %44, %cst_22 {dimension_numbers = #tpu.dot_dimension_numbers<[2], [1], [1], [2], [0, 0, 0, 1, 1, 2], [0], [0]>} : vector<1x8x8xbf16>, vector<1x8x8xbf16>, vector<1x8x8xf32> -> vector<1x8x8xf32>
    "tpu.trace_stop"() : () -> ()
    %62 = vector.shape_cast %61 : vector<1x8x8xf32> to vector<8x8xf32>
    %63 = arith.truncf %62 : vector<8x8xf32> to vector<8x8xbf16>
    %c0_23 = arith.constant 0 : index
    %c8 = arith.constant 8 : index
    %64 = vector.load %arg14[%c0_23, %c8] : memref<8x32xbf16, #tpu.memory_space<vmem>>, vector<8x8xbf16>
    tpu.vector_store %arg14[%c0_23, %c8], %63 {strides = array<i32>} : memref<8x32xbf16, #tpu.memory_space<vmem>>, vector<8x8xbf16>,
    %65 = vector.extract_strided_slice %10 {offsets = [0, 0, 16], sizes = [1, 8, 8], strides = [1, 1, 1]} : vector<1x8x32xbf16> to vector<1x8x8xbf16>
    %66 = vector.extract_strided_slice %11 {offsets = [0, 0, 16], sizes = [1, 8, 8], strides = [1, 1, 1]} : vector<1x8x32xbf16> to vector<1x8x8xbf16>
    %67 = vector.extract_strided_slice %12 {offsets = [0, 0, 16], sizes = [1, 8, 8], strides = [1, 1, 1]} : vector<1x8x32xbf16> to vector<1x8x8xbf16>
    "tpu.trace_start"() <{level = 10 : i32, message = "bqd,bkd->bqk"}> : () -> ()
    %cst_24 = arith.constant dense<0.000000e+00> : vector<1x8x8xf32>
    %68 = tpu.matmul %65, %66, %cst_24 {dimension_numbers = #tpu.dot_dimension_numbers<[2], [2], [1], [1], [0, 0, 0, 1, 1, 1], [0], [0]>} : vector<1x8x8xbf16>, vector<1x8x8xbf16>, vector<1x8x8xf32> -> vector<1x8x8xf32>
    "tpu.trace_stop"() : () -> ()
    %cst_25 = arith.constant 0.353553385 : f32
    %69 = vector.broadcast %cst_25 : f32 to vector<1x8x8xf32>
    %70 = arith.mulf %68, %69 : vector<1x8x8xf32>
    %71 = vector.broadcast %18 : vector<1x1x8xf32> to vector<1x8x8xf32>
    %72 = arith.addf %70, %71 : vector<1x8x8xf32>
    %cst_26 = arith.constant dense<0xFF800000> : vector<1x8xf32>
    %73 = vector.multi_reduction <maximumf>, %72, %cst_26 [2] : vector<1x8x8xf32> to vector<1x8xf32>
    %74 = vector.shape_cast %73 : vector<1x8xf32> to vector<1x8x1xf32>
    %75 = vector.broadcast %74 : vector<1x8x1xf32> to vector<1x8x8xf32>
    %76 = arith.subf %72, %75 : vector<1x8x8xf32>
    %77 = math.exp %76 : vector<1x8x8xf32>
    %cst_27 = arith.constant dense<0.000000e+00> : vector<1x8xf32>
    %78 = vector.multi_reduction <add>, %77, %cst_27 [2] : vector<1x8x8xf32> to vector<1x8xf32>
    %79 = vector.shape_cast %78 : vector<1x8xf32> to vector<1x8x1xf32>
    %80 = tpu.reciprocal %79 {approx = true} : vector<1x8x1xf32> -> vector<1x8x1xf32>
    %81 = vector.broadcast %80 : vector<1x8x1xf32> to vector<1x8x8xf32>
    %82 = arith.mulf %77, %81 : vector<1x8x8xf32>
    %83 = arith.truncf %82 : vector<1x8x8xf32> to vector<1x8x8xbf16>
    "tpu.trace_start"() <{level = 10 : i32, message = "bqk,bkd->bqd"}> : () -> ()
    %cst_28 = arith.constant dense<0.000000e+00> : vector<1x8x8xf32>
    %84 = tpu.matmul %83, %67, %cst_28 {dimension_numbers = #tpu.dot_dimension_numbers<[2], [1], [1], [2], [0, 0, 0, 1, 1, 2], [0], [0]>} : vector<1x8x8xbf16>, vector<1x8x8xbf16>, vector<1x8x8xf32> -> vector<1x8x8xf32>
    "tpu.trace_stop"() : () -> ()
    %85 = vector.shape_cast %84 : vector<1x8x8xf32> to vector<8x8xf32>
    %86 = arith.truncf %85 : vector<8x8xf32> to vector<8x8xbf16>
    %c0_29 = arith.constant 0 : index
    %c16 = arith.constant 16 : index
    %87 = vector.load %arg14[%c0_29, %c16] : memref<8x32xbf16, #tpu.memory_space<vmem>>, vector<8x8xbf16>
    tpu.vector_store %arg14[%c0_29, %c16], %86 {strides = array<i32>} : memref<8x32xbf16, #tpu.memory_space<vmem>>, vector<8x8xbf16>,
    %88 = vector.extract_strided_slice %10 {offsets = [0, 0, 24], sizes = [1, 8, 8], strides = [1, 1, 1]} : vector<1x8x32xbf16> to vector<1x8x8xbf16>
    %89 = vector.extract_strided_slice %11 {offsets = [0, 0, 24], sizes = [1, 8, 8], strides = [1, 1, 1]} : vector<1x8x32xbf16> to vector<1x8x8xbf16>
    %90 = vector.extract_strided_slice %12 {offsets = [0, 0, 24], sizes = [1, 8, 8], strides = [1, 1, 1]} : vector<1x8x32xbf16> to vector<1x8x8xbf16>
    "tpu.trace_start"() <{level = 10 : i32, message = "bqd,bkd->bqk"}> : () -> ()
    %cst_30 = arith.constant dense<0.000000e+00> : vector<1x8x8xf32>
    %91 = tpu.matmul %88, %89, %cst_30 {dimension_numbers = #tpu.dot_dimension_numbers<[2], [2], [1], [1], [0, 0, 0, 1, 1, 1], [0], [0]>} : vector<1x8x8xbf16>, vector<1x8x8xbf16>, vector<1x8x8xf32> -> vector<1x8x8xf32>
    "tpu.trace_stop"() : () -> ()
    %cst_31 = arith.constant 0.353553385 : f32
    %92 = vector.broadcast %cst_31 : f32 to vector<1x8x8xf32>
    %93 = arith.mulf %91, %92 : vector<1x8x8xf32>
    %94 = vector.broadcast %18 : vector<1x1x8xf32> to vector<1x8x8xf32>
    %95 = arith.addf %93, %94 : vector<1x8x8xf32>
    %cst_32 = arith.constant dense<0xFF800000> : vector<1x8xf32>
    %96 = vector.multi_reduction <maximumf>, %95, %cst_32 [2] : vector<1x8x8xf32> to vector<1x8xf32>
    %97 = vector.shape_cast %96 : vector<1x8xf32> to vector<1x8x1xf32>
    %98 = vector.broadcast %97 : vector<1x8x1xf32> to vector<1x8x8xf32>
    %99 = arith.subf %95, %98 : vector<1x8x8xf32>
    %100 = math.exp %99 : vector<1x8x8xf32>
    %cst_33 = arith.constant dense<0.000000e+00> : vector<1x8xf32>
    %101 = vector.multi_reduction <add>, %100, %cst_33 [2] : vector<1x8x8xf32> to vector<1x8xf32>
    %102 = vector.shape_cast %101 : vector<1x8xf32> to vector<1x8x1xf32>
    %103 = tpu.reciprocal %102 {approx = true} : vector<1x8x1xf32> -> vector<1x8x1xf32>
    %104 = vector.broadcast %103 : vector<1x8x1xf32> to vector<1x8x8xf32>
    %105 = arith.mulf %100, %104 : vector<1x8x8xf32>
    %106 = arith.truncf %105 : vector<1x8x8xf32> to vector<1x8x8xbf16>
    "tpu.trace_start"() <{level = 10 : i32, message = "bqk,bkd->bqd"}> : () -> ()
    %cst_34 = arith.constant dense<0.000000e+00> : vector<1x8x8xf32>
    %107 = tpu.matmul %106, %90, %cst_34 {dimension_numbers = #tpu.dot_dimension_numbers<[2], [1], [1], [2], [0, 0, 0, 1, 1, 2], [0], [0]>} : vector<1x8x8xbf16>, vector<1x8x8xbf16>, vector<1x8x8xf32> -> vector<1x8x8xf32>
    "tpu.trace_stop"() : () -> ()
    %108 = vector.shape_cast %107 : vector<1x8x8xf32> to vector<8x8xf32>
    %109 = arith.truncf %108 : vector<8x8xf32> to vector<8x8xbf16>
    %c0_35 = arith.constant 0 : index
    %c24 = arith.constant 24 : index
    %110 = vector.load %arg14[%c0_35, %c24] : memref<8x32xbf16, #tpu.memory_space<vmem>>, vector<8x8xbf16>
    tpu.vector_store %arg14[%c0_35, %c24], %109 {strides = array<i32>} : memref<8x32xbf16, #tpu.memory_space<vmem>>, vector<8x8xbf16>,
    %c0_36 = arith.constant 0 : index
    %c0_37 = arith.constant 0 : index
    %111 = vector.load %arg14[%c0_36, %c0_37] : memref<8x32xbf16, #tpu.memory_space<vmem>>, vector<8x32xbf16>
    %c0_38 = arith.constant 0 : index
    %c0_39 = arith.constant 0 : index
    %112 = vector.load %arg5[%c0_38, %c0_39] : memref<32x32xbf16, #tpu.memory_space<vmem>>, vector<32x32xbf16>
    %cst_40 = arith.constant dense<0.000000e+00> : vector<8x32xf32>
    %113 = tpu.matmul %111, %112, %cst_40 {dimension_numbers = #tpu.dot_dimension_numbers<[1], [0], [0], [1], [0, 0, 1, 1], [], []>} : vector<8x32xbf16>, vector<32x32xbf16>, vector<8x32xf32> -> vector<8x32xf32>
    %c0_41 = arith.constant 0 : index
    %c0_42 = arith.constant 0 : index
    %114 = vector.load %arg6[%c0_41, %c0_42] : memref<1x32xf32, #tpu.memory_space<vmem>>, vector<1x32xf32>
    %115 = vector.broadcast %114 : vector<1x32xf32> to vector<8x32xf32>
    %116 = arith.addf %113, %115 : vector<8x32xf32>
    %c0_43 = arith.constant 0 : index
    %c0_44 = arith.constant 0 : index
    %117 = vector.load %arg7[%c0_43, %c0_44] : memref<1x32xf32, #tpu.memory_space<vmem>>, vector<1x32xf32>
    %c0_45 = arith.constant 0 : index
    %c0_46 = arith.constant 0 : index
    %118 = vector.load %arg8[%c0_45, %c0_46] : memref<1x32xf32, #tpu.memory_space<vmem>>, vector<1x32xf32>
    %119 = arith.addf %1, %116 : vector<8x32xf32>
    %cst_47 = arith.constant dense<0.000000e+00> : vector<8xf32>
    %120 = vector.multi_reduction <add>, %119, %cst_47 [1] : vector<8x32xf32> to vector<8xf32>
    %121 = vector.shape_cast %120 : vector<8xf32> to vector<8x1xf32>
    %cst_48 = arith.constant 3.200000e+01 : f32
    %122 = vector.broadcast %cst_48 : f32 to vector<8x1xf32>
    %123 = arith.divf %121, %122 : vector<8x1xf32>
    %124 = vector.broadcast %123 : vector<8x1xf32> to vector<8x32xf32>
    %125 = arith.subf %119, %124 : vector<8x32xf32>
    %126 = arith.mulf %125, %125 : vector<8x32xf32>
    %cst_49 = arith.constant dense<0.000000e+00> : vector<8xf32>
    %127 = vector.multi_reduction <add>, %126, %cst_49 [1] : vector<8x32xf32> to vector<8xf32>
    %128 = vector.shape_cast %127 : vector<8xf32> to vector<8x1xf32>
    %cst_50 = arith.constant 3.200000e+01 : f32
    %129 = vector.broadcast %cst_50 : f32 to vector<8x1xf32>
    %130 = arith.divf %128, %129 : vector<8x1xf32>
    %131 = vector.broadcast %123 : vector<8x1xf32> to vector<8x32xf32>
    %132 = arith.subf %119, %131 : vector<8x32xf32>
    %cst_51 = arith.constant 9.99999974E-6 : f32
    %133 = vector.broadcast %cst_51 : f32 to vector<8x1xf32>
    %134 = arith.addf %130, %133 : vector<8x1xf32>
    %135 = math.rsqrt %134 : vector<8x1xf32>
    %136 = vector.broadcast %135 : vector<8x1xf32> to vector<8x32xf32>
    %137 = arith.mulf %132, %136 : vector<8x32xf32>
    %138 = vector.broadcast %117 : vector<1x32xf32> to vector<8x32xf32>
    %139 = arith.mulf %137, %138 : vector<8x32xf32>
    %140 = vector.broadcast %118 : vector<1x32xf32> to vector<8x32xf32>
    %141 = arith.addf %139, %140 : vector<8x32xf32>
    %142 = arith.truncf %141 : vector<8x32xf32> to vector<8x32xbf16>
    %c0_52 = arith.constant 0 : index
    %c0_53 = arith.constant 0 : index
    %143 = vector.load %arg9[%c0_52, %c0_53] : memref<32x64xbf16, #tpu.memory_space<vmem>>, vector<32x64xbf16>
    %cst_54 = arith.constant dense<0.000000e+00> : vector<8x64xf32>
    %144 = tpu.matmul %142, %143, %cst_54 {dimension_numbers = #tpu.dot_dimension_numbers<[1], [0], [0], [1], [0, 0, 1, 1], [], []>} : vector<8x32xbf16>, vector<32x64xbf16>, vector<8x64xf32> -> vector<8x64xf32>
    %c0_55 = arith.constant 0 : index
    %c0_56 = arith.constant 0 : index
    %145 = vector.load %arg10[%c0_55, %c0_56] : memref<1x64xf32, #tpu.memory_space<vmem>>, vector<1x64xf32>
    %146 = vector.broadcast %145 : vector<1x64xf32> to vector<8x64xf32>
    %147 = arith.addf %144, %146 : vector<8x64xf32>
    %cst_57 = arith.constant 0.000000e+00 : f32
    %148 = vector.broadcast %cst_57 : f32 to vector<8x64xf32>
    %149 = arith.maximumf %147, %148 : vector<8x64xf32>
    %150 = arith.truncf %149 : vector<8x64xf32> to vector<8x64xbf16>
    %c0_58 = arith.constant 0 : index
    %c0_59 = arith.constant 0 : index
    %151 = vector.load %arg11[%c0_58, %c0_59] : memref<64x32xbf16, #tpu.memory_space<vmem>>, vector<64x32xbf16>
    %cst_60 = arith.constant dense<0.000000e+00> : vector<8x32xf32>
    %152 = tpu.matmul %150, %151, %cst_60 {dimension_numbers = #tpu.dot_dimension_numbers<[1], [0], [0], [1], [0, 0, 1, 1], [], []>} : vector<8x64xbf16>, vector<64x32xbf16>, vector<8x32xf32> -> vector<8x32xf32>
    %c0_61 = arith.constant 0 : index
    %c0_62 = arith.constant 0 : index
    %153 = vector.load %arg12[%c0_61, %c0_62] : memref<1x32xf32, #tpu.memory_space<vmem>>, vector<1x32xf32>
    %154 = vector.broadcast %153 : vector<1x32xf32> to vector<8x32xf32>
    %155 = arith.addf %152, %154 : vector<8x32xf32>
    %156 = arith.addf %141, %155 : vector<8x32xf32>
    %cst_63 = arith.constant dense<0.000000e+00> : vector<8xf32>
    %157 = vector.multi_reduction <add>, %156, %cst_63 [1] : vector<8x32xf32> to vector<8xf32>
    %158 = vector.shape_cast %157 : vector<8xf32> to vector<8x1xf32>
    %cst_64 = arith.constant 3.200000e+01 : f32
    %159 = vector.broadcast %cst_64 : f32 to vector<8x1xf32>
    %160 = arith.divf %158, %159 : vector<8x1xf32>
    %161 = vector.broadcast %160 : vector<8x1xf32> to vector<8x32xf32>
    %162 = arith.subf %156, %161 : vector<8x32xf32>
    %163 = arith.mulf %162, %162 : vector<8x32xf32>
    %cst_65 = arith.constant dense<0.000000e+00> : vector<8xf32>
    %164 = vector.multi_reduction <add>, %163, %cst_65 [1] : vector<8x32xf32> to vector<8xf32>
    %165 = vector.shape_cast %164 : vector<8xf32> to vector<8x1xf32>
    %cst_66 = arith.constant 3.200000e+01 : f32
    %166 = vector.broadcast %cst_66 : f32 to vector<8x1xf32>
    %167 = arith.divf %165, %166 : vector<8x1xf32>
    %168 = vector.broadcast %160 : vector<8x1xf32> to vector<8x32xf32>
    %169 = arith.subf %156, %168 : vector<8x32xf32>
    %cst_67 = arith.constant 9.99999974E-6 : f32
    %170 = vector.broadcast %cst_67 : f32 to vector<8x1xf32>
    %171 = arith.addf %167, %170 : vector<8x1xf32>
    %172 = math.rsqrt %171 : vector<8x1xf32>
    %173 = vector.broadcast %172 : vector<8x1xf32> to vector<8x32xf32>
    %174 = arith.mulf %169, %173 : vector<8x32xf32>
    %175 = vector.broadcast %117 : vector<1x32xf32> to vector<8x32xf32>
    %176 = arith.mulf %174, %175 : vector<8x32xf32>
    %177 = vector.broadcast %118 : vector<1x32xf32> to vector<8x32xf32>
    %178 = arith.addf %176, %177 : vector<8x32xf32>
    %179 = vector.shape_cast %178 : vector<8x32xf32> to vector<1x8x32xf32>
    %c0_68 = arith.constant 0 : index
    %c0_69 = arith.constant 0 : index
    %c0_70 = arith.constant 0 : index
    %180 = vector.load %arg13[%c0_68, %c0_69, %c0_70] : memref<1x8x32xf32, #tpu.memory_space<vmem>>, vector<1x8x32xf32>
    tpu.vector_store %arg13[%c0_68, %c0_69, %c0_70], %179 {strides = array<i32>} : memref<1x8x32xf32, #tpu.memory_space<vmem>>, vector<1x8x32xf32>,
    return
  }
  func.func @transform_0(%arg0: i32) -> (i32, i32, i32) {
    %c0_i32 = arith.constant 0 : i32
    %c0_i32_0 = arith.constant 0 : i32
    %c0_i32_1 = arith.constant 0 : i32
    return %arg0, %c0_i32, %c0_i32_0 : i32, i32, i32
  }
  func.func @transform_1(%arg0: i32) -> (i32, i32, i32) {
    %c0_i32 = arith.constant 0 : i32
    %c0_i32_0 = arith.constant 0 : i32
    %c0_i32_1 = arith.constant 0 : i32
    return %arg0, %c0_i32, %c0_i32_0 : i32, i32, i32
  }
  func.func @transform_2(%arg0: i32) -> (i32, i32) {
    %c0_i32 = arith.constant 0 : i32
    %c0_i32_0 = arith.constant 0 : i32
    %c0_i32_1 = arith.constant 0 : i32
    return %c0_i32, %c0_i32_0 : i32, i32
  }
  func.func @transform_3(%arg0: i32) -> (i32, i32) {
    %c0_i32 = arith.constant 0 : i32
    %c0_i32_0 = arith.constant 0 : i32
    %c0_i32_1 = arith.constant 0 : i32
    return %c0_i32, %c0_i32_0 : i32, i32
  }
  func.func @transform_4(%arg0: i32) -> (i32, i32) {
    %c0_i32 = arith.constant 0 : i32
    %c0_i32_0 = arith.constant 0 : i32
    %c0_i32_1 = arith.constant 0 : i32
    return %c0_i32, %c0_i32_0 : i32, i32
  }
  func.func @transform_5(%arg0: i32) -> (i32, i32) {
    %c0_i32 = arith.constant 0 : i32
    %c0_i32_0 = arith.constant 0 : i32
    %c0_i32_1 = arith.constant 0 : i32
    return %c0_i32, %c0_i32_0 : i32, i32
  }
  func.func @transform_6(%arg0: i32) -> (i32, i32) {
    %c0_i32 = arith.constant 0 : i32
    %c0_i32_0 = arith.constant 0 : i32
    %c0_i32_1 = arith.constant 0 : i32
    return %c0_i32, %c0_i32_0 : i32, i32
  }
  func.func @transform_7(%arg0: i32) -> (i32, i32) {
    %c0_i32 = arith.constant 0 : i32
    %c0_i32_0 = arith.constant 0 : i32
    %c0_i32_1 = arith.constant 0 : i32
    return %c0_i32, %c0_i32_0 : i32, i32
  }
  func.func @transform_8(%arg0: i32) -> (i32, i32) {
    %c0_i32 = arith.constant 0 : i32
    %c0_i32_0 = arith.constant 0 : i32
    %c0_i32_1 = arith.constant 0 : i32
    return %c0_i32, %c0_i32_0 : i32, i32
  }
  func.func @transform_9(%arg0: i32) -> (i32, i32) {
    %c0_i32 = arith.constant 0 : i32
    %c0_i32_0 = arith.constant 0 : i32
    %c0_i32_1 = arith.constant 0 : i32
    return %c0_i32, %c0_i32_0 : i32, i32
  }
  func.func @transform_10(%arg0: i32) -> (i32, i32) {
    %c0_i32 = arith.constant 0 : i32
    %c0_i32_0 = arith.constant 0 : i32
    %c0_i32_1 = arith.constant 0 : i32
    return %c0_i32, %c0_i32_0 : i32, i32
  }
  func.func @transform_11(%arg0: i32) -> (i32, i32) {
    %c0_i32 = arith.constant 0 : i32
    %c0_i32_0 = arith.constant 0 : i32
    %c0_i32_1 = arith.constant 0 : i32
    return %c0_i32, %c0_i32_0 : i32, i32
  }
  func.func @transform_12(%arg0: i32) -> (i32, i32, i32) {
    %c0_i32 = arith.constant 0 : i32
    %c0_i32_0 = arith.constant 0 : i32
    %c0_i32_1 = arith.constant 0 : i32
    return %arg0, %c0_i32, %c0_i32_0 : i32, i32, i32
  }
}

module attributes {stable_mosaic.version = 11 : i64} {
  func.func @encoder_layer_kernel(%arg0: i32, %arg1: memref<1x8x32xf32, #tpu.memory_space<vmem>>, %arg2: memref<1x1x8xi32, #tpu.memory_space<vmem>>, %arg3: memref<32x96xbf16, #tpu.memory_space<vmem>>, %arg4: memref<1x96xf32, #tpu.memory_space<vmem>>, %arg5: memref<32x32xbf16, #tpu.memory_space<vmem>>, %arg6: memref<1x32xf32, #tpu.memory_space<vmem>>, %arg7: memref<1x32xf32, #tpu.memory_space<vmem>>, %arg8: memref<1x32xf32, #tpu.memory_space<vmem>>, %arg9: memref<32x64xbf16, #tpu.memory_space<vmem>>, %arg10: memref<1x64xf32, #tpu.memory_space<vmem>>, %arg11: memref<64x32xbf16, #tpu.memory_space<vmem>>, %arg12: memref<1x32xf32, #tpu.memory_space<vmem>>, %arg13: memref<1x8x32xf32, #tpu.memory_space<vmem>>, %arg14: memref<8x32xbf16, #tpu.memory_space<vmem>>) attributes {dimension_semantics = [#tpu.dimension_semantics<parallel>], iteration_bounds = array<i64: 2>, scalar_prefetch = 0 : i64, scratch_operands = 1 : i64, tpu.core_type = #tpu.core_type<tc>, window_params = [{transform_indices = @transform_0, window_bounds = array<i64: 1, 8, 32>}, {transform_indices = @transform_1, window_bounds = array<i64: 1, 1, 8>}, {pipeline_mode = #tpu.pipeline_mode<synchronous>, transform_indices = @transform_2, window_bounds = array<i64: 32, 96>}, {pipeline_mode = #tpu.pipeline_mode<synchronous>, transform_indices = @transform_3, window_bounds = array<i64: 1, 96>}, {pipeline_mode = #tpu.pipeline_mode<synchronous>, transform_indices = @transform_4, window_bounds = array<i64: 32, 32>}, {pipeline_mode = #tpu.pipeline_mode<synchronous>, transform_indices = @transform_5, window_bounds = array<i64: 1, 32>}, {pipeline_mode = #tpu.pipeline_mode<synchronous>, transform_indices = @transform_6, window_bounds = array<i64: 1, 32>}, {pipeline_mode = #tpu.pipeline_mode<synchronous>, transform_indices = @transform_7, window_bounds = array<i64: 1, 32>}, {pipeline_mode = #tpu.pipeline_mode<synchronous>, transform_indices = @transform_8, window_bounds = array<i64: 32, 64>}, {pipeline_mode = #tpu.pipeline_mode<synchronous>, transform_indices = @transform_9, window_bounds = array<i64: 1, 64>}, {pipeline_mode = #tpu.pipeline_mode<synchronous>, transform_indices = @transform_10, window_bounds = array<i64: 64, 32>}, {pipeline_mode = #tpu.pipeline_mode<synchronous>, transform_indices = @transform_11, window_bounds = array<i64: 1, 32>}, {transform_indices = @transform_12, window_bounds = array<i64: 1, 8, 32>}]} {
    %c0 = arith.constant 0 : index
    %c0_0 = arith.constant 0 : index
    %c0_1 = arith.constant 0 : index
    %0 = vector.load %arg1[%c0, %c0_0, %c0_1] : memref<1x8x32xf32, #tpu.memory_space<vmem>>, vector<1x8x32xf32>
    %1 = vector.shape_cast %0 : vector<1x8x32xf32> to vector<8x32xf32>
    %2 = arith.truncf %1 : vector<8x32xf32> to vector<8x32xbf16>
    %c0_2 = arith.constant 0 : index
    %c0_3 = arith.constant 0 : index
    %3 = vector.load %arg3[%c0_2, %c0_3] : memref<32x96xbf16, #tpu.memory_space<vmem>>, vector<32x96xbf16>
    %cst = arith.constant dense<0.000000e+00> : vector<8x96xf32>
    %4 = tpu.matmul %2, %3, %cst {dimension_numbers = #tpu.dot_dimension_numbers<[1], [0], [0], [1], [0, 0, 1, 1], [], []>} : vector<8x32xbf16>, vector<32x96xbf16>, vector<8x96xf32> -> vector<8x96xf32>
    %c0_4 = arith.constant 0 : index
    %c0_5 = arith.constant 0 : index
    %5 = vector.load %arg4[%c0_4, %c0_5] : memref<1x96xf32, #tpu.memory_space<vmem>>, vector<1x96xf32>
    %6 = vector.broadcast %5 : vector<1x96xf32> to vector<8x96xf32>
    %7 = arith.addf %4, %6 : vector<8x96xf32>
    %8 = arith.truncf %7 : vector<8x96xf32> to vector<8x96xbf16>
    %9 = vector.shape_cast %8 : vector<8x96xbf16> to vector<1x8x96xbf16>
    %10 = vector.extract_strided_slice %9 {offsets = [0, 0, 0], sizes = [1, 8, 32], strides = [1, 1, 1]} : vector<1x8x96xbf16> to vector<1x8x32xbf16>
    %11 = vector.extract_strided_slice %9 {offsets = [0, 0, 32], sizes = [1, 8, 32], strides = [1, 1, 1]} : vector<1x8x96xbf16> to vector<1x8x32xbf16>
    %12 = vector.extract_strided_slice %9 {offsets = [0, 0, 64], sizes = [1, 8, 32], strides = [1, 1, 1]} : vector<1x8x96xbf16> to vector<1x8x32xbf16>
    %c0_6 = arith.constant 0 : index
    %c0_7 = arith.constant 0 : index
    %c0_8 = arith.constant 0 : index
    %13 = vector.load %arg2[%c0_6, %c0_7, %c0_8] : memref<1x1x8xi32, #tpu.memory_space<vmem>>, vector<1x1x8xi32>
    %c0_i32 = arith.constant 0 : i32
    %14 = vector.broadcast %c0_i32 : i32 to vector<1x1x8xi32>
    %15 = arith.cmpi eq, %13, %14 : vector<1x1x8xi32>
    %cst_9 = arith.constant -1.000000e+10 : f32
    %cst_10 = arith.constant 0.000000e+00 : f32
    %16 = vector.broadcast %cst_9 : f32 to vector<1x1x8xf32>
    %17 = vector.broadcast %cst_10 : f32 to vector<1x1x8xf32>
    %18 = arith.select %15, %16, %17 : vector<1x1x8xi1>, vector<1x1x8xf32>
    %19 = vector.extract_strided_slice %10 {offsets = [0, 0, 0], sizes = [1, 8, 8], strides = [1, 1, 1]} : vector<1x8x32xbf16> to vector<1x8x8xbf16>
    %20 = vector.extract_strided_slice %11 {offsets = [0, 0, 0], sizes = [1, 8, 8], strides = [1, 1, 1]} : vector<1x8x32xbf16> to vector<1x8x8xbf16>
    %21 = vector.extract_strided_slice %12 {offsets = [0, 0, 0], sizes = [1, 8, 8], strides = [1, 1, 1]} : vector<1x8x32xbf16> to vector<1x8x8xbf16>
    "tpu.trace_start"() <{level = 10 : i32, message = "bqd,bkd->bqk"}> : () -> ()
    %cst_11 = arith.constant dense<0.000000e+00> : vector<1x8x8xf32>
    %22 = tpu.matmul %19, %20, %cst_11 {dimension_numbers = #tpu.dot_dimension_numbers<[2], [2], [1], [1], [0, 0, 0, 1, 1, 1], [0], [0]>} : vector<1x8x8xbf16>, vector<1x8x8xbf16>, vector<1x8x8xf32> -> vector<1x8x8xf32>
    "tpu.trace_stop"() : () -> ()
    %cst_12 = arith.constant 0.353553385 : f32
    %23 = vector.broadcast %cst_12 : f32 to vector<1x8x8xf32>
    %24 = arith.mulf %22, %23 : vector<1x8x8xf32>
    %25 = vector.broadcast %18 : vector<1x1x8xf32> to vector<1x8x8xf32>
    %26 = arith.addf %24, %25 : vector<1x8x8xf32>
    %cst_13 = arith.constant dense<0xFF800000> : vector<1x8xf32>
    %27 = vector.multi_reduction <maximumf>, %26, %cst_13 [2] : vector<1x8x8xf32> to vector<1x8xf32>
    %28 = vector.shape_cast %27 : vector<1x8xf32> to vector<1x8x1xf32>
    %29 = vector.broadcast %28 : vector<1x8x1xf32> to vector<1x8x8xf32>
    %30 = arith.subf %26, %29 : vector<1x8x8xf32>
    %31 = math.exp %30 : vector<1x8x8xf32>
    %cst_14 = arith.constant dense<0.000000e+00> : vector<1x8xf32>
    %32 = vector.multi_reduction <add>, %31, %cst_14 [2] : vector<1x8x8xf32> to vector<1x8xf32>
    %33 = vector.shape_cast %32 : vector<1x8xf32> to vector<1x8x1xf32>
    %34 = tpu.reciprocal %33 {approx = true} : vector<1x8x1xf32> -> vector<1x8x1xf32>
    %35 = vector.broadcast %34 : vector<1x8x1xf32> to vector<1x8x8xf32>
    %36 = arith.mulf %31, %35 : vector<1x8x8xf32>
    %37 = arith.truncf %36 : vector<1x8x8xf32> to vector<1x8x8xbf16>
    "tpu.trace_start"() <{level = 10 : i32, message = "bqk,bkd->bqd"}> : () -> ()
    %cst_15 = arith.constant dense<0.000000e+00> : vector<1x8x8xf32>
    %38 = tpu.matmul %37, %21, %cst_15 {dimension_numbers = #tpu.dot_dimension_numbers<[2], [1], [1], [2], [0, 0, 0, 1, 1, 2], [0], [0]>} : vector<1x8x8xbf16>, vector<1x8x8xbf16>, vector<1x8x8xf32> -> vector<1x8x8xf32>
    "tpu.trace_stop"() : () -> ()
    %39 = vector.shape_cast %38 : vector<1x8x8xf32> to vector<8x8xf32>
    %40 = arith.truncf %39 : vector<8x8xf32> to vector<8x8xbf16>
    %c0_16 = arith.constant 0 : index
    %c0_17 = arith.constant 0 : index
    %41 = vector.load %arg14[%c0_16, %c0_17] : memref<8x32xbf16, #tpu.memory_space<vmem>>, vector<8x8xbf16>
    tpu.vector_store %arg14[%c0_16, %c0_17], %40 {strides = array<i32>} : memref<8x32xbf16, #tpu.memory_space<vmem>>, vector<8x8xbf16>,
    %42 = vector.extract_strided_slice %10 {offsets = [0, 0, 8], sizes = [1, 8, 8], strides = [1, 1, 1]} : vector<1x8x32xbf16> to vector<1x8x8xbf16>
    %43 = vector.extract_strided_slice %11 {offsets = [0, 0, 8], sizes = [1, 8, 8], strides = [1, 1, 1]} : vector<1x8x32xbf16> to vector<1x8x8xbf16>
    %44 = vector.extract_strided_slice %12 {offsets = [0, 0, 8], sizes = [1, 8, 8], strides = [1, 1, 1]} : vector<1x8x32xbf16> to vector<1x8x8xbf16>
    "tpu.trace_start"() <{level = 10 : i32, message = "bqd,bkd->bqk"}> : () -> ()
    %cst_18 = arith.constant dense<0.000000e+00> : vector<1x8x8xf32>
    %45 = tpu.matmul %42, %43, %cst_18 {dimension_numbers = #tpu.dot_dimension_numbers<[2], [2], [1], [1], [0, 0, 0, 1, 1, 1], [0], [0]>} : vector<1x8x8xbf16>, vector<1x8x8xbf16>, vector<1x8x8xf32> -> vector<1x8x8xf32>
    "tpu.trace_stop"() : () -> ()
    %cst_19 = arith.constant 0.353553385 : f32
    %46 = vector.broadcast %cst_19 : f32 to vector<1x8x8xf32>
    %47 = arith.mulf %45, %46 : vector<1x8x8xf32>
    %48 = vector.broadcast %18 : vector<1x1x8xf32> to vector<1x8x8xf32>
    %49 = arith.addf %47, %48 : vector<1x8x8xf32>
    %cst_20 = arith.constant dense<0xFF800000> : vector<1x8xf32>
    %50 = vector.multi_reduction <maximumf>, %49, %cst_20 [2] : vector<1x8x8xf32> to vector<1x8xf32>
    %51 = vector.shape_cast %50 : vector<1x8xf32> to vector<1x8x1xf32>
    %52 = vector.broadcast %51 : vector<1x8x1xf32> to vector<1x8x8xf32>
    %53 = arith.subf %49, %52 : vector<1x8x8xf32>
    %54 = math.exp %53 : vector<1x8x8xf32>
    %cst_21 = arith.constant dense<0.000000e+00> : vector<1x8xf32>
    %55 = vector.multi_reduction <add>, %54, %cst_21 [2] : vector<1x8x8xf32> to vector<1x8xf32>
    %56 = vector.shape_cast %55 : vector<1x8xf32> to vector<1x8x1xf32>
    %57 = tpu.reciprocal %56 {approx = true} : vector<1x8x1xf32> -> vector<1x8x1xf32>
    %58 = vector.broadcast %57 : vector<1x8x1xf32> to vector<1x8x8xf32>
    %59 = arith.mulf %54, %58 : vector<1x8x8xf32>
    %60 = arith.truncf %59 : vector<1x8x8xf32> to vector<1x8x8xbf16>
    "tpu.trace_start"() <{level = 10 : i32, message = "bqk,bkd->bqd"}> : () -> ()
    %cst_22 = arith.constant dense<0.000000e+00> : vector<1x8x8xf32>
    %61 = tpu.matmul %60, %44, %cst_22 {dimension_numbers = #tpu.dot_dimension_numbers<[2], [1], [1], [2], [0, 0, 0, 1, 1, 2], [0], [0]>} : vector<1x8x8xbf16>, vector<1x8x8xbf16>, vector<1x8x8xf32> -> vector<1x8x8xf32>
    "tpu.trace_stop"() : () -> ()
    %62 = vector.shape_cast %61 : vector<1x8x8xf32> to vector<8x8xf32>
    %63 = arith.truncf %62 : vector<8x8xf32> to vector<8x8xbf16>
    %c0_23 = arith.constant 0 : index
    %c8 = arith.constant 8 : index
    %64 = vector.load %arg14[%c0_23, %c8] : memref<8x32xbf16, #tpu.memory_space<vmem>>, vector<8x8xbf16>
    tpu.vector_store %arg14[%c0_23, %c8], %63 {strides = array<i32>} : memref<8x32xbf16, #tpu.memory_space<vmem>>, vector<8x8xbf16>,
    %65 = vector.extract_strided_slice %10 {offsets = [0, 0, 16], sizes = [1, 8, 8], strides = [1, 1, 1]} : vector<1x8x32xbf16> to vector<1x8x8xbf16>
    %66 = vector.extract_strided_slice %11 {offsets = [0, 0, 16], sizes = [1, 8, 8], strides = [1, 1, 1]} : vector<1x8x32xbf16> to vector<1x8x8xbf16>
    %67 = vector.extract_strided_slice %12 {offsets = [0, 0, 16], sizes = [1, 8, 8], strides = [1, 1, 1]} : vector<1x8x32xbf16> to vector<1x8x8xbf16>
    "tpu.trace_start"() <{level = 10 : i32, message = "bqd,bkd->bqk"}> : () -> ()
    %cst_24 = arith.constant dense<0.000000e+00> : vector<1x8x8xf32>
    %68 = tpu.matmul %65, %66, %cst_24 {dimension_numbers = #tpu.dot_dimension_numbers<[2], [2], [1], [1], [0, 0, 0, 1, 1, 1], [0], [0]>} : vector<1x8x8xbf16>, vector<1x8x8xbf16>, vector<1x8x8xf32> -> vector<1x8x8xf32>
    "tpu.trace_stop"() : () -> ()
    %cst_25 = arith.constant 0.353553385 : f32
    %69 = vector.broadcast %cst_25 : f32 to vector<1x8x8xf32>
    %70 = arith.mulf %68, %69 : vector<1x8x8xf32>
    %71 = vector.broadcast %18 : vector<1x1x8xf32> to vector<1x8x8xf32>
    %72 = arith.addf %70, %71 : vector<1x8x8xf32>
    %cst_26 = arith.constant dense<0xFF800000> : vector<1x8xf32>
    %73 = vector.multi_reduction <maximumf>, %72, %cst_26 [2] : vector<1x8x8xf32> to vector<1x8xf32>
    %74 = vector.shape_cast %73 : vector<1x8xf32> to vector<1x8x1xf32>
    %75 = vector.broadcast %74 : vector<1x8x1xf32> to vector<1x8x8xf32>
    %76 = arith.subf %72, %75 : vector<1x8x8xf32>
    %77 = math.exp %76 : vector<1x8x8xf32>
    %cst_27 = arith.constant dense<0.000000e+00> : vector<1x8xf32>
    %78 = vector.multi_reduction <add>, %77, %cst_27 [2] : vector<1x8x8xf32> to vector<1x8xf32>
    %79 = vector.shape_cast %78 : vector<1x8xf32> to vector<1x8x1xf32>
    %80 = tpu.reciprocal %79 {approx = true} : vector<1x8x1xf32> -> vector<1x8x1xf32>
    %81 = vector.broadcast %80 : vector<1x8x1xf32> to vector<1x8x8xf32>
    %82 = arith.mulf %77, %81 : vector<1x8x8xf32>
    %83 = arith.truncf %82 : vector<1x8x8xf32> to vector<1x8x8xbf16>
    "tpu.trace_start"() <{level = 10 : i32, message = "bqk,bkd->bqd"}> : () -> ()
    %cst_28 = arith.constant dense<0.000000e+00> : vector<1x8x8xf32>
    %84 = tpu.matmul %83, %67, %cst_28 {dimension_numbers = #tpu.dot_dimension_numbers<[2], [1], [1], [2], [0, 0, 0, 1, 1, 2], [0], [0]>} : vector<1x8x8xbf16>, vector<1x8x8xbf16>, vector<1x8x8xf32> -> vector<1x8x8xf32>
    "tpu.trace_stop"() : () -> ()
    %85 = vector.shape_cast %84 : vector<1x8x8xf32> to vector<8x8xf32>
    %86 = arith.truncf %85 : vector<8x8xf32> to vector<8x8xbf16>
    %c0_29 = arith.constant 0 : index
    %c16 = arith.constant 16 : index
    %87 = vector.load %arg14[%c0_29, %c16] : memref<8x32xbf16, #tpu.memory_space<vmem>>, vector<8x8xbf16>
    tpu.vector_store %arg14[%c0_29, %c16], %86 {strides = array<i32>} : memref<8x32xbf16, #tpu.memory_space<vmem>>, vector<8x8xbf16>,
    %88 = vector.extract_strided_slice %10 {offsets = [0, 0, 24], sizes = [1, 8, 8], strides = [1, 1, 1]} : vector<1x8x32xbf16> to vector<1x8x8xbf16>
    %89 = vector.extract_strided_slice %11 {offsets = [0, 0, 24], sizes = [1, 8, 8], strides = [1, 1, 1]} : vector<1x8x32xbf16> to vector<1x8x8xbf16>
    %90 = vector.extract_strided_slice %12 {offsets = [0, 0, 24], sizes = [1, 8, 8], strides = [1, 1, 1]} : vector<1x8x32xbf16> to vector<1x8x8xbf16>
    "tpu.trace_start"() <{level = 10 : i32, message = "bqd,bkd->bqk"}> : () -> ()
    %cst_30 = arith.constant dense<0.000000e+00> : vector<1x8x8xf32>
    %91 = tpu.matmul %88, %89, %cst_30 {dimension_numbers = #tpu.dot_dimension_numbers<[2], [2], [1], [1], [0, 0, 0, 1, 1, 1], [0], [0]>} : vector<1x8x8xbf16>, vector<1x8x8xbf16>, vector<1x8x8xf32> -> vector<1x8x8xf32>
    "tpu.trace_stop"() : () -> ()
    %cst_31 = arith.constant 0.353553385 : f32
    %92 = vector.broadcast %cst_31 : f32 to vector<1x8x8xf32>
    %93 = arith.mulf %91, %92 : vector<1x8x8xf32>
    %94 = vector.broadcast %18 : vector<1x1x8xf32> to vector<1x8x8xf32>
    %95 = arith.addf %93, %94 : vector<1x8x8xf32>
    %cst_32 = arith.constant dense<0xFF800000> : vector<1x8xf32>
    %96 = vector.multi_reduction <maximumf>, %95, %cst_32 [2] : vector<1x8x8xf32> to vector<1x8xf32>
    %97 = vector.shape_cast %96 : vector<1x8xf32> to vector<1x8x1xf32>
    %98 = vector.broadcast %97 : vector<1x8x1xf32> to vector<1x8x8xf32>
    %99 = arith.subf %95, %98 : vector<1x8x8xf32>
    %100 = math.exp %99 : vector<1x8x8xf32>
    %cst_33 = arith.constant dense<0.000000e+00> : vector<1x8xf32>
    %101 = vector.multi_reduction <add>, %100, %cst_33 [2] : vector<1x8x8xf32> to vector<1x8xf32>
    %102 = vector.shape_cast %101 : vector<1x8xf32> to vector<1x8x1xf32>
    %103 = tpu.reciprocal %102 {approx = true} : vector<1x8x1xf32> -> vector<1x8x1xf32>
    %104 = vector.broadcast %103 : vector<1x8x1xf32> to vector<1x8x8xf32>
    %105 = arith.mulf %100, %104 : vector<1x8x8xf32>
    %106 = arith.truncf %105 : vector<1x8x8xf32> to vector<1x8x8xbf16>
    "tpu.trace_start"() <{level = 10 : i32, message = "bqk,bkd->bqd"}> : () -> ()
    %cst_34 = arith.constant dense<0.000000e+00> : vector<1x8x8xf32>
    %107 = tpu.matmul %106, %90, %cst_34 {dimension_numbers = #tpu.dot_dimension_numbers<[2], [1], [1], [2], [0, 0, 0, 1, 1, 2], [0], [0]>} : vector<1x8x8xbf16>, vector<1x8x8xbf16>, vector<1x8x8xf32> -> vector<1x8x8xf32>
    "tpu.trace_stop"() : () -> ()
    %108 = vector.shape_cast %107 : vector<1x8x8xf32> to vector<8x8xf32>
    %109 = arith.truncf %108 : vector<8x8xf32> to vector<8x8xbf16>
    %c0_35 = arith.constant 0 : index
    %c24 = arith.constant 24 : index
    %110 = vector.load %arg14[%c0_35, %c24] : memref<8x32xbf16, #tpu.memory_space<vmem>>, vector<8x8xbf16>
    tpu.vector_store %arg14[%c0_35, %c24], %109 {strides = array<i32>} : memref<8x32xbf16, #tpu.memory_space<vmem>>, vector<8x8xbf16>,
    %c0_36 = arith.constant 0 : index
    %c0_37 = arith.constant 0 : index
    %111 = vector.load %arg14[%c0_36, %c0_37] : memref<8x32xbf16, #tpu.memory_space<vmem>>, vector<8x32xbf16>
    %c0_38 = arith.constant 0 : index
    %c0_39 = arith.constant 0 : index
    %112 = vector.load %arg5[%c0_38, %c0_39] : memref<32x32xbf16, #tpu.memory_space<vmem>>, vector<32x32xbf16>
    %cst_40 = arith.constant dense<0.000000e+00> : vector<8x32xf32>
    %113 = tpu.matmul %111, %112, %cst_40 {dimension_numbers = #tpu.dot_dimension_numbers<[1], [0], [0], [1], [0, 0, 1, 1], [], []>} : vector<8x32xbf16>, vector<32x32xbf16>, vector<8x32xf32> -> vector<8x32xf32>
    %c0_41 = arith.constant 0 : index
    %c0_42 = arith.constant 0 : index
    %114 = vector.load %arg6[%c0_41, %c0_42] : memref<1x32xf32, #tpu.memory_space<vmem>>, vector<1x32xf32>
    %115 = vector.broadcast %114 : vector<1x32xf32> to vector<8x32xf32>
    %116 = arith.addf %113, %115 : vector<8x32xf32>
    %c0_43 = arith.constant 0 : index
    %c0_44 = arith.constant 0 : index
    %117 = vector.load %arg7[%c0_43, %c0_44] : memref<1x32xf32, #tpu.memory_space<vmem>>, vector<1x32xf32>
    %c0_45 = arith.constant 0 : index
    %c0_46 = arith.constant 0 : index
    %118 = vector.load %arg8[%c0_45, %c0_46] : memref<1x32xf32, #tpu.memory_space<vmem>>, vector<1x32xf32>
    %119 = arith.addf %1, %116 : vector<8x32xf32>
    %cst_47 = arith.constant dense<0.000000e+00> : vector<8xf32>
    %120 = vector.multi_reduction <add>, %119, %cst_47 [1] : vector<8x32xf32> to vector<8xf32>
    %121 = vector.shape_cast %120 : vector<8xf32> to vector<8x1xf32>
    %cst_48 = arith.constant 3.200000e+01 : f32
    %122 = vector.broadcast %cst_48 : f32 to vector<8x1xf32>
    %123 = arith.divf %121, %122 : vector<8x1xf32>
    %124 = vector.broadcast %123 : vector<8x1xf32> to vector<8x32xf32>
    %125 = arith.subf %119, %124 : vector<8x32xf32>
    %126 = arith.mulf %125, %125 : vector<8x32xf32>
    %cst_49 = arith.constant dense<0.000000e+00> : vector<8xf32>
    %127 = vector.multi_reduction <add>, %126, %cst_49 [1] : vector<8x32xf32> to vector<8xf32>
    %128 = vector.shape_cast %127 : vector<8xf32> to vector<8x1xf32>
    %cst_50 = arith.constant 3.200000e+01 : f32
    %129 = vector.broadcast %cst_50 : f32 to vector<8x1xf32>
    %130 = arith.divf %128, %129 : vector<8x1xf32>
    %131 = vector.broadcast %123 : vector<8x1xf32> to vector<8x32xf32>
    %132 = arith.subf %119, %131 : vector<8x32xf32>
    %cst_51 = arith.constant 9.99999974E-6 : f32
    %133 = vector.broadcast %cst_51 : f32 to vector<8x1xf32>
    %134 = arith.addf %130, %133 : vector<8x1xf32>
    %135 = math.rsqrt %134 : vector<8x1xf32>
    %136 = vector.broadcast %135 : vector<8x1xf32> to vector<8x32xf32>
    %137 = arith.mulf %132, %136 : vector<8x32xf32>
    %138 = vector.broadcast %117 : vector<1x32xf32> to vector<8x32xf32>
    %139 = arith.mulf %137, %138 : vector<8x32xf32>
    %140 = vector.broadcast %118 : vector<1x32xf32> to vector<8x32xf32>
    %141 = arith.addf %139, %140 : vector<8x32xf32>
    %142 = arith.truncf %141 : vector<8x32xf32> to vector<8x32xbf16>
    %c0_52 = arith.constant 0 : index
    %c0_53 = arith.constant 0 : index
    %143 = vector.load %arg9[%c0_52, %c0_53] : memref<32x64xbf16, #tpu.memory_space<vmem>>, vector<32x64xbf16>
    %cst_54 = arith.constant dense<0.000000e+00> : vector<8x64xf32>
    %144 = tpu.matmul %142, %143, %cst_54 {dimension_numbers = #tpu.dot_dimension_numbers<[1], [0], [0], [1], [0, 0, 1, 1], [], []>} : vector<8x32xbf16>, vector<32x64xbf16>, vector<8x64xf32> -> vector<8x64xf32>
    %c0_55 = arith.constant 0 : index
    %c0_56 = arith.constant 0 : index
    %145 = vector.load %arg10[%c0_55, %c0_56] : memref<1x64xf32, #tpu.memory_space<vmem>>, vector<1x64xf32>
    %146 = vector.broadcast %145 : vector<1x64xf32> to vector<8x64xf32>
    %147 = arith.addf %144, %146 : vector<8x64xf32>
    %cst_57 = arith.constant 0.000000e+00 : f32
    %148 = vector.broadcast %cst_57 : f32 to vector<8x64xf32>
    %149 = arith.maximumf %147, %148 : vector<8x64xf32>
    %150 = arith.truncf %149 : vector<8x64xf32> to vector<8x64xbf16>
    %c0_58 = arith.constant 0 : index
    %c0_59 = arith.constant 0 : index
    %151 = vector.load %arg11[%c0_58, %c0_59] : memref<64x32xbf16, #tpu.memory_space<vmem>>, vector<64x32xbf16>
    %cst_60 = arith.constant dense<0.000000e+00> : vector<8x32xf32>
    %152 = tpu.matmul %150, %151, %cst_60 {dimension_numbers = #tpu.dot_dimension_numbers<[1], [0], [0], [1], [0, 0, 1, 1], [], []>} : vector<8x64xbf16>, vector<64x32xbf16>, vector<8x32xf32> -> vector<8x32xf32>
    %c0_61 = arith.constant 0 : index
    %c0_62 = arith.constant 0 : index
    %153 = vector.load %arg12[%c0_61, %c0_62] : memref<1x32xf32, #tpu.memory_space<vmem>>, vector<1x32xf32>
    %154 = vector.broadcast %153 : vector<1x32xf32> to vector<8x32xf32>
    %155 = arith.addf %152, %154 : vector<8x32xf32>
    %156 = arith.addf %141, %155 : vector<8x32xf32>
    %cst_63 = arith.constant dense<0.000000e+00> : vector<8xf32>
    %157 = vector.multi_reduction <add>, %156, %cst_63 [1] : vector<8x32xf32> to vector<8xf32>
    %158 = vector.shape_cast %157 : vector<8xf32> to vector<8x1xf32>
    %cst_64 = arith.constant 3.200000e+01 : f32
    %159 = vector.broadcast %cst_64 : f32 to vector<8x1xf32>
    %160 = arith.divf %158, %159 : vector<8x1xf32>
    %161 = vector.broadcast %160 : vector<8x1xf32> to vector<8x32xf32>
    %162 = arith.subf %156, %161 : vector<8x32xf32>
    %163 = arith.mulf %162, %162 : vector<8x32xf32>
    %cst_65 = arith.constant dense<0.000000e+00> : vector<8xf32>
    %164 = vector.multi_reduction <add>, %163, %cst_65 [1] : vector<8x32xf32> to vector<8xf32>
    %165 = vector.shape_cast %164 : vector<8xf32> to vector<8x1xf32>
    %cst_66 = arith.constant 3.200000e+01 : f32
    %166 = vector.broadcast %cst_66 : f32 to vector<8x1xf32>
    %167 = arith.divf %165, %166 : vector<8x1xf32>
    %168 = vector.broadcast %160 : vector<8x1xf32> to vector<8x32xf32>
    %169 = arith.subf %156, %168 : vector<8x32xf32>
    %cst_67 = arith.constant 9.99999974E-6 : f32
    %170 = vector.broadcast %cst_67 : f32 to vector<8x1xf32>
    %171 = arith.addf %167, %170 : vector<8x1xf32>
    %172 = math.rsqrt %171 : vector<8x1xf32>
    %173 = vector.broadcast %172 : vector<8x1xf32> to vector<8x32xf32>
    %174 = arith.mulf %169, %173 : vector<8x32xf32>
    %175 = vector.broadcast %117 : vector<1x32xf32> to vector<8x32xf32>
    %176 = arith.mulf %174, %175 : vector<8x32xf32>
    %177 = vector.broadcast %118 : vector<1x32xf32> to vector<8x32xf32>
    %178 = arith.addf %176, %177 : vector<8x32xf32>
    %179 = vector.shape_cast %178 : vector<8x32xf32> to vector<1x8x32xf32>
    %c0_68 = arith.constant 0 : index
    %c0_69 = arith.constant 0 : index
    %c0_70 = arith.constant 0 : index
    %180 = vector.load %arg13[%c0_68, %c0_69, %c0_70] : memref<1x8x32xf32, #tpu.memory_space<vmem>>, vector<1x8x32xf32>
    tpu.vector_store %arg13[%c0_68, %c0_69, %c0_70], %179 {strides = array<i32>} : memref<1x8x32xf32, #tpu.memory_space<vmem>>, vector<1x8x32xf32>,
    return
  }
  func.func @transform_0(%arg0: i32) -> (i32, i32, i32) {
    %c0_i32 = arith.constant 0 : i32
    %c0_i32_0 = arith.constant 0 : i32
    %c0_i32_1 = arith.constant 0 : i32
    return %arg0, %c0_i32, %c0_i32_0 : i32, i32, i32
  }
  func.func @transform_1(%arg0: i32) -> (i32, i32, i32) {
    %c0_i32 = arith.constant 0 : i32
    %c0_i32_0 = arith.constant 0 : i32
    %c0_i32_1 = arith.constant 0 : i32
    return %arg0, %c0_i32, %c0_i32_0 : i32, i32, i32
  }
  func.func @transform_2(%arg0: i32) -> (i32, i32) {
    %c0_i32 = arith.constant 0 : i32
    %c0_i32_0 = arith.constant 0 : i32
    %c0_i32_1 = arith.constant 0 : i32
    return %c0_i32, %c0_i32_0 : i32, i32
  }
  func.func @transform_3(%arg0: i32) -> (i32, i32) {
    %c0_i32 = arith.constant 0 : i32
    %c0_i32_0 = arith.constant 0 : i32
    %c0_i32_1 = arith.constant 0 : i32
    return %c0_i32, %c0_i32_0 : i32, i32
  }
  func.func @transform_4(%arg0: i32) -> (i32, i32) {
    %c0_i32 = arith.constant 0 : i32
    %c0_i32_0 = arith.constant 0 : i32
    %c0_i32_1 = arith.constant 0 : i32
    return %c0_i32, %c0_i32_0 : i32, i32
  }
  func.func @transform_5(%arg0: i32) -> (i32, i32) {
    %c0_i32 = arith.constant 0 : i32
    %c0_i32_0 = arith.constant 0 : i32
    %c0_i32_1 = arith.constant 0 : i32
    return %c0_i32, %c0_i32_0 : i32, i32
  }
  func.func @transform_6(%arg0: i32) -> (i32, i32) {
    %c0_i32 = arith.constant 0 : i32
    %c0_i32_0 = arith.constant 0 : i32
    %c0_i32_1 = arith.constant 0 : i32
    return %c0_i32, %c0_i32_0 : i32, i32
  }
  func.func @transform_7(%arg0: i32) -> (i32, i32) {
    %c0_i32 = arith.constant 0 : i32
    %c0_i32_0 = arith.constant 0 : i32
    %c0_i32_1 = arith.constant 0 : i32
    return %c0_i32, %c0_i32_0 : i32, i32
  }
  func.func @transform_8(%arg0: i32) -> (i32, i32) {
    %c0_i32 = arith.constant 0 : i32
    %c0_i32_0 = arith.constant 0 : i32
    %c0_i32_1 = arith.constant 0 : i32
    return %c0_i32, %c0_i32_0 : i32, i32
  }
  func.func @transform_9(%arg0: i32) -> (i32, i32) {
    %c0_i32 = arith.constant 0 : i32
    %c0_i32_0 = arith.constant 0 : i32
    %c0_i32_1 = arith.constant 0 : i32
    return %c0_i32, %c0_i32_0 : i32, i32
  }
  func.func @transform_10(%arg0: i32) -> (i32, i32) {
    %c0_i32 = arith.constant 0 : i32
    %c0_i32_0 = arith.constant 0 : i32
    %c0_i32_1 = arith.constant 0 : i32
    return %c0_i32, %c0_i32_0 : i32, i32
  }
  func.func @transform_11(%arg0: i32) -> (i32, i32) {
    %c0_i32 = arith.constant 0 : i32
    %c0_i32_0 = arith.constant 0 : i32
    %c0_i32_1 = arith.constant 0 : i32
    return %c0_i32, %c0_i32_0 : i32, i32
  }
  func.func @transform_12(%arg0: i32) -> (i32, i32, i32) {
    %c0_i32 = arith.constant 0 : i32
    %c0_i32_0 = arith.constant 0 : i32
    %c0_i32_1 = arith.constant 0 : i32
    return %arg0, %c0_i32, %c0_i32_0 : i32, i32, i32
  }
}

</mosaic_0001>

<bundles_post_ra>
// kernel: tpu_custom_call.1
= control target key start
LH: loop header
LB: loop body
LE: loop exit
PB: predicated region body
PF: predicated region fallthrough
CT: control target
= control target key end

     0   :  { %s3091_s0 = inlined_call_operand.hbm [shape: f32[2,8,32], index: 0, kind: input, shape index: {}]   ;;  %s3092_s1 = inlined_call_operand.hbm [shape: s32[2,1,8], index: 1, kind: input, shape index: {}]   ;;  %s3093_s2 = inlined_call_operand.hbm [shape: bf16[32,96], index: 2, kind: input, shape index: {}]   ;;  %s3094_s3 = inlined_call_operand.hbm [shape: f32[1,96], index: 3, kind: input, shape index: {}]   ;;  %s3095_s4 = inlined_call_operand.hbm [shape: bf16[32,32], index: 4, kind: input, shape index: {}]   ;;  %s3096_s5 = inlined_call_operand.hbm [shape: f32[1,32], index: 5, kind: input, shape index: {}]   ;;  %s3097_s6 = inlined_call_operand.hbm [shape: f32[1,32], index: 6, kind: input, shape index: {}]   ;;  %s3098_s7 = inlined_call_operand.hbm [shape: f32[1,32], index: 7, kind: input, shape index: {}]   ;;  %s3099_s8 = inlined_call_operand.hbm [shape: bf16[32,64], index: 8, kind: input, shape index: {}]   ;;  %s3100_s9 = inlined_call_operand.hbm [shape: f32[1,64], index: 9, kind: input, shape index: {}]   ;;  %s3101_s10 = inlined_call_operand.hbm [shape: bf16[64,32], index: 10, kind: input, shape index: {}]   ;;  %s3102_s11 = inlined_call_operand.hbm [shape: f32[1,32], index: 11, kind: input, shape index: {}]   ;;  %s3103_s12 = inlined_call_operand.hbm [shape: f32[2,8,32], index: 12, kind: output, shape index: {}]  }
   0x1   :  { %3116 = sst [smem:[#allocation34_spill]] %s3091_s0 }
   0x2   :  { %3117 = sst [smem:[#allocation35_spill]] %s3092_s1 }
   0x3   :  { %3118 = sst [smem:[#allocation36_spill]] %s3093_s2 }
   0x4   :  { %3119 = sst [smem:[#allocation37_spill]] %s3094_s3 }
   0x5   :  { %3120 = sst [smem:[#allocation38_spill]] %s3095_s4 }
   0x6   :  { %3121 = sst [smem:[#allocation39_spill]] %s3096_s5 }
   0x7   :  { %3122 = sst [smem:[#allocation40_spill]] %s3097_s6 }
   0x8   :  { %3123 = sst [smem:[#allocation41_spill]] %s3103_s12 }
   0x9   :  { %17 = vsyncpa [#allocation4], 0 }
   0xa   :  { %19 = vsyncpa [#allocation4 + $0x1], 0 }
   0xb   :  { %20 = vsyncpa [#allocation7], 0 }
   0xc   :  { %22 = vsyncpa [#allocation7 + $0x1], 0 }
   0xd   :  { %23 = vsyncpa [#allocation10], 0 }
   0xe   :  { %24 = vsyncpa [#allocation13], 0 }
   0xf   :  { %25 = vsyncpa [#allocation16], 0 }
  0x10   :  { %26 = vsyncpa [#allocation19], 0 }
  0x11   :  { %27 = vsyncpa [#allocation22], 0 }
  0x12   :  { %28 = vsyncpa [#allocation5], 0 }
  0x13   :  { %30 = vsyncpa [#allocation5 + $0x1], 0  ;;  %s2534_s21 = smov 0   ;;  %s2536_s22 = smov 0  }
  0x14   :  { %s2538_s23 = smov 0   ;;  %s2540_s24 = smov 0  }
  0x15 LB: > { %s2438_s25 = smov [#allocation8]   ;;  %s2555_s27 = sadd.s32 4294967295, %s2436_s24   ;;  %s2436_s24 = sphi %s2540_s24, %s3166_s24   ;;  %s2432_s23 = sphi %s2538_s23, %s3165_s23   ;;  %s2428_s22 = sphi %s2536_s22, %s3164_s22   ;;  %s2424_s21 = sphi %s2534_s21, %s3163_s21  }
  0x16   : > { %s341_s26 = sshll.u32 %s2438_s25, 4  ;;  %p1622_p0 = scmp.ge.s32.totalorder %s2436_s24, 1  ;;  %s2560_s26 = int_to_ptr.vmem [resolvable:$true] %s341_s26 }
  0x17   : > { %p3110_p1 = scmp.eq.s32.totalorder %s2555_s27, 0  ;;  %p329_p2 = scmp.lt.s32.totalorder %s2436_s24, 3 }
  0x18   : > { %s2439_s29 = smov [#allocation9]   ;;  %s2440_s14 = smov [#allocation12]  }
  0x19   : > { %p2562_p3 = pnand %p1622_p0, %p329_p2  ;;  %s355_s30 = sshll.u32 %s2439_s29, 4  ;;  %s2575_s30 = int_to_ptr.vmem [resolvable:$true] %s355_s30 }
  0x1a   : > { %s379_s15 = sshll.u32 %s2440_s14, 4  ;;  %s3127_s2 = sld [smem:[#allocation36_spill]]  ;;  %s2577_s15 = int_to_ptr.vmem [resolvable:$true] %s379_s15 }
  0x1b   : > { %s3124_s28 = scalar_select %p2562_p3, 1, 0 }
  0x1c   : > { %p1848_p5 = pneg %p2562_p3 }
  0x1d   : > { %3125 = sst [smem:[#allocation33_spill]] %s3124_s28 }
  0x1e   : > { %p2571_p6 = pnand %p1848_p5, %p3110_p1 }
  0x20   : > { %s2002_s18 = scalar_lea.hbm %s3127_s2, 256  ;;  %p2587_p8 = pneg %p2571_p6 }
  0x21   : > { %p2003_p7 = scmp.ne.s32.totalorder %s3127_s2, %s2002_s18  ;;  %p2009_p11 = scmp.lt.u32.totalorder %s2002_s18, %s3127_s2 }
  0x23   : > { %p2005_p9 = pnand %p2587_p8, %p2003_p7 }
  0x25   : > { %p2006_p10 = pneg %p2005_p9 }
  0x27   : > { %p2011_p12 = pnand %p2009_p11, %p2006_p10 }
  0x29   : > { %2014 = shalt.err (!%p2011_p12)
}
  0x2a   : > { %s2015_s16 = scalar_lea.vmem %s2560_s26, 256  ;;  %p2023_p5 = scmp.lt.s32.totalorder %s2560_s26, %s2560_s26 }
  0x2b   : > { %p2016_p13 = scmp.ne.s32.totalorder %s2560_s26, %s2015_s16  ;;  %p2024_p4 = scmp.lt.s32.totalorder %s2015_s16, %s2015_s16 }
  0x2d   : > { %p2018_p0 = pnand %p2016_p13, %p2587_p8  ;;  %p2025_p7 = por %p2024_p4, %p2023_p5 }
  0x2f   : > { %p2019_p2 = pneg %p2018_p0 }
  0x31   : > { %p2026_p9 = pnand %p2025_p7, %p2019_p2 }
  0x33   : > { %2029 = shalt.err (!%p2026_p9)
}
  0x34   : > { %s3108_s17 = smov 64   ;;  %s3112_s18 = smov 4  }
  0x35   : > { %1851 = dma.hbm_to_vmem [thread:$0]  (!%p2571_p6), %s3127_s2, 256, %s2560_s26, [#allocation7], %s3108_s17, %s3108_s17, %s3112_s18  }
  0x36   : > { %s3129_s3 = sld [smem:[#allocation37_spill]] }
  0x3c   : > { %s2030_s16 = scalar_lea.hbm %s3129_s3, 16 }
  0x3d   : > { %p2031_p4 = scmp.ne.s32.totalorder %s3129_s3, %s2030_s16  ;;  %p2037_p12 = scmp.lt.u32.totalorder %s2030_s16, %s3129_s3 }
  0x3f   : > { %p2033_p10 = pnand %p2031_p4, %p2587_p8 }
  0x41   : > { %p2034_p11 = pneg %p2033_p10 }
  0x43   : > { %p2039_p13 = pnand %p2037_p12, %p2034_p11 }
  0x45   : > { %2042 = shalt.err (!%p2039_p13)
}
  0x46   : > { %s2043_s26 = scalar_lea.vmem %s2575_s30, 16  ;;  %s2050_s12 = scalar_lea.vmem %s2575_s30, 32 }
  0x47   : > { %p2044_p0 = scmp.ne.s32.totalorder %s2575_s30, %s2043_s26  ;;  %p2051_p7 = scmp.lt.s32.totalorder %s2575_s30, %s2575_s30 }
  0x48   : > { %p2052_p9 = scmp.lt.s32.totalorder %s2050_s12, %s2043_s26 }
  0x49   : > { %p2046_p2 = pnand %p2044_p0, %p2587_p8 }
  0x4a   : > { %p2053_p4 = por %p2052_p9, %p2051_p7 }
  0x4b   : > { %p2047_p5 = pneg %p2046_p2 }
  0x4d   : > { %p2054_p10 = pnand %p2053_p4, %p2047_p5 }
  0x4f   : > { %2057 = shalt.err (!%p2054_p10)
}
  0x50   : > { %1854 = dma.hbm_to_vmem [thread:$0]  (!%p2571_p6), %s3129_s3, 16, %s2575_s30, [#allocation10]  }
  0x51   : > { %s3130_s5 = sld [smem:[#allocation39_spill]] }
  0x57   : > { %s2058_s20 = scalar_lea.hbm %s3130_s5, 16 }
  0x58   : > { %p2059_p11 = scmp.ne.s32.totalorder %s3130_s5, %s2058_s20  ;;  %p2065_p0 = scmp.lt.u32.totalorder %s2058_s20, %s3130_s5 }
  0x5a   : > { %p2061_p12 = pnand %p2059_p11, %p2587_p8 }
  0x5c   : > { %p2062_p13 = pneg %p2061_p12 }
  0x5e   : > { %p2067_p2 = pnand %p2065_p0, %p2062_p13 }
  0x60   : > { %2070 = shalt.err (!%p2067_p2)
}
  0x61   : > { %s2071_s30 = scalar_lea.vmem %s2577_s15, 16  ;;  %s2078_s12 = scalar_lea.vmem %s2577_s15, 32 }
  0x62   : > { %p2072_p5 = scmp.ne.s32.totalorder %s2577_s15, %s2071_s30  ;;  %p2079_p4 = scmp.lt.s32.totalorder %s2577_s15, %s2577_s15 }
  0x63   : > { %p2080_p10 = scmp.lt.s32.totalorder %s2078_s12, %s2071_s30 }
  0x64   : > { %p2074_p7 = pnand %p2072_p5, %p2587_p8 }
  0x65   : > { %p2081_p11 = por %p2080_p10, %p2079_p4 }
  0x66   : > { %p2075_p9 = pneg %p2074_p7 }
  0x68   : > { %p2082_p12 = pnand %p2081_p11, %p2075_p9 }
  0x6a   : > { %2085 = shalt.err (!%p2082_p12)
}
  0x6b   : > { %1860 = dma.hbm_to_vmem [thread:$0]  (!%p2571_p6), %s3130_s5, 16, %s2577_s15, [#allocation13]  }
  0x6c   : > { %s2443_s28 = smov [#allocation15]   ;;  %s2444_s20 = smov [#allocation18]  }
  0x6d   : > { %s401_s19 = sshll.u32 %s2443_s28, 4  ;;  %s425_s29 = sshll.u32 %s2444_s20, 4  ;;  %s402_s19 = int_to_ptr.vmem [resolvable:$true] %s401_s19  ;;  %s426_s29 = int_to_ptr.vmem [resolvable:$true] %s425_s29 }
  0x6e   : > { %s2086_s26 = scalar_lea.hbm %s3098_s7, 16 }
  0x6f   : > { %p2087_p13 = scmp.ne.s32.totalorder %s3098_s7, %s2086_s26  ;;  %p2093_p5 = scmp.lt.u32.totalorder %s2086_s26, %s3098_s7 }
  0x71   : > { %p2089_p0 = pnand %p2087_p13, %p2587_p8 }
  0x73   : > { %p2090_p2 = pneg %p2089_p0 }
  0x75   : > { %p2095_p7 = pnand %p2093_p5, %p2090_p2 }
  0x77   : > { %2098 = shalt.err (!%p2095_p7)
}
  0x78   : > { %s2099_s15 = scalar_lea.vmem %s402_s19, 16  ;;  %s2106_s1 = scalar_lea.vmem %s402_s19, 32 }
  0x79   : > { %p2100_p9 = scmp.ne.s32.totalorder %s402_s19, %s2099_s15  ;;  %p2107_p11 = scmp.lt.s32.totalorder %s402_s19, %s402_s19 }
  0x7a   : > { %p2108_p12 = scmp.lt.s32.totalorder %s2106_s1, %s2099_s15 }
  0x7b   : > { %p2102_p4 = pnand %p2100_p9, %p2587_p8 }
  0x7c   : > { %p2109_p1 = por %p2108_p12, %p2107_p11 }
  0x7d   : > { %p2103_p10 = pneg %p2102_p4 }
  0x7f   : > { %p2110_p3 = pnand %p2109_p1, %p2103_p10 }
  0x81   : > { %2113 = shalt.err (!%p2110_p3)
}
  0x82   : > { %1866 = dma.hbm_to_vmem [thread:$0]  (!%p2571_p6), %s3098_s7, 16, %s402_s19, [#allocation16]  }
  0x83   : > { %s2114_s16 = scalar_lea.hbm %s3100_s9, 16 }
  0x84   : > { %p2115_p13 = scmp.ne.s32.totalorder %s3100_s9, %s2114_s16  ;;  %p2121_p3 = scmp.lt.u32.totalorder %s2114_s16, %s3100_s9 }
  0x86   : > { %p2117_p0 = pnand %p2115_p13, %p2587_p8 }
  0x88   : > { %p2118_p1 = pneg %p2117_p0 }
  0x8a   : > { %p2123_p2 = pnand %p2121_p3, %p2118_p1 }
  0x8c   : > { %2126 = shalt.err (!%p2123_p2)
}
  0x8d   : > { %s2127_s15 = scalar_lea.vmem %s426_s29, 16  ;;  %s2134_s19 = scalar_lea.vmem %s426_s29, 32 }
  0x8e   : > { %p2128_p5 = scmp.ne.s32.totalorder %s426_s29, %s2127_s15  ;;  %p2135_p4 = scmp.lt.s32.totalorder %s426_s29, %s426_s29 }
  0x8f   : > { %p2136_p10 = scmp.lt.s32.totalorder %s2134_s19, %s2127_s15 }
  0x90   : > { %p2130_p7 = pnand %p2128_p5, %p2587_p8 }
  0x91   : > { %p2137_p11 = por %p2136_p10, %p2135_p4 }
  0x92   : > { %p2131_p9 = pneg %p2130_p7 }
  0x94   : > { %p2138_p12 = pnand %p2137_p11, %p2131_p9 }
  0x96   : > { %2141 = shalt.err (!%p2138_p12)
}
  0x97   : > { %1872 = dma.hbm_to_vmem [thread:$0]  (!%p2571_p6), %s3100_s9, 16, %s426_s29, [#allocation19]  }
  0x98   : > { %s2445_s20 = smov [#allocation11]   ;;  %s2446_s14 = smov [#allocation14]  }
  0x99   : > { %s365_s17 = sshll.u32 %s2445_s20, 4  ;;  %s390_s16 = sshll.u32 %s2446_s14, 4  ;;  %s366_s17 = int_to_ptr.vmem [resolvable:$true] %s365_s17  ;;  %s391_s16 = int_to_ptr.vmem [resolvable:$true] %s390_s16 }
  0x9a   : > { %s3131_s4 = sld [smem:[#allocation38_spill]] }
  0xa0   : > { %s2142_s12 = scalar_lea.hbm %s3131_s4, 256 }
  0xa1   : > { %p2143_p13 = scmp.ne.s32.totalorder %s3131_s4, %s2142_s12  ;;  %p2149_p3 = scmp.lt.u32.totalorder %s2142_s12, %s3131_s4 }
  0xa3   : > { %p2145_p0 = pnand %p2143_p13, %p2587_p8 }
  0xa5   : > { %p2146_p1 = pneg %p2145_p0 }
  0xa7   : > { %p2151_p2 = pnand %p2149_p3, %p2146_p1 }
  0xa9   : > { %2154 = shalt.err (!%p2151_p2)
}
  0xaa   : > { %s2155_s29 = scalar_lea.vmem %s366_s17, 256  ;;  %p2163_p4 = scmp.lt.s32.totalorder %s366_s17, %s366_s17 }
  0xab   : > { %p2156_p5 = scmp.ne.s32.totalorder %s366_s17, %s2155_s29  ;;  %p2164_p10 = scmp.lt.s32.totalorder %s2155_s29, %s2155_s29 }
  0xad   : > { %p2158_p7 = pnand %p2156_p5, %p2587_p8  ;;  %p2165_p11 = por %p2164_p10, %p2163_p4 }
  0xaf   : > { %p2159_p9 = pneg %p2158_p7 }
  0xb1   : > { %p2166_p12 = pnand %p2165_p11, %p2159_p9 }
  0xb3   : > { %2169 = shalt.err (!%p2166_p12)
}
  0xb4   : > { %s3132_s28 = smov 64   ;;  %s3133_s6 = sld [smem:[#allocation40_spill]] }
  0xb5   : > { %1857 = dma.hbm_to_vmem [thread:$0]  (!%p2571_p6), %s3131_s4, 256, %s366_s17, [#allocation10], %s3132_s28, %s3132_s28, %s3112_s18  }
  0xba   : > { %s2170_s12 = scalar_lea.hbm %s3133_s6, 16 }
  0xbb   : > { %p2171_p13 = scmp.ne.s32.totalorder %s3133_s6, %s2170_s12  ;;  %p2177_p3 = scmp.lt.u32.totalorder %s2170_s12, %s3133_s6 }
  0xbd   : > { %p2173_p0 = pnand %p2171_p13, %p2587_p8 }
  0xbf   : > { %p2174_p1 = pneg %p2173_p0 }
  0xc1   : > { %p2179_p2 = pnand %p2177_p3, %p2174_p1 }
  0xc3   : > { %2182 = shalt.err (!%p2179_p2)
}
  0xc4   : > { %s2183_s29 = scalar_lea.vmem %s391_s16, 16  ;;  %s2190_s17 = scalar_lea.vmem %s391_s16, 32 }
  0xc5   : > { %p2184_p5 = scmp.ne.s32.totalorder %s391_s16, %s2183_s29  ;;  %p2191_p4 = scmp.lt.s32.totalorder %s391_s16, %s391_s16 }
  0xc6   : > { %p2192_p10 = scmp.lt.s32.totalorder %s2190_s17, %s2183_s29 }
  0xc7   : > { %p2186_p7 = pnand %p2184_p5, %p2587_p8 }
  0xc8   : > { %p2193_p11 = por %p2192_p10, %p2191_p4 }
  0xc9   : > { %p2187_p9 = pneg %p2186_p7 }
  0xcb   : > { %p2194_p12 = pnand %p2193_p11, %p2187_p9 }
  0xcd   : > { %2197 = shalt.err (!%p2194_p12)
}
  0xce   : > { %1863 = dma.hbm_to_vmem [thread:$0]  (!%p2571_p6), %s3133_s6, 16, %s391_s16, [#allocation13]  }
  0xcf   : > { %s2447_s26 = smov [#allocation17]   ;;  %s2448_s12 = smov [#allocation20]  }
  0xd0   : > { %s411_s30 = sshll.u32 %s2447_s26, 4  ;;  %s435_s0 = sshll.u32 %s2448_s12, 4  ;;  %s412_s30 = int_to_ptr.vmem [resolvable:$true] %s411_s30  ;;  %s436_s0 = int_to_ptr.vmem [resolvable:$true] %s435_s0 }
  0xd1   : > { %s2198_s1 = scalar_lea.hbm %s3099_s8, 256 }
  0xd2   : > { %p2199_p13 = scmp.ne.s32.totalorder %s3099_s8, %s2198_s1  ;;  %p2205_p3 = scmp.lt.u32.totalorder %s2198_s1, %s3099_s8 }
  0xd4   : > { %p2201_p0 = pnand %p2199_p13, %p2587_p8 }
  0xd6   : > { %p2202_p1 = pneg %p2201_p0 }
  0xd8   : > { %p2207_p2 = pnand %p2205_p3, %p2202_p1 }
  0xda   : > { %2210 = shalt.err (!%p2207_p2)
}
  0xdb   : > { %s2211_s16 = scalar_lea.vmem %s412_s30, 256  ;;  %p2219_p4 = scmp.lt.s32.totalorder %s412_s30, %s412_s30 }
  0xdc   : > { %p2212_p5 = scmp.ne.s32.totalorder %s412_s30, %s2211_s16  ;;  %p2220_p10 = scmp.lt.s32.totalorder %s2211_s16, %s2211_s16 }
  0xde   : > { %p2214_p7 = pnand %p2212_p5, %p2587_p8  ;;  %p2221_p11 = por %p2220_p10, %p2219_p4 }
  0xe0   : > { %p2215_p9 = pneg %p2214_p7 }
  0xe2   : > { %p2222_p12 = pnand %p2221_p11, %p2215_p9 }
  0xe4   : > { %2225 = shalt.err (!%p2222_p12)
}
  0xe5   : > { %s3134_s14 = smov 4   ;;  %s2226_s19 = scalar_lea.hbm %s3101_s10, 512 }
  0xe6   : > { %1869 = dma.hbm_to_vmem [thread:$0]  (!%p2571_p6), %s3099_s8, 256, %s412_s30, [#allocation16], %s3132_s28, %s3132_s28, %s3134_s14  }
  0xe7   : > { %p2227_p13 = scmp.ne.s32.totalorder %s3101_s10, %s2226_s19  ;;  %p2233_p3 = scmp.lt.u32.totalorder %s2226_s19, %s3101_s10 }
  0xe9   : > { %p2229_p0 = pnand %p2227_p13, %p2587_p8 }
  0xeb   : > { %p2230_p1 = pneg %p2229_p0 }
  0xed   : > { %p2235_p2 = pnand %p2233_p3, %p2230_p1 }
  0xef   : > { %2238 = shalt.err (!%p2235_p2)
}
  0xf0   : > { %s2239_s16 = scalar_lea.vmem %s436_s0, 512  ;;  %p2247_p4 = scmp.lt.s32.totalorder %s436_s0, %s436_s0 }
  0xf1   : > { %p2240_p5 = scmp.ne.s32.totalorder %s436_s0, %s2239_s16  ;;  %p2248_p10 = scmp.lt.s32.totalorder %s2239_s16, %s2239_s16 }
  0xf3   : > { %p2242_p7 = pnand %p2240_p5, %p2587_p8  ;;  %p2249_p11 = por %p2248_p10, %p2247_p4 }
  0xf5   : > { %p2243_p9 = pneg %p2242_p7 }
  0xf7   : > { %p2250_p12 = pnand %p2249_p11, %p2243_p9 }
  0xf9   : > { %2253 = shalt.err (!%p2250_p12)
}
  0xfa   : > { %1875 = dma.hbm_to_vmem [thread:$0]  (!%p2571_p6), %s3101_s10, 512, %s436_s0, [#allocation19], %s3132_s28, %s3132_s28, %s3134_s14  }
  0xfb   : > { %s2449_s26 = smov [#allocation21]   ;;  %s2254_s1 = scalar_lea.hbm %s3102_s11, 16 }
  0xfc   : > { %s449_s12 = sshll.u32 %s2449_s26, 4  ;;  %p2255_p13 = scmp.ne.s32.totalorder %s3102_s11, %s2254_s1  ;;  %s450_s12 = int_to_ptr.vmem [resolvable:$true] %s449_s12 }
  0xfd   : > { %p2261_p3 = scmp.lt.u32.totalorder %s2254_s1, %s3102_s11 }
  0xfe   : > { %p2257_p0 = pnand %p2255_p13, %p2587_p8 }
 0x100   : > { %p2258_p1 = pneg %p2257_p0 }
 0x102   : > { %p2263_p2 = pnand %p2261_p3, %p2258_p1 }
 0x104   : > { %2266 = shalt.err (!%p2263_p2)
}
 0x105   : > { %s2267_s28 = scalar_lea.vmem %s450_s12, 16  ;;  %s2274_s0 = scalar_lea.vmem %s450_s12, 32 }
 0x106   : > { %p2268_p5 = scmp.ne.s32.totalorder %s450_s12, %s2267_s28  ;;  %p2275_p4 = scmp.lt.s32.totalorder %s450_s12, %s450_s12 }
 0x107   : > { %p2276_p10 = scmp.lt.s32.totalorder %s2274_s0, %s2267_s28 }
 0x108   : > { %p2270_p7 = pnand %p2268_p5, %p2587_p8 }
 0x109   : > { %p2277_p11 = por %p2276_p10, %p2275_p4 }
 0x10a   : > { %p2271_p9 = pneg %p2270_p7 }
 0x10c   : > { %p2278_p12 = pnand %p2277_p11, %p2271_p9 }
 0x10e   : > { %2281 = shalt.err (!%p2278_p12)
}
 0x10f   : > { %1878 = dma.hbm_to_vmem [thread:$0]  (!%p2571_p6), %s3102_s11, 16, %s450_s12, [#allocation22]  }
 0x110   : > { %s1621_s25 = sadd.s32 4294967294, %s2436_s24   ;;  %s2796_s13 = sadd.s32 1, %s2436_s24  }
 0x111   : > { %s40_s18 = ssub.s32 %s2436_s24, %s2796_s13  ;;  %s43_s26 = sadd.s32 1, %s2432_s23 }
 0x112   : > { %p41_p8 = scmp.eq.s32.totalorder %s40_s18, 0  ;;  %p50_p13 = scmp.ne.s32.totalorder %s2432_s23, %s2428_s22 }
 0x113   : > { %p51_p0 = scmp.eq.s32.totalorder %s2436_s24, 0  ;;  %p56_p1 = scmp.ne.s32.totalorder %s2428_s22, %s2424_s21 }
 0x114   : > { %s2807_s15 = scalar_select %p41_p8, %s2432_s23, %s43_s26  }
 0x115   : > { %p2809_p3 = por %p51_p0, %p50_p13  ;;  %p3136_p2 = scmp.eq.s32.totalorder %s2555_s27, 0 }
 0x116   : > { %p316_p5 = scmp.eq.s32.totalorder %s2555_s27, 1  ;;  %p322_p7 = scmp.eq.s32.totalorder %s1621_s25, 1 }
 0x117   : > { %p2815_p6 = por %p3136_p2, %p56_p1  ;;  %p1900_p9 = scmp.lt.s32.totalorder %s2436_s24, 2 }
 0x118   : > { %s2822_s1 = sand.u32 1, %s2432_s23   ;;  %p2824_p4 = por %p316_p5, %p50_p13 }
 0x119   : > { %s3137_s12 = scalar_select %p2815_p6, 1, 0 }
 0x11a   : > { %s3138_s29 = scalar_select %p2824_p4, 1, 0 }
 0x11b   : > { %p2828_p10 = por %p322_p7, %p56_p1  ;;  %s1634_s20 = sshll.u32 %s2822_s1, 3 }
 0x11c   : > { %s1635_s16 = sshll.u32 %s2436_s24, 7  ;;  %s3140_s14 = sld [smem:[#allocation34_spill]] }
 0x11d   : > { %s3139_s17 = scalar_select %p2828_p10, 1, 0 }
 0x11e   : > { %s464_s25 = scalar_lea.vmem [#allocation3], %s1634_s20  ;;  %p2843_p11 = pnand %p1900_p9, %p2809_p3 }
 0x11f   : > { %s471_s18 = sshll.u32 %s464_s25, 4  ;;  %s461_s3 = scalar_lea.sflag [#allocation4], %s2822_s1  ;;  %s2839_s18 = int_to_ptr.vmem [resolvable:$true] %s471_s18 }
 0x120   : > { %p2284_p8 = pneg %p2843_p11 }
 0x122   : > { %s2837_s30 = scalar_lea.hbm %s3140_s14, %s1635_s16  ;;  %s2287_s19 = scalar_lea.hbm %s3140_s14, 256 }
 0x123   : > { %s2282_s28 = scalar_lea.hbm %s2837_s30, 128  ;;  %p2288_p1 = scmp.lt.u32.totalorder %s2837_s30, %s3140_s14 }
 0x124   : > { %p2283_p12 = scmp.ne.s32.totalorder %s2837_s30, %s2282_s28  ;;  %p2289_p3 = scmp.lt.u32.totalorder %s2287_s19, %s2282_s28 }
 0x125   : > { %p2291_p5 = scmp.lt.u32.totalorder %s2282_s28, %s2837_s30 }
 0x126   : > { %p2285_p13 = pnand %p2284_p8, %p2283_p12  ;;  %p2290_p2 = por %p2289_p3, %p2288_p1 }
 0x128   : > { %p2286_p0 = pneg %p2285_p13  ;;  %p2292_p7 = por %p2291_p5, %p2290_p2 }
 0x12a   : > { %p2293_p9 = pnand %p2292_p7, %p2286_p0 }
 0x12c   : > { %2296 = shalt.err (!%p2293_p9)
}
 0x12d   : > { %s2297_s2 = scalar_lea.vmem %s2839_s18, 128  ;;  %s2450_s20 = smov [#allocation3]  }
 0x12e   : > { %p2298_p12 = scmp.ne.s32.totalorder %s2839_s18, %s2297_s2  ;;  %s2302_s16 = sshll.u32 %s2450_s20, 4  ;;  %s2303_s16 = int_to_ptr.vmem [resolvable:$false] %s2302_s16 }
 0x12f   : > { %s2304_s0 = scalar_lea.vmem %s2303_s16, 256  ;;  %p2305_p4 = scmp.lt.s32.totalorder %s2839_s18, %s2303_s16 }
 0x130   : > { %p2300_p13 = pnand %p2298_p12, %p2284_p8  ;;  %p2306_p1 = scmp.lt.s32.totalorder %s2304_s0, %s2297_s2 }
 0x132   : > { %p2301_p10 = pneg %p2300_p13  ;;  %p2307_p3 = por %p2306_p1, %p2305_p4 }
 0x134   : > { %p2308_p2 = pnand %p2307_p3, %p2301_p10 }
 0x136   : > { %2311 = shalt.err (!%p2308_p2)
}
 0x137   : > { %1882 = dma.hbm_to_vmem [thread:$0]  (!%p2843_p11), %s2837_s30, 128, %s2839_s18, %s461_s3  }
 0x138   : > { %s1636_s28 = sshll.u32 %s2436_s24, 4  ;;  %s481_s19 = scalar_lea.vmem [#allocation6], %s2822_s1 }
 0x139   : > { %s488_s25 = sshll.u32 %s481_s19, 4  ;;  %s3142_s5 = sld [smem:[#allocation35_spill]]  ;;  %s489_s25 = int_to_ptr.vmem [resolvable:$true] %s488_s25 }
 0x13a   : > { %s3143_s2 = sand.u32 1, %s2436_s24  }
 0x13b   : > { %s479_s0 = scalar_lea.sflag [#allocation7], %s3143_s2 }
 0x13f   : > { %s2879_s16 = scalar_lea.hbm %s3142_s5, %s1636_s28  ;;  %s2317_s30 = scalar_lea.hbm %s3142_s5, 32 }
 0x140   : > { %s2312_s6 = scalar_lea.hbm %s2879_s16, 16  ;;  %p2318_p5 = scmp.lt.u32.totalorder %s2879_s16, %s3142_s5 }
 0x141   : > { %p2313_p4 = scmp.ne.s32.totalorder %s2879_s16, %s2312_s6  ;;  %p2319_p7 = scmp.lt.u32.totalorder %s2317_s30, %s2312_s6 }
 0x142   : > { %p2321_p12 = scmp.lt.u32.totalorder %s2312_s6, %s2879_s16 }
 0x143   : > { %p2315_p10 = pnand %p2313_p4, %p2284_p8  ;;  %p2320_p9 = por %p2319_p7, %p2318_p5 }
 0x145   : > { %p2316_p0 = pneg %p2315_p10  ;;  %p2322_p13 = por %p2321_p12, %p2320_p9 }
 0x147   : > { %p2323_p1 = pnand %p2322_p13, %p2316_p0 }
 0x149   : > { %2326 = shalt.err (!%p2323_p1)
}
 0x14a   : > { %s2327_s28 = scalar_lea.vmem %s489_s25, 16  ;;  %s2451_s19 = smov [#allocation6]  }
 0x14b   : > { %p2328_p3 = scmp.ne.s32.totalorder %s489_s25, %s2327_s28  ;;  %s2332_s20 = sshll.u32 %s2451_s19, 4  ;;  %s2333_s20 = int_to_ptr.vmem [resolvable:$false] %s2332_s20 }
 0x14c   : > { %s2334_s2 = scalar_lea.vmem %s2333_s20, 32  ;;  %p2335_p10 = scmp.lt.s32.totalorder %s489_s25, %s2333_s20 }
 0x14d   : > { %p2330_p2 = pnand %p2328_p3, %p2284_p8  ;;  %p2336_p6 = scmp.lt.s32.totalorder %s2334_s2, %s2327_s28 }
 0x14f   : > { %p2331_p4 = pneg %p2330_p2  ;;  %p2337_p5 = por %p2336_p6, %p2335_p10 }
 0x151   : > { %p2338_p7 = pnand %p2337_p5, %p2331_p4 }
 0x153   : > { %2341 = shalt.err (!%p2338_p7)
}
 0x154   : > { %1885 = dma.hbm_to_vmem [thread:$0]  (!%p2843_p11), %s2879_s16, 16, %s489_s25, %s479_s0  }
 0x155   : > { %s3144_s6 = sld [smem:[#allocation33_spill]] }
 0x15b   : > { %p3145_p0 = scmp.ne.s32.totalorder %s3144_s6, 0 }
 0x15c   : > { %s2905_s3 = sand.u32 (!%p3145_p0), 1, %s2428_s22   ;;  %p3146_p6 = scmp.ne.s32.totalorder (!%p3145_p0), %s3137_s12, 0 }
 0x15d   : > { %497 = sbr.rel (%p3145_p0) target bundleno = 2951 (0xb87), region = 68  ;;  %s1638_s1 = sshll.u32 (!%p3145_p0), %s2905_s3, 3 }
 0x15e   : > { %s500_s30 = scalar_lea.sflag (!%p3145_p0), [#allocation4], %s2905_s3  ;;  %s503_s4 = scalar_lea.vmem (!%p3145_p0), [#allocation3], %s1638_s1 }
 0x164   : > { %2387 = dma.done.wait (%p3146_p6), %s500_s30, 128  }
 0x165   : > { %2389 = vsyncadd (%p3146_p6), %s500_s30, 4294967168  ;;  %s508_s26 = sand.u32 1, %s2555_s27   ;;  %s511_s16 = scalar_lea.vmem [#allocation6], %s2905_s3 }
 0x166   : > { %s509_s25 = scalar_lea.sflag [#allocation7], %s508_s26 }
 0x167   : > { %2391 = dma.done.wait (%p3146_p6), %s509_s25, 16  }
 0x168   : > { %2393 = vsyncadd (%p3146_p6), %s509_s25, 4294967280  ;;  %p3147_p11 = scmp.eq.s32.totalorder %s2555_s27, 0 }
 0x16a   : > { %2395 = dma.done.wait (%p3147_p11), [#allocation7], 256   ;;  %p3148_p8 = pmov %p3147_p11 }
 0x16c   : > { %2397 = vsyncadd (%p3148_p8), [#allocation7], 4294967040  ;;  %p3149_p9 = pmov %p3148_p8 }
 0x16d   : > { %p3150_p12 = pmov %p3148_p8 }
 0x16e   : > { %2399 = dma.done.wait (%p3149_p9), [#allocation10], 272  }
 0x16f   : > { %2401 = vsyncadd (%p3150_p12), [#allocation10], 4294967024  ;;  %p3151_p13 = pmov %p3148_p8 }
 0x170   : > { %p3152_p1 = pmov %p3148_p8 }
 0x171   : > { %2403 = dma.done.wait (%p3151_p13), [#allocation13], 32  }
 0x172   : > { %2405 = vsyncadd (%p3152_p1), [#allocation13], 4294967264  ;;  %p3153_p3 = pmov %p3152_p1 }
 0x173   : > { %p3154_p2 = pmov %p3152_p1 }
 0x174   : > { %2407 = dma.done.wait (%p3153_p3), [#allocation16], 272  }
 0x175   : > { %2409 = vsyncadd (%p3154_p2), [#allocation16], 4294967024  ;;  %p3155_p4 = pmov %p3152_p1 }
 0x176   : > { %p3156_p10 = pmov %p3152_p1 }
 0x177   : > { %2411 = dma.done.wait (%p3155_p4), [#allocation19], 528  }
 0x178   : > { %2413 = vsyncadd (%p3156_p10), [#allocation19], 4294966768  ;;  %p3157_p5 = pmov %p3152_p1 }
 0x179   : > { %p3158_p7 = pmov %p3152_p1 }
 0x17a   : > { %2415 = dma.done.wait (%p3157_p5), [#allocation22], 16  }
 0x17b   : > { %2417 = vsyncadd (%p3158_p7), [#allocation22], 4294967280  ;;  %v2452_v0 = vmov 0.0   ;;  %vm2453_vm0 = vmmov 0   ;;  %v1972_v1 = vld [vmem:[#allocation8] sm:$0xff]   ;;  %v1973_v2 = vld [vmem:[#allocation8 + $0x8] sm:$0xff]   ;;  %v722_v23 = vlaneseq }
 0x17c   : > { %1718 = vmatprep.subr.bf16.mxu0 %v2452_v0  ;;  %1722 = vmatprep.mubr.msk.bf16.mxu0 %vm2453_vm0, %v2452_v0  ;;  %v2951_v3 = vld [vmem:[%s503_s4] sm:$0xff]  ;;  %vm622_vm1 = vcmask 261120   ;;  %s2454_s12 = smov 120   ;;  %s2455_s0 = smov 96   ;;  %vm673_vm2 = vcmask 64512   ;;  %vm745_vm4 = vcmask 1043456  }
 0x17d   : > { %1726 = vmatprep.subr.bf16.mxu1 %v2452_v0  ;;  %1728 = vmatprep.mubr.msk.bf16.mxu1 %vm2453_vm0, %v2452_v0  ;;  %v598_v4 = vpack.c.bf16 %v2951_v3, %v2951_v3  ;;  %v1650_v5 = vld [vmem:[#allocation9] ss:$0 sm:$0xff]  ;;  %s2456_s18 = smov 80   ;;  %s2457_s28 = smov 88   ;;  %v667_v24 = vld [vmem:[%s511_s16] sm:$0x1] }
 0x17e   : > { %1719 = vmatpush3.bf16.msra.mxu0 %v1972_v1  ;;  %s2458_s19 = smov 72   ;;  %s2459_s20 = smov 112   ;;  %v723_v25 = vshrl.u32 %v722_v23, 7  ;;  %vm668_vm3 = vcmp.eq.s32.totalorder %v667_v24, 0  ;;  %vm790_vm5 = vcmask 60416   ;;  %vm911_vm6 = vcmask 126016  }
 0x17f   : > { %1720 = vmatprep.subr.bf16.mxu0 %v2452_v0  ;;  %s2460_s2 = smov 104   ;;  %v669_v27 = vsel %vm668_vm3, -1e+10, %v2452_v0  ;;  %s2461_s6 = smov 56   ;;  %vm1032_vm7 = vcmask 191616   ;;  %vm1153_vm8 = vcmask 257216  }
 0x180   : > { %v724_v26 = vsub.s32 0, %v723_v25  ;;  %s2462_s30 = smov 64   ;;  %s2463_s4 = smov 40   ;;  %vm1361_vm9 = vcmask 523264  }
 0x181   : > { %s2464_s26 = smov 48   ;;  %s2465_s25 = smov 8  }
 0x182   : > { %1721 = vmatpush3.bf16.msra.mxu0 %v1973_v2  ;;  %v725_v28 = vrot.slane %v669_v27, %v724_v26  ;;  %s2466_s16 = smov 16   ;;  %p3160_p6 = scmp.ne.s32.totalorder %s3138_s29, 0 }
 0x183   : > { %1732 = vmatprep.subr.bf16.mxu0 %v2452_v0 }
 0x185   : > { %1723 = vmatmul.mubr.msk.bf16.vlgmr.msra.gmra.mrb[0].mxu0 %vm622_vm1, %v598_v4 }
 0x186   : > { %1734 = vmatprep.mubr.msk.bf16.mxu0 %vm2453_vm0, %v2452_v0 }
 0x258   : > { %v660_v6 = vpop.f32.mrb[0].mxu0 }
 0x259   : > { %v661_v7 = vadd.f32 %v1650_v5, %v660_v6  ;;  %v1724_v8 = vpop.f32.mrb[1].mxu0 }
 0x25a   : > { %v663_v9 = vpop.f32.mrb[2].mxu0 }
 0x25b   : > { %v2960_v10 = vpack.c.bf16 %v661_v7, %v661_v7  ;;  %v1725_v11 = vpop.f32.mrb[3].mxu0 }
 0x25d   : > { %792 = vrot.lane.b32.xlu1 %v2960_v10, %s2454_s12  ;;  %671 = vrot.lane.b32.xlu0 %v2960_v10, %s2455_s0  ;;  %s2467_s12 = smov 24   ;;  %s1682_s0 = sshll.u32 %s2555_s27, 7 }
 0x25e   : > { %s2468_s27 = smov [#allocation23]  }
 0x261   : > { %915 = vrot.lane.b32.xlu1 %v2960_v10, %s2456_s18  ;;  %794 = vrot.lane.b32.xlu0 %v2960_v10, %s2457_s28  ;;  %s595_s18 = scalar_lea.vmem [#allocation23], %s1638_s1  ;;  %s2346_s1 = sshll.u32 %s2468_s27, 4  ;;  %s2347_s1 = int_to_ptr.vmem [resolvable:$false] %s2346_s1 }
 0x262   : > { %s1436_s28 = sshll.u32 %s595_s18, 4  ;;  %s3048_s28 = int_to_ptr.vmem [resolvable:$true] %s1436_s28 }
 0x263   : > { %p2349_p9 = scmp.lt.s32.totalorder %s3048_s28, %s2347_s1 }
 0x265   : > { %1036 = vrot.lane.b32.xlu1 %v2960_v10, %s2458_s19  ;;  %913 = vrot.lane.b32.xlu0 %v2960_v10, %s2459_s20 }
 0x269   : > { %1034 = vrot.lane.b32.xlu0 %v2960_v10, %s2460_s2  ;;  %s3159_s2 = sld [smem:[#allocation41_spill]] }
 0x2cf   : > { %v672_v12 = vpop.permute.xlu0 %671  ;;  %v793_v15 = vpop.permute.xlu1 %792 }
 0x2d0   : > { %v678_v13 = vsel %vm673_vm2, %v672_v12, 0 }
 0x2d1   : > { %1727 = vmatpush3.bf16.xpose.msra.mxu1 %v678_v13 }
 0x2d2   : > { %1738 = vmatprep.subr.bf16.mxu1 %v2452_v0 }
 0x2d3   : > { %v795_v14 = vpop.permute.xlu0 %794  ;;  %v916_v17 = vpop.permute.xlu1 %915 }
 0x2d4   : > { %v800_v16 = vsel %vm673_vm2, %v795_v14, 0  ;;  %v921_v18 = vsel %vm673_vm2, %v916_v17, 0 }
 0x2d7   : > { %v1037_v19 = vpop.permute.xlu1 %1036  ;;  %v914_v20 = vpop.permute.xlu0 %913 }
 0x2d8   : > { %1729 = vmatmul.mubr.msk.bf16.vlgmr.msra.gmra.mrb[0].mxu1 %vm673_vm2, %v2960_v10  ;;  %v1042_v21 = vsel %vm673_vm2, %v1037_v19, 0 }
 0x2d9   : > { %1739 = vmatpush3.bf16.xpose.msra.mxu1 %v800_v16  ;;  %1740 = vmatprep.mubr.msk.bf16.mxu1 %vm2453_vm0, %v2452_v0 }
 0x2da   : > { %1750 = vmatprep.subr.bf16.mxu1 %v2452_v0 }
 0x2db   : > { %v1035_v22 = vpop.permute.xlu0 %1034 }
 0x2e0   : > { %1741 = vmatmul.mubr.msk.bf16.vlgmr.msra.gmra.mrb[4].mxu1 %vm673_vm2, %v793_v15 }
 0x2e1   : > { %1751 = vmatpush3.bf16.xpose.msra.mxu1 %v921_v18  ;;  %1752 = vmatprep.mubr.msk.bf16.mxu1 %vm2453_vm0, %v2452_v0 }
 0x2e2   : > { %1762 = vmatprep.subr.bf16.mxu1 %v2452_v0 }
 0x2e8   : > { %1753 = vmatmul.mubr.msk.bf16.vlgmr.msra.gmra.mrb[8].mxu1 %vm673_vm2, %v914_v20 }
 0x2e9   : > { %1763 = vmatpush3.bf16.xpose.msra.mxu1 %v1042_v21  ;;  %1764 = vmatprep.mubr.msk.bf16.mxu1 %vm2453_vm0, %v2452_v0 }
 0x2ea   : > { %1774 = vmatprep.subr.bf16.mxu1 %v2452_v0 }
 0x2f0   : > { %1765 = vmatmul.mubr.msk.bf16.vlgmr.msra.gmra.mrb[12].mxu1 %vm673_vm2, %v1035_v22 }
 0x2f1   : > { %1778 = vmatprep.mubr.msk.bf16.mxu1 %vm2453_vm0, %v2452_v0 }
 0x3ab   : > { %v714_v29 = vpop.f32.mrb[0].mxu1 }
 0x3ac   : > { %v720_v30 = vmul.f32 0.35355338, %v714_v29  ;;  %v1730_v31 = vpop.f32.mrb[1].mxu1 }
 0x3ad   : > { %v717_v32 = vpop.f32.mrb[2].mxu1 }
 0x3ae   : > { %v1731_v33 = vpop.f32.mrb[3].mxu1  ;;  %v727_v34 = vadd.f32 %v725_v28, %v720_v30 }
 0x3b0   : > { %v728_v35 = vsel %vm673_vm2, %v727_v34, -inf }
 0x3b1   : > { %729 = vmax.xlane.f32.xlu1 %v728_v35 }
 0x3b3   : > { %v836_v36 = vpop.f32.mrb[4].mxu1 }
 0x3b4   : > { %v842_v37 = vmul.f32 0.35355338, %v836_v36  ;;  %v1742_v38 = vpop.f32.mrb[5].mxu1 }
 0x3b5   : > { %v839_v39 = vpop.f32.mrb[6].mxu1 }
 0x3b6   : > { %v1743_v40 = vpop.f32.mrb[7].mxu1  ;;  %v843_v41 = vadd.f32 %v842_v37, %v725_v28 }
 0x3b8   : > { %v844_v42 = vsel %vm673_vm2, %v843_v41, -inf }
 0x3b9   : > { %845 = vmax.xlane.f32.xlu0 %v844_v42 }
 0x3bb   : > { %v957_v43 = vpop.f32.mrb[8].mxu1 }
 0x3bc   : > { %v963_v44 = vmul.f32 0.35355338, %v957_v43  ;;  %v1754_v45 = vpop.f32.mrb[9].mxu1 }
 0x3bd   : > { %v960_v46 = vpop.f32.mrb[10].mxu1 }
 0x3be   : > { %v1755_v47 = vpop.f32.mrb[11].mxu1  ;;  %v964_v48 = vadd.f32 %v963_v44, %v725_v28 }
 0x3c0   : > { %v965_v49 = vsel %vm673_vm2, %v964_v48, -inf }
 0x3c1   : > { %966 = vmax.xlane.f32.xlu0 %v965_v49  ;;  %v1974_v49 = vld [vmem:[#allocation11] sm:$0xff]  }
 0x3c2   : > { %1775 = vmatpush3.bf16.msra.mxu1 %v1974_v49 }
 0x3c3   : > { %v1078_v50 = vpop.f32.mrb[12].mxu1  ;;  %1776 = vmatprep.subr.bf16.mxu1 %v2452_v0 }
 0x3c4   : > { %v1084_v51 = vmul.f32 0.35355338, %v1078_v50  ;;  %v1766_v52 = vpop.f32.mrb[13].mxu1  ;;  %v1975_v50 = vld [vmem:[#allocation11 + $0x8] sm:$0xff]  }
 0x3c5   : > { %v1081_v53 = vpop.f32.mrb[14].mxu1 }
 0x3c6   : > { %v1767_v54 = vpop.f32.mrb[15].mxu1  ;;  %v1085_v55 = vadd.f32 %v1084_v51, %v725_v28  ;;  %1777 = vmatpush3.bf16.msra.mxu1 %v1975_v50 }
 0x3c7   : > { %1790 = vmatprep.subr.bf16.mxu1 %v2452_v0 }
 0x3c8   : > { %v1086_v56 = vsel %vm673_vm2, %v1085_v55, -inf }
 0x3c9   : > { %1087 = vmax.xlane.f32.xlu1 %v1086_v56 }
 0x43e   : > { %v730_v57 = vpop.xlane.xlu1 %729 }
 0x43f   : > { %v731_v58 = vsub.f32 %v727_v34, %v730_v57 }
 0x441   : > { %v732_v59 = vmul.f32 1.442695, %v731_v58 }
 0x443   : > { %1982 = vpow2.f32 %v732_v59 }
 0x446   : > { %v846_v60 = vpop.xlane.xlu0 %845 }
 0x447   : > { %v847_v61 = vsub.f32 %v843_v41, %v846_v60 }
 0x449   : > { %v848_v62 = vmul.f32 1.442695, %v847_v61 }
 0x44b   : > { %1984 = vpow2.f32 %v848_v62 }
 0x44d   : > { %v1983_v63 = vpop.eup %1982 }
 0x44e   : > { %v967_v1 = vpop.xlane.xlu0 %966  ;;  %v734_v2 = vsel %vm673_vm2, %v1983_v63, 0.0 }
 0x44f   : > { %v968_v4 = vsub.f32 %v964_v48, %v967_v1  ;;  %735 = vadd.xlane.f32.xlu0 %v734_v2  ;;  %v1665_v2 = vld [vmem:[#allocation12] ss:$0 sm:$0xff] }
 0x451   : > { %v969_v5 = vmul.f32 1.442695, %v968_v4 }
 0x453   : > { %1986 = vpow2.f32 %v969_v5 }
 0x455   : > { %v1985_v6 = vpop.eup %1984 }
 0x456   : > { %v850_v7 = vsel %vm673_vm2, %v1985_v6, 0.0  ;;  %v1088_v11 = vpop.xlane.xlu1 %1087 }
 0x457   : > { %851 = vadd.xlane.f32.xlu1 %v850_v7  ;;  %v1089_v12 = vsub.f32 %v1085_v55, %v1088_v11 }
 0x459   : > { %v1090_v13 = vmul.f32 1.442695, %v1089_v12 }
 0x45b   : > { %1988 = vpow2.f32 %v1090_v13 }
 0x45d   : > { %v1987_v8 = vpop.eup %1986 }
 0x45e   : > { %v971_v9 = vsel %vm673_vm2, %v1987_v8, 0.0 }
 0x45f   : > { %972 = vadd.xlane.f32.xlu0 %v971_v9 }
 0x465   : > { %v1989_v14 = vpop.eup %1988 }
 0x466   : > { %v1092_v15 = vsel %vm673_vm2, %v1989_v14, 0.0 }
 0x468   : > { %856 = vrot.lane.b32.xlu1 %v2960_v10, %s2461_s6  ;;  %s3046_s6 = scalar_lea.hbm %s3159_s2, %s1682_s0 }
 0x475   : > { %740 = vrot.lane.b32.xlu0 %v2960_v10, %s2462_s30  ;;  %s1423_s30 = scalar_lea.sflag [#allocation5], %s2905_s3 }
 0x479   : > { %1098 = vrot.lane.b32.xlu0 %v2960_v10, %s2463_s4  ;;  %s2342_s4 = scalar_lea.vmem %s3048_s28, 128 }
 0x47a   : > { %p2343_p0 = scmp.ne.s32.totalorder %s3048_s28, %s2342_s4 }
 0x47c   : > { %p2344_p11 = pnand %p2343_p0, %p3160_p6 }
 0x47e   : > { %p2345_p8 = pneg %p2344_p11 }
 0x48c   : > { %1093 = vadd.xlane.f32.xlu1 %v1092_v15 }
 0x49d   : > { %977 = vrot.lane.b32.xlu1 %v2960_v10, %s2464_s26  ;;  %s2348_s26 = scalar_lea.vmem %s2347_s1, 256 }
 0x49e   : > { %p2350_p12 = scmp.lt.s32.totalorder %s2348_s26, %s2342_s4 }
 0x4a0   : > { %p2351_p13 = por %p2350_p12, %p2349_p9 }
 0x4a2   : > { %p2352_p1 = pnand %p2351_p13, %p2345_p8 }
 0x4dc   : > { %v736_v16 = vpop.xlane.xlu0 %735 }
 0x4dd   : > { %1990 = vrcp.f32 %v736_v16 }
 0x4e4   : > { %v852_v17 = vpop.xlane.xlu1 %851 }
 0x4e5   : > { %1992 = vrcp.f32 %v852_v17  ;;  %v1976_v17 = vld [vmem:[#allocation17] sm:$0xff]  }
 0x4e7   : > { %v1991_v18 = vpop.eup %1990 }
 0x4e8   : > { %v738_v20 = vmul.f32 %v1991_v18, %v1983_v63  ;;  %v857_v23 = vpop.permute.xlu1 %856  ;;  %v1977_v18 = vld [vmem:[#allocation17 + $0x8] sm:$0xff]  }
 0x4e9   : > { %v862_v26 = vsel %vm745_vm4, %v857_v23, 0 }
 0x4ea   : > { %v739_v24 = vpack.c.bf16 %v738_v20, %v738_v20  ;;  %v1979_v20 = vld [vmem:[#allocation20 + $0x8] sm:$0xff]  }
 0x4ec   : > { %v973_v19 = vpop.xlane.xlu0 %972 }
 0x4ed   : > { %1994 = vrcp.f32 %v973_v19  ;;  %v1978_v19 = vld [vmem:[#allocation20] sm:$0xff]  }
 0x4ef   : > { %v1993_v25 = vpop.eup %1992 }
 0x4f0   : > { %v741_v21 = vpop.permute.xlu0 %740  ;;  %v854_v10 = vmul.f32 %v1993_v25, %v1985_v6 }
 0x4f1   : > { %v747_v22 = vsel %vm745_vm4, %v741_v21, 0 }
 0x4f2   : > { %1733 = vmatpush3.bf16.msra.mxu0 %v747_v22  ;;  %v855_v27 = vpack.c.bf16 %v854_v10, %v854_v10 }
 0x4f3   : > { %1744 = vmatprep.subr.bf16.mxu0 %v2452_v0 }
 0x4f4   : > { %v1099_v33 = vpop.permute.xlu0 %1098 }
 0x4f5   : > { %1735 = vmatmul.mubr.msk.bf16.vlgmr.msra.gmra.mrb[4].mxu0 %vm673_vm2, %v739_v24  ;;  %v1104_v35 = vsel %vm745_vm4, %v1099_v33, 0  ;;  %v1669_v24 = vld [vmem:[#allocation14] ss:$0 sm:$0xff] }
 0x4f6   : > { %1745 = vmatpush3.bf16.msra.mxu0 %v862_v26  ;;  %1746 = vmatprep.mubr.msk.bf16.mxu0 %vm2453_vm0, %v2452_v0  ;;  %v1670_v26 = vld [vmem:[#allocation15] ss:$0 sm:$0xff] }
 0x4f7   : > { %1756 = vmatprep.subr.bf16.mxu0 %v2452_v0  ;;  %v1995_v28 = vpop.eup %1994 }
 0x4f8   : > { %v975_v30 = vmul.f32 %v1995_v28, %v1987_v8 }
 0x4fa   : > { %v976_v34 = vpack.c.bf16 %v975_v30, %v975_v30  ;;  %v1981_v30 = vld [vmem:[#allocation20 + $0x18] sm:$0xff]  }
 0x4fd   : > { %1747 = vmatmul.mubr.msk.bf16.vlgmr.msra.gmra.mrb[8].mxu0 %vm673_vm2, %v855_v27 }
 0x4fe   : > { %1758 = vmatprep.mubr.msk.bf16.mxu0 %vm2453_vm0, %v2452_v0 }
 0x519   : > { %v1094_v29 = vpop.xlane.xlu1 %1093 }
 0x51a   : > { %1996 = vrcp.f32 %v1094_v29  ;;  %v1980_v29 = vld [vmem:[#allocation20 + $0x10] sm:$0xff]  }
 0x51d   : > { %v978_v31 = vpop.permute.xlu1 %977 }
 0x51e   : > { %v983_v32 = vsel %vm745_vm4, %v978_v31, 0  ;;  %v1671_v31 = vld [vmem:[#allocation18] ss:$0 sm:$0xff] }
 0x51f   : > { %1757 = vmatpush3.bf16.msra.mxu0 %v983_v32 }
 0x520   : > { %1768 = vmatprep.subr.bf16.mxu0 %v2452_v0 }
 0x522   : > { %1759 = vmatmul.mubr.msk.bf16.vlgmr.msra.gmra.mrb[12].mxu0 %vm673_vm2, %v976_v34 }
 0x523   : > { %1769 = vmatpush3.bf16.msra.mxu0 %v1104_v35  ;;  %1770 = vmatprep.mubr.msk.bf16.mxu0 %vm2453_vm0, %v2452_v0 }
 0x524   : > { %v1997_v36 = vpop.eup %1996  ;;  %1782 = vmatprep.subr.bf16.mxu0 %v2452_v0 }
 0x525   : > { %v1096_v37 = vmul.f32 %v1997_v36, %v1989_v14 }
 0x527   : > { %v1097_v38 = vpack.c.bf16 %v1096_v37, %v1096_v37 }
 0x52a   : > { %1771 = vmatmul.mubr.msk.bf16.vlgmr.msra.gmra.mrb[16].mxu0 %vm673_vm2, %v1097_v38 }
 0x52b   : > { %1786 = vmatprep.mubr.msk.bf16.mxu0 %vm2453_vm0, %v2452_v0  ;;  %1783 = vmatpush3.bf16.msra.mxu0 %v1976_v17 }
 0x52c   : > { %1784 = vmatprep.subr.bf16.mxu0 %v2452_v0 }
 0x52f   : > { %1785 = vmatpush3.bf16.msra.mxu0 %v1977_v18 }
 0x5c8   : > { %v783_v39 = vpop.f32.mrb[4].mxu0 }
 0x5c9   : > { %v789_v40 = vpack.c.bf16 %v783_v39, %v783_v39  ;;  %v1736_v41 = vpop.f32.mrb[5].mxu0  ;;  %v1675_v39 = vld [vmem:[#allocation21] ss:$0 sm:$0xff] }
 0x5ca   : > { %v786_v42 = vpop.f32.mrb[6].mxu0 }
 0x5cb   : > { %791 = vst.msk [vmem:[#allocation2] sm:$0xf] %vm790_vm5, %v789_v40  ;;  %v1737_v43 = vpop.f32.mrb[7].mxu0 }
 0x5d0   : > { %v898_v44 = vpop.f32.mrb[8].mxu0 }
 0x5d1   : > { %v1685_v45 = vpack.c.bf16 %v898_v44, %v898_v44  ;;  %v1748_v46 = vpop.f32.mrb[9].mxu0 }
 0x5d2   : > { %v901_v47 = vpop.f32.mrb[10].mxu0 }
 0x5d3   : > { %908 = vrot.lane.b32.xlu1 %v1685_v45, %s2465_s25  ;;  %v1749_v48 = vpop.f32.mrb[11].mxu0 }
 0x5f5   : > { %v1019_v51 = vpop.f32.mrb[12].mxu0 }
 0x5f6   : > { %v1686_v52 = vpack.c.bf16 %v1019_v51, %v1019_v51  ;;  %v1760_v53 = vpop.f32.mrb[13].mxu0 }
 0x5f7   : > { %v1022_v54 = vpop.f32.mrb[14].mxu0 }
 0x5f8   : > { %1029 = vrot.lane.b32.xlu0 %v1686_v52, %s2466_s16  ;;  %v1761_v55 = vpop.f32.mrb[15].mxu0 }
 0x5fd   : > { %v1140_v56 = vpop.f32.mrb[16].mxu0 }
 0x5fe   : > { %v1687_v57 = vpack.c.bf16 %v1140_v56, %v1140_v56  ;;  %v1772_v58 = vpop.f32.mrb[17].mxu0 }
 0x5ff   : > { %v1143_v59 = vpop.f32.mrb[18].mxu0 }
 0x600   : > { %1150 = vrot.lane.b32.xlu1 %v1687_v57, %s2467_s12  ;;  %v1773_v60 = vpop.f32.mrb[19].mxu0 }
 0x645   : > { %v909_v61 = vpop.permute.xlu1 %908 }
 0x646   : > { %912 = vst.msk [vmem:[#allocation2] sm:$0xf] %vm911_vm6, %v909_v61 }
 0x66a   : > { %v1030_v62 = vpop.permute.xlu0 %1029 }
 0x66b   : > { %1033 = vst.msk [vmem:[#allocation2] sm:$0xf] %vm1032_vm7, %v1030_v62 }
 0x672   : > { %v1151_v63 = vpop.permute.xlu1 %1150 }
 0x673   : > { %1154 = vst.msk [vmem:[#allocation2] sm:$0xf] %vm1153_vm8, %v1151_v63 }
 0x67a   : > { %v1155_v1 = vld [vmem:[#allocation2] sm:$0xf] }
 0x67b   : > { %1779 = vmatmul.mubr.msk.bf16.vlgmr.msra.gmra.mrb[16].mxu1 %vm622_vm1, %v1155_v1 }
 0x67c   : > { %1798 = vmatprep.mubr.msk.bf16.mxu1 %vm2453_vm0, %v2452_v0  ;;  %1791 = vmatpush3.bf16.msra.mxu1 %v1978_v19 }
 0x67d   : > { %1792 = vmatprep.subr.bf16.mxu1 %v2452_v0 }
 0x680   : > { %1793 = vmatpush3.bf16.msra.mxu1 %v1979_v20 }
 0x681   : > { %1794 = vmatprep.subr.bf16.mxu1 %v2452_v0 }
 0x684   : > { %1795 = vmatpush3.bf16.msra.mxu1 %v1980_v29 }
 0x685   : > { %1796 = vmatprep.subr.bf16.mxu1 %v2452_v0 }
 0x688   : > { %1797 = vmatpush3.bf16.msra.mxu1 %v1981_v30 }
 0x74e   : > { %v1216_v4 = vpop.f32.mrb[16].mxu1 }
 0x74f   : > { %v1217_v5 = vadd.f32 %v1665_v2, %v1216_v4  ;;  %v1780_v6 = vpop.f32.mrb[17].mxu1 }
 0x750   : > { %v1219_v7 = vpop.f32.mrb[18].mxu1 }
 0x751   : > { %v1781_v8 = vpop.f32.mrb[19].mxu1  ;;  %v1224_v9 = vadd.f32 %v1217_v5, %v2951_v3 }
 0x753   : > { %v1225_v11 = vsel %vm622_vm1, %v1224_v9, 0.0 }
 0x754   : > { %1226 = vadd.xlane.f32.xlu0 %v1225_v11 }
 0x7e1   : > { %v1227_v12 = vpop.xlane.xlu0 %1226 }
 0x7e2   : > { %v1229_v13 = vmul.f32 0.03125, %v1227_v12 }
 0x7e4   : > { %v1230_v14 = vsub.f32 %v1224_v9, %v1229_v13 }
 0x7e6   : > { %v1231_v15 = vmul.f32 %v1230_v14, %v1230_v14 }
 0x7e8   : > { %v1232_v16 = vsel %vm622_vm1, %v1231_v15, 0.0 }
 0x7e9   : > { %1233 = vadd.xlane.f32.xlu1 %v1232_v16 }
 0x876   : > { %v1234_v3 = vpop.xlane.xlu1 %1233 }
 0x877   : > { %v1235_v21 = vmul.f32 0.03125, %v1234_v3 }
 0x879   : > { %v1236_v22 = vadd.f32 1e-05, %v1235_v21 }
 0x87b   : > { %1998 = vrsqrt.f32 %v1236_v22 }
 0x885   : > { %v1999_v23 = vpop.eup %1998 }
 0x886   : > { %v1238_v25 = vmul.f32 %v1999_v23, %v1230_v14 }
 0x888   : > { %v1245_v10 = vmul.f32 %v1669_v24, %v1238_v25 }
 0x88a   : > { %v1252_v27 = vadd.f32 %v1670_v26, %v1245_v10 }
 0x88c   : > { %v1253_v28 = vpack.c.bf16 %v1252_v27, %v1252_v27 }
 0x88e   : > { %1787 = vmatmul.mubr.msk.bf16.vlgmr.msra.gmra.mrb[20].mxu0 %vm622_vm1, %v1253_v28 }
 0x961   : > { %v1314_v32 = vpop.f32.mrb[20].mxu0 }
 0x962   : > { %v1315_v33 = vadd.f32 %v1671_v31, %v1314_v32  ;;  %v1788_v34 = vpop.f32.mrb[21].mxu0 }
 0x963   : > { %v1317_v35 = vpop.f32.mrb[22].mxu0 }
 0x964   : > { %v1320_v36 = vmax.f32 %v1315_v33, 0.0  ;;  %v1789_v37 = vpop.f32.mrb[23].mxu0 }
 0x966   : > { %v1321_v38 = vpack.c.bf16 %v1320_v36, %v1320_v36 }
 0x968   : > { %1799 = vmatmul.mubr.msk.bf16.vlgmr.msra.gmra.mrb[20].mxu1 %vm1361_vm9, %v1321_v38 }
 0xa3b   : > { %v1399_v40 = vpop.f32.mrb[20].mxu1 }
 0xa3c   : > { %v1400_v41 = vadd.f32 %v1675_v39, %v1399_v40  ;;  %v1800_v42 = vpop.f32.mrb[21].mxu1 }
 0xa3d   : > { %v1402_v43 = vpop.f32.mrb[22].mxu1 }
 0xa3e   : > { %v1801_v44 = vpop.f32.mrb[23].mxu1  ;;  %v1405_v0 = vadd.f32 %v1400_v41, %v1252_v27 }
 0xa40   : > { %v1406_v45 = vsel %vm622_vm1, %v1405_v0, 0.0 }
 0xa41   : > { %1407 = vadd.xlane.f32.xlu0 %v1406_v45 }
 0xace   : > { %v1408_v46 = vpop.xlane.xlu0 %1407 }
 0xacf   : > { %v1409_v47 = vmul.f32 0.03125, %v1408_v46 }
 0xad1   : > { %v1410_v48 = vsub.f32 %v1405_v0, %v1409_v47 }
 0xad3   : > { %v1411_v49 = vmul.f32 %v1410_v48, %v1410_v48 }
 0xad5   : > { %v1412_v50 = vsel %vm622_vm1, %v1411_v49, 0.0 }
 0xad6   : > { %1413 = vadd.xlane.f32.xlu0 %v1412_v50 }
 0xb63   : > { %v1414_v51 = vpop.xlane.xlu0 %1413 }
 0xb64   : > { %v1415_v52 = vmul.f32 0.03125, %v1414_v51 }
 0xb66   : > { %v1416_v53 = vadd.f32 1e-05, %v1415_v52 }
 0xb68   : > { %2000 = vrsqrt.f32 %v1416_v53 }
 0xb72   : > { %v2001_v54 = vpop.eup %2000 }
 0xb73   : > { %v1418_v55 = vmul.f32 %v2001_v54, %v1410_v48 }
 0xb75   : > { %v1419_v56 = vmul.f32 %v1669_v24, %v1418_v55 }
 0xb77   : > { %v1420_v57 = vadd.f32 %v1670_v26, %v1419_v56 }
 0xb79   : > { %1421 = vst.msk [vmem:[%s595_s18] sm:$0xff] %vm622_vm1, %v1420_v57 }
 0xb7a   : > { %2355 = shalt.err (!%p2352_p1)
}
 0xb7b   : > { %s2356_s3 = scalar_lea.hbm %s3046_s6, 128  ;;  %s2360_s12 = scalar_lea.hbm %s3159_s2, 256 }
 0xb7c   : > { %p2357_p3 = scmp.ne.s32.totalorder %s3046_s6, %s2356_s3  ;;  %p2361_p10 = scmp.lt.u32.totalorder %s3046_s6, %s3159_s2 }
 0xb7d   : > { %p2362_p5 = scmp.lt.u32.totalorder %s2360_s12, %s2356_s3  ;;  %p2364_p0 = scmp.lt.u32.totalorder %s2356_s3, %s3046_s6 }
 0xb7e   : > { %p2358_p2 = pnand %p2357_p3, %p3160_p6 }
 0xb7f   : > { %p2363_p7 = por %p2362_p5, %p2361_p10 }
 0xb80   : > { %p2359_p4 = pneg %p2358_p2 }
 0xb81   : > { %p2365_p11 = por %p2364_p0, %p2363_p7 }
 0xb83   : > { %p2366_p8 = pnand %p2365_p11, %p2359_p4 }
 0xb85   : > { %2369 = shalt.err (!%p2366_p8)
}
 0xb86   : > { %1846 = dma.vmem_to_hbm [thread:$0]  (%p3160_p6), %s3048_s28, 128, %s3046_s6, %s1423_s30  }
 0xb87 PF: > { %s1448_s19 = sand.u32 1, %s2424_s21   ;;  %p3161_p9 = scmp.ne.s32.totalorder %s3139_s17, 0 }
 0xb88   : > { %p3162_p12 = scmp.ge.s32.totalorder %s2436_s24, 2  ;;  %s1449_s20 = scalar_lea.sflag [#allocation5], %s1448_s19 }
 0xb8a   : > { %p1887_p13 = pnand %p3162_p12, %p3161_p9 }
 0xb8c   : > { %2419 = dma.done.wait (!%p1887_p13), %s1449_s20, 128  }
 0xb8d   : > { %2421 = vsyncadd (!%p1887_p13), %s1449_s20, 4294967168  ;;  %p33_p1 = scmp.ge.s32.totalorder %s2796_s13, 4   ;;  %s3163_s21 = smov %s2428_s22 }
 0xb8e   : > { %s3164_s22 = smov %s2432_s23  ;;  %s3165_s23 = smov %s2807_s15 }
 0xb8f   : > { %s3166_s24 = smov %s2796_s13  ;;  %35 = sbr.rel (!%p33_p1) target bundleno = 21 (0x15), region = 166 }
 0xb96   :  { %1454 = vsyncpa [#allocation4], 1 }
 0xb97   :  { %1456 = vsyncpa [#allocation4 + $0x1], 1 }
 0xb98   :  { %1457 = vsyncpa [#allocation7], 1 }
 0xb99   :  { %1459 = vsyncpa [#allocation7 + $0x1], 1 }
 0xb9a   :  { %1460 = vsyncpa [#allocation10], 1 }
 0xb9b   :  { %1461 = vsyncpa [#allocation13], 1 }
 0xb9c   :  { %1462 = vsyncpa [#allocation16], 1 }
 0xb9d   :  { %1463 = vsyncpa [#allocation19], 1 }
 0xb9e   :  { %1464 = vsyncpa [#allocation22], 1 }
 0xb9f   :  { %1465 = vsyncpa [#allocation5], 1 }
 0xba0   :  { %1467 = vsyncpa [#allocation5 + $0x1], 1 }

// kernel: tpu_custom_call.1
= control target key start
LH: loop header
LB: loop body
LE: loop exit
PB: predicated region body
PF: predicated region fallthrough
CT: control target
= control target key end

     0   :  { %s3091_s0 = inlined_call_operand.hbm [shape: f32[2,8,32], index: 0, kind: input, shape index: {}]   ;;  %s3092_s1 = inlined_call_operand.hbm [shape: s32[2,1,8], index: 1, kind: input, shape index: {}]   ;;  %s3093_s2 = inlined_call_operand.hbm [shape: bf16[32,96], index: 2, kind: input, shape index: {}]   ;;  %s3094_s3 = inlined_call_operand.hbm [shape: f32[1,96], index: 3, kind: input, shape index: {}]   ;;  %s3095_s4 = inlined_call_operand.hbm [shape: bf16[32,32], index: 4, kind: input, shape index: {}]   ;;  %s3096_s5 = inlined_call_operand.hbm [shape: f32[1,32], index: 5, kind: input, shape index: {}]   ;;  %s3097_s6 = inlined_call_operand.hbm [shape: f32[1,32], index: 6, kind: input, shape index: {}]   ;;  %s3098_s7 = inlined_call_operand.hbm [shape: f32[1,32], index: 7, kind: input, shape index: {}]   ;;  %s3099_s8 = inlined_call_operand.hbm [shape: bf16[32,64], index: 8, kind: input, shape index: {}]   ;;  %s3100_s9 = inlined_call_operand.hbm [shape: f32[1,64], index: 9, kind: input, shape index: {}]   ;;  %s3101_s10 = inlined_call_operand.hbm [shape: bf16[64,32], index: 10, kind: input, shape index: {}]   ;;  %s3102_s11 = inlined_call_operand.hbm [shape: f32[1,32], index: 11, kind: input, shape index: {}]   ;;  %s3103_s12 = inlined_call_operand.hbm [shape: f32[2,8,32], index: 12, kind: output, shape index: {}]  }
   0x1   :  { %3116 = sst [smem:[#allocation34_spill]] %s3091_s0 }
   0x2   :  { %3117 = sst [smem:[#allocation35_spill]] %s3092_s1 }
   0x3   :  { %3118 = sst [smem:[#allocation36_spill]] %s3093_s2 }
   0x4   :  { %3119 = sst [smem:[#allocation37_spill]] %s3094_s3 }
   0x5   :  { %3120 = sst [smem:[#allocation38_spill]] %s3095_s4 }
   0x6   :  { %3121 = sst [smem:[#allocation39_spill]] %s3096_s5 }
   0x7   :  { %3122 = sst [smem:[#allocation40_spill]] %s3097_s6 }
   0x8   :  { %3123 = sst [smem:[#allocation41_spill]] %s3103_s12 }
   0x9   :  { %17 = vsyncpa [#allocation4], 0 }
   0xa   :  { %19 = vsyncpa [#allocation4 + $0x1], 0 }
   0xb   :  { %20 = vsyncpa [#allocation7], 0 }
   0xc   :  { %22 = vsyncpa [#allocation7 + $0x1], 0 }
   0xd   :  { %23 = vsyncpa [#allocation10], 0 }
   0xe   :  { %24 = vsyncpa [#allocation13], 0 }
   0xf   :  { %25 = vsyncpa [#allocation16], 0 }
  0x10   :  { %26 = vsyncpa [#allocation19], 0 }
  0x11   :  { %27 = vsyncpa [#allocation22], 0 }
  0x12   :  { %28 = vsyncpa [#allocation5], 0 }
  0x13   :  { %30 = vsyncpa [#allocation5 + $0x1], 0  ;;  %s2534_s21 = smov 0   ;;  %s2536_s22 = smov 0  }
  0x14   :  { %s2538_s23 = smov 0   ;;  %s2540_s24 = smov 0  }
  0x15 LB: > { %s2438_s25 = smov [#allocation8]   ;;  %s2555_s27 = sadd.s32 4294967295, %s2436_s24   ;;  %s2436_s24 = sphi %s2540_s24, %s3166_s24   ;;  %s2432_s23 = sphi %s2538_s23, %s3165_s23   ;;  %s2428_s22 = sphi %s2536_s22, %s3164_s22   ;;  %s2424_s21 = sphi %s2534_s21, %s3163_s21  }
  0x16   : > { %s341_s26 = sshll.u32 %s2438_s25, 4  ;;  %p1622_p0 = scmp.ge.s32.totalorder %s2436_s24, 1  ;;  %s2560_s26 = int_to_ptr.vmem [resolvable:$true] %s341_s26 }
  0x17   : > { %p3110_p1 = scmp.eq.s32.totalorder %s2555_s27, 0  ;;  %p329_p2 = scmp.lt.s32.totalorder %s2436_s24, 3 }
  0x18   : > { %s2439_s29 = smov [#allocation9]   ;;  %s2440_s14 = smov [#allocation12]  }
  0x19   : > { %p2562_p3 = pnand %p1622_p0, %p329_p2  ;;  %s355_s30 = sshll.u32 %s2439_s29, 4  ;;  %s2575_s30 = int_to_ptr.vmem [resolvable:$true] %s355_s30 }
  0x1a   : > { %s379_s15 = sshll.u32 %s2440_s14, 4  ;;  %s3127_s2 = sld [smem:[#allocation36_spill]]  ;;  %s2577_s15 = int_to_ptr.vmem [resolvable:$true] %s379_s15 }
  0x1b   : > { %s3124_s28 = scalar_select %p2562_p3, 1, 0 }
  0x1c   : > { %p1848_p5 = pneg %p2562_p3 }
  0x1d   : > { %3125 = sst [smem:[#allocation33_spill]] %s3124_s28 }
  0x1e   : > { %p2571_p6 = pnand %p1848_p5, %p3110_p1 }
  0x20   : > { %s2002_s18 = scalar_lea.hbm %s3127_s2, 256  ;;  %p2587_p8 = pneg %p2571_p6 }
  0x21   : > { %p2003_p7 = scmp.ne.s32.totalorder %s3127_s2, %s2002_s18  ;;  %p2009_p11 = scmp.lt.u32.totalorder %s2002_s18, %s3127_s2 }
  0x23   : > { %p2005_p9 = pnand %p2587_p8, %p2003_p7 }
  0x25   : > { %p2006_p10 = pneg %p2005_p9 }
  0x27   : > { %p2011_p12 = pnand %p2009_p11, %p2006_p10 }
  0x29   : > { %2014 = shalt.err (!%p2011_p12)
}
  0x2a   : > { %s2015_s16 = scalar_lea.vmem %s2560_s26, 256  ;;  %p2023_p5 = scmp.lt.s32.totalorder %s2560_s26, %s2560_s26 }
  0x2b   : > { %p2016_p13 = scmp.ne.s32.totalorder %s2560_s26, %s2015_s16  ;;  %p2024_p4 = scmp.lt.s32.totalorder %s2015_s16, %s2015_s16 }
  0x2d   : > { %p2018_p0 = pnand %p2016_p13, %p2587_p8  ;;  %p2025_p7 = por %p2024_p4, %p2023_p5 }
  0x2f   : > { %p2019_p2 = pneg %p2018_p0 }
  0x31   : > { %p2026_p9 = pnand %p2025_p7, %p2019_p2 }
  0x33   : > { %2029 = shalt.err (!%p2026_p9)
}
  0x34   : > { %s3108_s17 = smov 64   ;;  %s3112_s18 = smov 4  }
  0x35   : > { %1851 = dma.hbm_to_vmem [thread:$0]  (!%p2571_p6), %s3127_s2, 256, %s2560_s26, [#allocation7], %s3108_s17, %s3108_s17, %s3112_s18  }
  0x36   : > { %s3129_s3 = sld [smem:[#allocation37_spill]] }
  0x3c   : > { %s2030_s16 = scalar_lea.hbm %s3129_s3, 16 }
  0x3d   : > { %p2031_p4 = scmp.ne.s32.totalorder %s3129_s3, %s2030_s16  ;;  %p2037_p12 = scmp.lt.u32.totalorder %s2030_s16, %s3129_s3 }
  0x3f   : > { %p2033_p10 = pnand %p2031_p4, %p2587_p8 }
  0x41   : > { %p2034_p11 = pneg %p2033_p10 }
  0x43   : > { %p2039_p13 = pnand %p2037_p12, %p2034_p11 }
  0x45   : > { %2042 = shalt.err (!%p2039_p13)
}
  0x46   : > { %s2043_s26 = scalar_lea.vmem %s2575_s30, 16  ;;  %s2050_s12 = scalar_lea.vmem %s2575_s30, 32 }
  0x47   : > { %p2044_p0 = scmp.ne.s32.totalorder %s2575_s30, %s2043_s26  ;;  %p2051_p7 = scmp.lt.s32.totalorder %s2575_s30, %s2575_s30 }
  0x48   : > { %p2052_p9 = scmp.lt.s32.totalorder %s2050_s12, %s2043_s26 }
  0x49   : > { %p2046_p2 = pnand %p2044_p0, %p2587_p8 }
  0x4a   : > { %p2053_p4 = por %p2052_p9, %p2051_p7 }
  0x4b   : > { %p2047_p5 = pneg %p2046_p2 }
  0x4d   : > { %p2054_p10 = pnand %p2053_p4, %p2047_p5 }
  0x4f   : > { %2057 = shalt.err (!%p2054_p10)
}
  0x50   : > { %1854 = dma.hbm_to_vmem [thread:$0]  (!%p2571_p6), %s3129_s3, 16, %s2575_s30, [#allocation10]  }
  0x51   : > { %s3130_s5 = sld [smem:[#allocation39_spill]] }
  0x57   : > { %s2058_s20 = scalar_lea.hbm %s3130_s5, 16 }
  0x58   : > { %p2059_p11 = scmp.ne.s32.totalorder %s3130_s5, %s2058_s20  ;;  %p2065_p0 = scmp.lt.u32.totalorder %s2058_s20, %s3130_s5 }
  0x5a   : > { %p2061_p12 = pnand %p2059_p11, %p2587_p8 }
  0x5c   : > { %p2062_p13 = pneg %p2061_p12 }
  0x5e   : > { %p2067_p2 = pnand %p2065_p0, %p2062_p13 }
  0x60   : > { %2070 = shalt.err (!%p2067_p2)
}
  0x61   : > { %s2071_s30 = scalar_lea.vmem %s2577_s15, 16  ;;  %s2078_s12 = scalar_lea.vmem %s2577_s15, 32 }
  0x62   : > { %p2072_p5 = scmp.ne.s32.totalorder %s2577_s15, %s2071_s30  ;;  %p2079_p4 = scmp.lt.s32.totalorder %s2577_s15, %s2577_s15 }
  0x63   : > { %p2080_p10 = scmp.lt.s32.totalorder %s2078_s12, %s2071_s30 }
  0x64   : > { %p2074_p7 = pnand %p2072_p5, %p2587_p8 }
  0x65   : > { %p2081_p11 = por %p2080_p10, %p2079_p4 }
  0x66   : > { %p2075_p9 = pneg %p2074_p7 }
  0x68   : > { %p2082_p12 = pnand %p2081_p11, %p2075_p9 }
  0x6a   : > { %2085 = shalt.err (!%p2082_p12)
}
  0x6b   : > { %1860 = dma.hbm_to_vmem [thread:$0]  (!%p2571_p6), %s3130_s5, 16, %s2577_s15, [#allocation13]  }
  0x6c   : > { %s2443_s28 = smov [#allocation15]   ;;  %s2444_s20 = smov [#allocation18]  }
  0x6d   : > { %s401_s19 = sshll.u32 %s2443_s28, 4  ;;  %s425_s29 = sshll.u32 %s2444_s20, 4  ;;  %s402_s19 = int_to_ptr.vmem [resolvable:$true] %s401_s19  ;;  %s426_s29 = int_to_ptr.vmem [resolvable:$true] %s425_s29 }
  0x6e   : > { %s2086_s26 = scalar_lea.hbm %s3098_s7, 16 }
  0x6f   : > { %p2087_p13 = scmp.ne.s32.totalorder %s3098_s7, %s2086_s26  ;;  %p2093_p5 = scmp.lt.u32.totalorder %s2086_s26, %s3098_s7 }
  0x71   : > { %p2089_p0 = pnand %p2087_p13, %p2587_p8 }
  0x73   : > { %p2090_p2 = pneg %p2089_p0 }
  0x75   : > { %p2095_p7 = pnand %p2093_p5, %p2090_p2 }
  0x77   : > { %2098 = shalt.err (!%p2095_p7)
}
  0x78   : > { %s2099_s15 = scalar_lea.vmem %s402_s19, 16  ;;  %s2106_s1 = scalar_lea.vmem %s402_s19, 32 }
  0x79   : > { %p2100_p9 = scmp.ne.s32.totalorder %s402_s19, %s2099_s15  ;;  %p2107_p11 = scmp.lt.s32.totalorder %s402_s19, %s402_s19 }
  0x7a   : > { %p2108_p12 = scmp.lt.s32.totalorder %s2106_s1, %s2099_s15 }
  0x7b   : > { %p2102_p4 = pnand %p2100_p9, %p2587_p8 }
  0x7c   : > { %p2109_p1 = por %p2108_p12, %p2107_p11 }
  0x7d   : > { %p2103_p10 = pneg %p2102_p4 }
  0x7f   : > { %p2110_p3 = pnand %p2109_p1, %p2103_p10 }
  0x81   : > { %2113 = shalt.err (!%p2110_p3)
}
  0x82   : > { %1866 = dma.hbm_to_vmem [thread:$0]  (!%p2571_p6), %s3098_s7, 16, %s402_s19, [#allocation16]  }
  0x83   : > { %s2114_s16 = scalar_lea.hbm %s3100_s9, 16 }
  0x84   : > { %p2115_p13 = scmp.ne.s32.totalorder %s3100_s9, %s2114_s16  ;;  %p2121_p3 = scmp.lt.u32.totalorder %s2114_s16, %s3100_s9 }
  0x86   : > { %p2117_p0 = pnand %p2115_p13, %p2587_p8 }
  0x88   : > { %p2118_p1 = pneg %p2117_p0 }
  0x8a   : > { %p2123_p2 = pnand %p2121_p3, %p2118_p1 }
  0x8c   : > { %2126 = shalt.err (!%p2123_p2)
}
  0x8d   : > { %s2127_s15 = scalar_lea.vmem %s426_s29, 16  ;;  %s2134_s19 = scalar_lea.vmem %s426_s29, 32 }
  0x8e   : > { %p2128_p5 = scmp.ne.s32.totalorder %s426_s29, %s2127_s15  ;;  %p2135_p4 = scmp.lt.s32.totalorder %s426_s29, %s426_s29 }
  0x8f   : > { %p2136_p10 = scmp.lt.s32.totalorder %s2134_s19, %s2127_s15 }
  0x90   : > { %p2130_p7 = pnand %p2128_p5, %p2587_p8 }
  0x91   : > { %p2137_p11 = por %p2136_p10, %p2135_p4 }
  0x92   : > { %p2131_p9 = pneg %p2130_p7 }
  0x94   : > { %p2138_p12 = pnand %p2137_p11, %p2131_p9 }
  0x96   : > { %2141 = shalt.err (!%p2138_p12)
}
  0x97   : > { %1872 = dma.hbm_to_vmem [thread:$0]  (!%p2571_p6), %s3100_s9, 16, %s426_s29, [#allocation19]  }
  0x98   : > { %s2445_s20 = smov [#allocation11]   ;;  %s2446_s14 = smov [#allocation14]  }
  0x99   : > { %s365_s17 = sshll.u32 %s2445_s20, 4  ;;  %s390_s16 = sshll.u32 %s2446_s14, 4  ;;  %s366_s17 = int_to_ptr.vmem [resolvable:$true] %s365_s17  ;;  %s391_s16 = int_to_ptr.vmem [resolvable:$true] %s390_s16 }
  0x9a   : > { %s3131_s4 = sld [smem:[#allocation38_spill]] }
  0xa0   : > { %s2142_s12 = scalar_lea.hbm %s3131_s4, 256 }
  0xa1   : > { %p2143_p13 = scmp.ne.s32.totalorder %s3131_s4, %s2142_s12  ;;  %p2149_p3 = scmp.lt.u32.totalorder %s2142_s12, %s3131_s4 }
  0xa3   : > { %p2145_p0 = pnand %p2143_p13, %p2587_p8 }
  0xa5   : > { %p2146_p1 = pneg %p2145_p0 }
  0xa7   : > { %p2151_p2 = pnand %p2149_p3, %p2146_p1 }
  0xa9   : > { %2154 = shalt.err (!%p2151_p2)
}
  0xaa   : > { %s2155_s29 = scalar_lea.vmem %s366_s17, 256  ;;  %p2163_p4 = scmp.lt.s32.totalorder %s366_s17, %s366_s17 }
  0xab   : > { %p2156_p5 = scmp.ne.s32.totalorder %s366_s17, %s2155_s29  ;;  %p2164_p10 = scmp.lt.s32.totalorder %s2155_s29, %s2155_s29 }
  0xad   : > { %p2158_p7 = pnand %p2156_p5, %p2587_p8  ;;  %p2165_p11 = por %p2164_p10, %p2163_p4 }
  0xaf   : > { %p2159_p9 = pneg %p2158_p7 }
  0xb1   : > { %p2166_p12 = pnand %p2165_p11, %p2159_p9 }
  0xb3   : > { %2169 = shalt.err (!%p2166_p12)
}
  0xb4   : > { %s3132_s28 = smov 64   ;;  %s3133_s6 = sld [smem:[#allocation40_spill]] }
  0xb5   : > { %1857 = dma.hbm_to_vmem [thread:$0]  (!%p2571_p6), %s3131_s4, 256, %s366_s17, [#allocation10], %s3132_s28, %s3132_s28, %s3112_s18  }
  0xba   : > { %s2170_s12 = scalar_lea.hbm %s3133_s6, 16 }
  0xbb   : > { %p2171_p13 = scmp.ne.s32.totalorder %s3133_s6, %s2170_s12  ;;  %p2177_p3 = scmp.lt.u32.totalorder %s2170_s12, %s3133_s6 }
  0xbd   : > { %p2173_p0 = pnand %p2171_p13, %p2587_p8 }
  0xbf   : > { %p2174_p1 = pneg %p2173_p0 }
  0xc1   : > { %p2179_p2 = pnand %p2177_p3, %p2174_p1 }
  0xc3   : > { %2182 = shalt.err (!%p2179_p2)
}
  0xc4   : > { %s2183_s29 = scalar_lea.vmem %s391_s16, 16  ;;  %s2190_s17 = scalar_lea.vmem %s391_s16, 32 }
  0xc5   : > { %p2184_p5 = scmp.ne.s32.totalorder %s391_s16, %s2183_s29  ;;  %p2191_p4 = scmp.lt.s32.totalorder %s391_s16, %s391_s16 }
  0xc6   : > { %p2192_p10 = scmp.lt.s32.totalorder %s2190_s17, %s2183_s29 }
  0xc7   : > { %p2186_p7 = pnand %p2184_p5, %p2587_p8 }
  0xc8   : > { %p2193_p11 = por %p2192_p10, %p2191_p4 }
  0xc9   : > { %p2187_p9 = pneg %p2186_p7 }
  0xcb   : > { %p2194_p12 = pnand %p2193_p11, %p2187_p9 }
  0xcd   : > { %2197 = shalt.err (!%p2194_p12)
}
  0xce   : > { %1863 = dma.hbm_to_vmem [thread:$0]  (!%p2571_p6), %s3133_s6, 16, %s391_s16, [#allocation13]  }
  0xcf   : > { %s2447_s26 = smov [#allocation17]   ;;  %s2448_s12 = smov [#allocation20]  }
  0xd0   : > { %s411_s30 = sshll.u32 %s2447_s26, 4  ;;  %s435_s0 = sshll.u32 %s2448_s12, 4  ;;  %s412_s30 = int_to_ptr.vmem [resolvable:$true] %s411_s30  ;;  %s436_s0 = int_to_ptr.vmem [resolvable:$true] %s435_s0 }
  0xd1   : > { %s2198_s1 = scalar_lea.hbm %s3099_s8, 256 }
  0xd2   : > { %p2199_p13 = scmp.ne.s32.totalorder %s3099_s8, %s2198_s1  ;;  %p2205_p3 = scmp.lt.u32.totalorder %s2198_s1, %s3099_s8 }
  0xd4   : > { %p2201_p0 = pnand %p2199_p13, %p2587_p8 }
  0xd6   : > { %p2202_p1 = pneg %p2201_p0 }
  0xd8   : > { %p2207_p2 = pnand %p2205_p3, %p2202_p1 }
  0xda   : > { %2210 = shalt.err (!%p2207_p2)
}
  0xdb   : > { %s2211_s16 = scalar_lea.vmem %s412_s30, 256  ;;  %p2219_p4 = scmp.lt.s32.totalorder %s412_s30, %s412_s30 }
  0xdc   : > { %p2212_p5 = scmp.ne.s32.totalorder %s412_s30, %s2211_s16  ;;  %p2220_p10 = scmp.lt.s32.totalorder %s2211_s16, %s2211_s16 }
  0xde   : > { %p2214_p7 = pnand %p2212_p5, %p2587_p8  ;;  %p2221_p11 = por %p2220_p10, %p2219_p4 }
  0xe0   : > { %p2215_p9 = pneg %p2214_p7 }
  0xe2   : > { %p2222_p12 = pnand %p2221_p11, %p2215_p9 }
  0xe4   : > { %2225 = shalt.err (!%p2222_p12)
}
  0xe5   : > { %s3134_s14 = smov 4   ;;  %s2226_s19 = scalar_lea.hbm %s3101_s10, 512 }
  0xe6   : > { %1869 = dma.hbm_to_vmem [thread:$0]  (!%p2571_p6), %s3099_s8, 256, %s412_s30, [#allocation16], %s3132_s28, %s3132_s28, %s3134_s14  }
  0xe7   : > { %p2227_p13 = scmp.ne.s32.totalorder %s3101_s10, %s2226_s19  ;;  %p2233_p3 = scmp.lt.u32.totalorder %s2226_s19, %s3101_s10 }
  0xe9   : > { %p2229_p0 = pnand %p2227_p13, %p2587_p8 }
  0xeb   : > { %p2230_p1 = pneg %p2229_p0 }
  0xed   : > { %p2235_p2 = pnand %p2233_p3, %p2230_p1 }
  0xef   : > { %2238 = shalt.err (!%p2235_p2)
}
  0xf0   : > { %s2239_s16 = scalar_lea.vmem %s436_s0, 512  ;;  %p2247_p4 = scmp.lt.s32.totalorder %s436_s0, %s436_s0 }
  0xf1   : > { %p2240_p5 = scmp.ne.s32.totalorder %s436_s0, %s2239_s16  ;;  %p2248_p10 = scmp.lt.s32.totalorder %s2239_s16, %s2239_s16 }
  0xf3   : > { %p2242_p7 = pnand %p2240_p5, %p2587_p8  ;;  %p2249_p11 = por %p2248_p10, %p2247_p4 }
  0xf5   : > { %p2243_p9 = pneg %p2242_p7 }
  0xf7   : > { %p2250_p12 = pnand %p2249_p11, %p2243_p9 }
  0xf9   : > { %2253 = shalt.err (!%p2250_p12)
}
  0xfa   : > { %1875 = dma.hbm_to_vmem [thread:$0]  (!%p2571_p6), %s3101_s10, 512, %s436_s0, [#allocation19], %s3132_s28, %s3132_s28, %s3134_s14  }
  0xfb   : > { %s2449_s26 = smov [#allocation21]   ;;  %s2254_s1 = scalar_lea.hbm %s3102_s11, 16 }
  0xfc   : > { %s449_s12 = sshll.u32 %s2449_s26, 4  ;;  %p2255_p13 = scmp.ne.s32.totalorder %s3102_s11, %s2254_s1  ;;  %s450_s12 = int_to_ptr.vmem [resolvable:$true] %s449_s12 }
  0xfd   : > { %p2261_p3 = scmp.lt.u32.totalorder %s2254_s1, %s3102_s11 }
  0xfe   : > { %p2257_p0 = pnand %p2255_p13, %p2587_p8 }
 0x100   : > { %p2258_p1 = pneg %p2257_p0 }
 0x102   : > { %p2263_p2 = pnand %p2261_p3, %p2258_p1 }
 0x104   : > { %2266 = shalt.err (!%p2263_p2)
}
 0x105   : > { %s2267_s28 = scalar_lea.vmem %s450_s12, 16  ;;  %s2274_s0 = scalar_lea.vmem %s450_s12, 32 }
 0x106   : > { %p2268_p5 = scmp.ne.s32.totalorder %s450_s12, %s2267_s28  ;;  %p2275_p4 = scmp.lt.s32.totalorder %s450_s12, %s450_s12 }
 0x107   : > { %p2276_p10 = scmp.lt.s32.totalorder %s2274_s0, %s2267_s28 }
 0x108   : > { %p2270_p7 = pnand %p2268_p5, %p2587_p8 }
 0x109   : > { %p2277_p11 = por %p2276_p10, %p2275_p4 }
 0x10a   : > { %p2271_p9 = pneg %p2270_p7 }
 0x10c   : > { %p2278_p12 = pnand %p2277_p11, %p2271_p9 }
 0x10e   : > { %2281 = shalt.err (!%p2278_p12)
}
 0x10f   : > { %1878 = dma.hbm_to_vmem [thread:$0]  (!%p2571_p6), %s3102_s11, 16, %s450_s12, [#allocation22]  }
 0x110   : > { %s1621_s25 = sadd.s32 4294967294, %s2436_s24   ;;  %s2796_s13 = sadd.s32 1, %s2436_s24  }
 0x111   : > { %s40_s18 = ssub.s32 %s2436_s24, %s2796_s13  ;;  %s43_s26 = sadd.s32 1, %s2432_s23 }
 0x112   : > { %p41_p8 = scmp.eq.s32.totalorder %s40_s18, 0  ;;  %p50_p13 = scmp.ne.s32.totalorder %s2432_s23, %s2428_s22 }
 0x113   : > { %p51_p0 = scmp.eq.s32.totalorder %s2436_s24, 0  ;;  %p56_p1 = scmp.ne.s32.totalorder %s2428_s22, %s2424_s21 }
 0x114   : > { %s2807_s15 = scalar_select %p41_p8, %s2432_s23, %s43_s26  }
 0x115   : > { %p2809_p3 = por %p51_p0, %p50_p13  ;;  %p3136_p2 = scmp.eq.s32.totalorder %s2555_s27, 0 }
 0x116   : > { %p316_p5 = scmp.eq.s32.totalorder %s2555_s27, 1  ;;  %p322_p7 = scmp.eq.s32.totalorder %s1621_s25, 1 }
 0x117   : > { %p2815_p6 = por %p3136_p2, %p56_p1  ;;  %p1900_p9 = scmp.lt.s32.totalorder %s2436_s24, 2 }
 0x118   : > { %s2822_s1 = sand.u32 1, %s2432_s23   ;;  %p2824_p4 = por %p316_p5, %p50_p13 }
 0x119   : > { %s3137_s12 = scalar_select %p2815_p6, 1, 0 }
 0x11a   : > { %s3138_s29 = scalar_select %p2824_p4, 1, 0 }
 0x11b   : > { %p2828_p10 = por %p322_p7, %p56_p1  ;;  %s1634_s20 = sshll.u32 %s2822_s1, 3 }
 0x11c   : > { %s1635_s16 = sshll.u32 %s2436_s24, 7  ;;  %s3140_s14 = sld [smem:[#allocation34_spill]] }
 0x11d   : > { %s3139_s17 = scalar_select %p2828_p10, 1, 0 }
 0x11e   : > { %s464_s25 = scalar_lea.vmem [#allocation3], %s1634_s20  ;;  %p2843_p11 = pnand %p1900_p9, %p2809_p3 }
 0x11f   : > { %s471_s18 = sshll.u32 %s464_s25, 4  ;;  %s461_s3 = scalar_lea.sflag [#allocation4], %s2822_s1  ;;  %s2839_s18 = int_to_ptr.vmem [resolvable:$true] %s471_s18 }
 0x120   : > { %p2284_p8 = pneg %p2843_p11 }
 0x122   : > { %s2837_s30 = scalar_lea.hbm %s3140_s14, %s1635_s16  ;;  %s2287_s19 = scalar_lea.hbm %s3140_s14, 256 }
 0x123   : > { %s2282_s28 = scalar_lea.hbm %s2837_s30, 128  ;;  %p2288_p1 = scmp.lt.u32.totalorder %s2837_s30, %s3140_s14 }
 0x124   : > { %p2283_p12 = scmp.ne.s32.totalorder %s2837_s30, %s2282_s28  ;;  %p2289_p3 = scmp.lt.u32.totalorder %s2287_s19, %s2282_s28 }
 0x125   : > { %p2291_p5 = scmp.lt.u32.totalorder %s2282_s28, %s2837_s30 }
 0x126   : > { %p2285_p13 = pnand %p2284_p8, %p2283_p12  ;;  %p2290_p2 = por %p2289_p3, %p2288_p1 }
 0x128   : > { %p2286_p0 = pneg %p2285_p13  ;;  %p2292_p7 = por %p2291_p5, %p2290_p2 }
 0x12a   : > { %p2293_p9 = pnand %p2292_p7, %p2286_p0 }
 0x12c   : > { %2296 = shalt.err (!%p2293_p9)
}
 0x12d   : > { %s2297_s2 = scalar_lea.vmem %s2839_s18, 128  ;;  %s2450_s20 = smov [#allocation3]  }
 0x12e   : > { %p2298_p12 = scmp.ne.s32.totalorder %s2839_s18, %s2297_s2  ;;  %s2302_s16 = sshll.u32 %s2450_s20, 4  ;;  %s2303_s16 = int_to_ptr.vmem [resolvable:$false] %s2302_s16 }
 0x12f   : > { %s2304_s0 = scalar_lea.vmem %s2303_s16, 256  ;;  %p2305_p4 = scmp.lt.s32.totalorder %s2839_s18, %s2303_s16 }
 0x130   : > { %p2300_p13 = pnand %p2298_p12, %p2284_p8  ;;  %p2306_p1 = scmp.lt.s32.totalorder %s2304_s0, %s2297_s2 }
 0x132   : > { %p2301_p10 = pneg %p2300_p13  ;;  %p2307_p3 = por %p2306_p1, %p2305_p4 }
 0x134   : > { %p2308_p2 = pnand %p2307_p3, %p2301_p10 }
 0x136   : > { %2311 = shalt.err (!%p2308_p2)
}
 0x137   : > { %1882 = dma.hbm_to_vmem [thread:$0]  (!%p2843_p11), %s2837_s30, 128, %s2839_s18, %s461_s3  }
 0x138   : > { %s1636_s28 = sshll.u32 %s2436_s24, 4  ;;  %s481_s19 = scalar_lea.vmem [#allocation6], %s2822_s1 }
 0x139   : > { %s488_s25 = sshll.u32 %s481_s19, 4  ;;  %s3142_s5 = sld [smem:[#allocation35_spill]]  ;;  %s489_s25 = int_to_ptr.vmem [resolvable:$true] %s488_s25 }
 0x13a   : > { %s3143_s2 = sand.u32 1, %s2436_s24  }
 0x13b   : > { %s479_s0 = scalar_lea.sflag [#allocation7], %s3143_s2 }
 0x13f   : > { %s2879_s16 = scalar_lea.hbm %s3142_s5, %s1636_s28  ;;  %s2317_s30 = scalar_lea.hbm %s3142_s5, 32 }
 0x140   : > { %s2312_s6 = scalar_lea.hbm %s2879_s16, 16  ;;  %p2318_p5 = scmp.lt.u32.totalorder %s2879_s16, %s3142_s5 }
 0x141   : > { %p2313_p4 = scmp.ne.s32.totalorder %s2879_s16, %s2312_s6  ;;  %p2319_p7 = scmp.lt.u32.totalorder %s2317_s30, %s2312_s6 }
 0x142   : > { %p2321_p12 = scmp.lt.u32.totalorder %s2312_s6, %s2879_s16 }
 0x143   : > { %p2315_p10 = pnand %p2313_p4, %p2284_p8  ;;  %p2320_p9 = por %p2319_p7, %p2318_p5 }
 0x145   : > { %p2316_p0 = pneg %p2315_p10  ;;  %p2322_p13 = por %p2321_p12, %p2320_p9 }
 0x147   : > { %p2323_p1 = pnand %p2322_p13, %p2316_p0 }
 0x149   : > { %2326 = shalt.err (!%p2323_p1)
}
 0x14a   : > { %s2327_s28 = scalar_lea.vmem %s489_s25, 16  ;;  %s2451_s19 = smov [#allocation6]  }
 0x14b   : > { %p2328_p3 = scmp.ne.s32.totalorder %s489_s25, %s2327_s28  ;;  %s2332_s20 = sshll.u32 %s2451_s19, 4  ;;  %s2333_s20 = int_to_ptr.vmem [resolvable:$false] %s2332_s20 }
 0x14c   : > { %s2334_s2 = scalar_lea.vmem %s2333_s20, 32  ;;  %p2335_p10 = scmp.lt.s32.totalorder %s489_s25, %s2333_s20 }
 0x14d   : > { %p2330_p2 = pnand %p2328_p3, %p2284_p8  ;;  %p2336_p6 = scmp.lt.s32.totalorder %s2334_s2, %s2327_s28 }
 0x14f   : > { %p2331_p4 = pneg %p2330_p2  ;;  %p2337_p5 = por %p2336_p6, %p2335_p10 }
 0x151   : > { %p2338_p7 = pnand %p2337_p5, %p2331_p4 }
 0x153   : > { %2341 = shalt.err (!%p2338_p7)
}
 0x154   : > { %1885 = dma.hbm_to_vmem [thread:$0]  (!%p2843_p11), %s2879_s16, 16, %s489_s25, %s479_s0  }
 0x155   : > { %s3144_s6 = sld [smem:[#allocation33_spill]] }
 0x15b   : > { %p3145_p0 = scmp.ne.s32.totalorder %s3144_s6, 0 }
 0x15c   : > { %s2905_s3 = sand.u32 (!%p3145_p0), 1, %s2428_s22   ;;  %p3146_p6 = scmp.ne.s32.totalorder (!%p3145_p0), %s3137_s12, 0 }
 0x15d   : > { %497 = sbr.rel (%p3145_p0) target bundleno = 2951 (0xb87), region = 68  ;;  %s1638_s1 = sshll.u32 (!%p3145_p0), %s2905_s3, 3 }
 0x15e   : > { %s500_s30 = scalar_lea.sflag (!%p3145_p0), [#allocation4], %s2905_s3  ;;  %s503_s4 = scalar_lea.vmem (!%p3145_p0), [#allocation3], %s1638_s1 }
 0x164   : > { %2387 = dma.done.wait (%p3146_p6), %s500_s30, 128  }
 0x165   : > { %2389 = vsyncadd (%p3146_p6), %s500_s30, 4294967168  ;;  %s508_s26 = sand.u32 1, %s2555_s27   ;;  %s511_s16 = scalar_lea.vmem [#allocation6], %s2905_s3 }
 0x166   : > { %s509_s25 = scalar_lea.sflag [#allocation7], %s508_s26 }
 0x167   : > { %2391 = dma.done.wait (%p3146_p6), %s509_s25, 16  }
 0x168   : > { %2393 = vsyncadd (%p3146_p6), %s509_s25, 4294967280  ;;  %p3147_p11 = scmp.eq.s32.totalorder %s2555_s27, 0 }
 0x16a   : > { %2395 = dma.done.wait (%p3147_p11), [#allocation7], 256   ;;  %p3148_p8 = pmov %p3147_p11 }
 0x16c   : > { %2397 = vsyncadd (%p3148_p8), [#allocation7], 4294967040  ;;  %p3149_p9 = pmov %p3148_p8 }
 0x16d   : > { %p3150_p12 = pmov %p3148_p8 }
 0x16e   : > { %2399 = dma.done.wait (%p3149_p9), [#allocation10], 272  }
 0x16f   : > { %2401 = vsyncadd (%p3150_p12), [#allocation10], 4294967024  ;;  %p3151_p13 = pmov %p3148_p8 }
 0x170   : > { %p3152_p1 = pmov %p3148_p8 }
 0x171   : > { %2403 = dma.done.wait (%p3151_p13), [#allocation13], 32  }
 0x172   : > { %2405 = vsyncadd (%p3152_p1), [#allocation13], 4294967264  ;;  %p3153_p3 = pmov %p3152_p1 }
 0x173   : > { %p3154_p2 = pmov %p3152_p1 }
 0x174   : > { %2407 = dma.done.wait (%p3153_p3), [#allocation16], 272  }
 0x175   : > { %2409 = vsyncadd (%p3154_p2), [#allocation16], 4294967024  ;;  %p3155_p4 = pmov %p3152_p1 }
 0x176   : > { %p3156_p10 = pmov %p3152_p1 }
 0x177   : > { %2411 = dma.done.wait (%p3155_p4), [#allocation19], 528  }
 0x178   : > { %2413 = vsyncadd (%p3156_p10), [#allocation19], 4294966768  ;;  %p3157_p5 = pmov %p3152_p1 }
 0x179   : > { %p3158_p7 = pmov %p3152_p1 }
 0x17a   : > { %2415 = dma.done.wait (%p3157_p5), [#allocation22], 16  }
 0x17b   : > { %2417 = vsyncadd (%p3158_p7), [#allocation22], 4294967280  ;;  %v2452_v0 = vmov 0.0   ;;  %vm2453_vm0 = vmmov 0   ;;  %v1972_v1 = vld [vmem:[#allocation8] sm:$0xff]   ;;  %v1973_v2 = vld [vmem:[#allocation8 + $0x8] sm:$0xff]   ;;  %v722_v23 = vlaneseq }
 0x17c   : > { %1718 = vmatprep.subr.bf16.mxu0 %v2452_v0  ;;  %1722 = vmatprep.mubr.msk.bf16.mxu0 %vm2453_vm0, %v2452_v0  ;;  %v2951_v3 = vld [vmem:[%s503_s4] sm:$0xff]  ;;  %vm622_vm1 = vcmask 261120   ;;  %s2454_s12 = smov 120   ;;  %s2455_s0 = smov 96   ;;  %vm673_vm2 = vcmask 64512   ;;  %vm745_vm4 = vcmask 1043456  }
 0x17d   : > { %1726 = vmatprep.subr.bf16.mxu1 %v2452_v0  ;;  %1728 = vmatprep.mubr.msk.bf16.mxu1 %vm2453_vm0, %v2452_v0  ;;  %v598_v4 = vpack.c.bf16 %v2951_v3, %v2951_v3  ;;  %v1650_v5 = vld [vmem:[#allocation9] ss:$0 sm:$0xff]  ;;  %s2456_s18 = smov 80   ;;  %s2457_s28 = smov 88   ;;  %v667_v24 = vld [vmem:[%s511_s16] sm:$0x1] }
 0x17e   : > { %1719 = vmatpush3.bf16.msra.mxu0 %v1972_v1  ;;  %s2458_s19 = smov 72   ;;  %s2459_s20 = smov 112   ;;  %v723_v25 = vshrl.u32 %v722_v23, 7  ;;  %vm668_vm3 = vcmp.eq.s32.totalorder %v667_v24, 0  ;;  %vm790_vm5 = vcmask 60416   ;;  %vm911_vm6 = vcmask 126016  }
 0x17f   : > { %1720 = vmatprep.subr.bf16.mxu0 %v2452_v0  ;;  %s2460_s2 = smov 104   ;;  %v669_v27 = vsel %vm668_vm3, -1e+10, %v2452_v0  ;;  %s2461_s6 = smov 56   ;;  %vm1032_vm7 = vcmask 191616   ;;  %vm1153_vm8 = vcmask 257216  }
 0x180   : > { %v724_v26 = vsub.s32 0, %v723_v25  ;;  %s2462_s30 = smov 64   ;;  %s2463_s4 = smov 40   ;;  %vm1361_vm9 = vcmask 523264  }
 0x181   : > { %s2464_s26 = smov 48   ;;  %s2465_s25 = smov 8  }
 0x182   : > { %1721 = vmatpush3.bf16.msra.mxu0 %v1973_v2  ;;  %v725_v28 = vrot.slane %v669_v27, %v724_v26  ;;  %s2466_s16 = smov 16   ;;  %p3160_p6 = scmp.ne.s32.totalorder %s3138_s29, 0 }
 0x183   : > { %1732 = vmatprep.subr.bf16.mxu0 %v2452_v0 }
 0x185   : > { %1723 = vmatmul.mubr.msk.bf16.vlgmr.msra.gmra.mrb[0].mxu0 %vm622_vm1, %v598_v4 }
 0x186   : > { %1734 = vmatprep.mubr.msk.bf16.mxu0 %vm2453_vm0, %v2452_v0 }
 0x258   : > { %v660_v6 = vpop.f32.mrb[0].mxu0 }
 0x259   : > { %v661_v7 = vadd.f32 %v1650_v5, %v660_v6  ;;  %v1724_v8 = vpop.f32.mrb[1].mxu0 }
 0x25a   : > { %v663_v9 = vpop.f32.mrb[2].mxu0 }
 0x25b   : > { %v2960_v10 = vpack.c.bf16 %v661_v7, %v661_v7  ;;  %v1725_v11 = vpop.f32.mrb[3].mxu0 }
 0x25d   : > { %792 = vrot.lane.b32.xlu1 %v2960_v10, %s2454_s12  ;;  %671 = vrot.lane.b32.xlu0 %v2960_v10, %s2455_s0  ;;  %s2467_s12 = smov 24   ;;  %s1682_s0 = sshll.u32 %s2555_s27, 7 }
 0x25e   : > { %s2468_s27 = smov [#allocation23]  }
 0x261   : > { %915 = vrot.lane.b32.xlu1 %v2960_v10, %s2456_s18  ;;  %794 = vrot.lane.b32.xlu0 %v2960_v10, %s2457_s28  ;;  %s595_s18 = scalar_lea.vmem [#allocation23], %s1638_s1  ;;  %s2346_s1 = sshll.u32 %s2468_s27, 4  ;;  %s2347_s1 = int_to_ptr.vmem [resolvable:$false] %s2346_s1 }
 0x262   : > { %s1436_s28 = sshll.u32 %s595_s18, 4  ;;  %s3048_s28 = int_to_ptr.vmem [resolvable:$true] %s1436_s28 }
 0x263   : > { %p2349_p9 = scmp.lt.s32.totalorder %s3048_s28, %s2347_s1 }
 0x265   : > { %1036 = vrot.lane.b32.xlu1 %v2960_v10, %s2458_s19  ;;  %913 = vrot.lane.b32.xlu0 %v2960_v10, %s2459_s20 }
 0x269   : > { %1034 = vrot.lane.b32.xlu0 %v2960_v10, %s2460_s2  ;;  %s3159_s2 = sld [smem:[#allocation41_spill]] }
 0x2cf   : > { %v672_v12 = vpop.permute.xlu0 %671  ;;  %v793_v15 = vpop.permute.xlu1 %792 }
 0x2d0   : > { %v678_v13 = vsel %vm673_vm2, %v672_v12, 0 }
 0x2d1   : > { %1727 = vmatpush3.bf16.xpose.msra.mxu1 %v678_v13 }
 0x2d2   : > { %1738 = vmatprep.subr.bf16.mxu1 %v2452_v0 }
 0x2d3   : > { %v795_v14 = vpop.permute.xlu0 %794  ;;  %v916_v17 = vpop.permute.xlu1 %915 }
 0x2d4   : > { %v800_v16 = vsel %vm673_vm2, %v795_v14, 0  ;;  %v921_v18 = vsel %vm673_vm2, %v916_v17, 0 }
 0x2d7   : > { %v1037_v19 = vpop.permute.xlu1 %1036  ;;  %v914_v20 = vpop.permute.xlu0 %913 }
 0x2d8   : > { %1729 = vmatmul.mubr.msk.bf16.vlgmr.msra.gmra.mrb[0].mxu1 %vm673_vm2, %v2960_v10  ;;  %v1042_v21 = vsel %vm673_vm2, %v1037_v19, 0 }
 0x2d9   : > { %1739 = vmatpush3.bf16.xpose.msra.mxu1 %v800_v16  ;;  %1740 = vmatprep.mubr.msk.bf16.mxu1 %vm2453_vm0, %v2452_v0 }
 0x2da   : > { %1750 = vmatprep.subr.bf16.mxu1 %v2452_v0 }
 0x2db   : > { %v1035_v22 = vpop.permute.xlu0 %1034 }
 0x2e0   : > { %1741 = vmatmul.mubr.msk.bf16.vlgmr.msra.gmra.mrb[4].mxu1 %vm673_vm2, %v793_v15 }
 0x2e1   : > { %1751 = vmatpush3.bf16.xpose.msra.mxu1 %v921_v18  ;;  %1752 = vmatprep.mubr.msk.bf16.mxu1 %vm2453_vm0, %v2452_v0 }
 0x2e2   : > { %1762 = vmatprep.subr.bf16.mxu1 %v2452_v0 }
 0x2e8   : > { %1753 = vmatmul.mubr.msk.bf16.vlgmr.msra.gmra.mrb[8].mxu1 %vm673_vm2, %v914_v20 }
 0x2e9   : > { %1763 = vmatpush3.bf16.xpose.msra.mxu1 %v1042_v21  ;;  %1764 = vmatprep.mubr.msk.bf16.mxu1 %vm2453_vm0, %v2452_v0 }
 0x2ea   : > { %1774 = vmatprep.subr.bf16.mxu1 %v2452_v0 }
 0x2f0   : > { %1765 = vmatmul.mubr.msk.bf16.vlgmr.msra.gmra.mrb[12].mxu1 %vm673_vm2, %v1035_v22 }
 0x2f1   : > { %1778 = vmatprep.mubr.msk.bf16.mxu1 %vm2453_vm0, %v2452_v0 }
 0x3ab   : > { %v714_v29 = vpop.f32.mrb[0].mxu1 }
 0x3ac   : > { %v720_v30 = vmul.f32 0.35355338, %v714_v29  ;;  %v1730_v31 = vpop.f32.mrb[1].mxu1 }
 0x3ad   : > { %v717_v32 = vpop.f32.mrb[2].mxu1 }
 0x3ae   : > { %v1731_v33 = vpop.f32.mrb[3].mxu1  ;;  %v727_v34 = vadd.f32 %v725_v28, %v720_v30 }
 0x3b0   : > { %v728_v35 = vsel %vm673_vm2, %v727_v34, -inf }
 0x3b1   : > { %729 = vmax.xlane.f32.xlu1 %v728_v35 }
 0x3b3   : > { %v836_v36 = vpop.f32.mrb[4].mxu1 }
 0x3b4   : > { %v842_v37 = vmul.f32 0.35355338, %v836_v36  ;;  %v1742_v38 = vpop.f32.mrb[5].mxu1 }
 0x3b5   : > { %v839_v39 = vpop.f32.mrb[6].mxu1 }
 0x3b6   : > { %v1743_v40 = vpop.f32.mrb[7].mxu1  ;;  %v843_v41 = vadd.f32 %v842_v37, %v725_v28 }
 0x3b8   : > { %v844_v42 = vsel %vm673_vm2, %v843_v41, -inf }
 0x3b9   : > { %845 = vmax.xlane.f32.xlu0 %v844_v42 }
 0x3bb   : > { %v957_v43 = vpop.f32.mrb[8].mxu1 }
 0x3bc   : > { %v963_v44 = vmul.f32 0.35355338, %v957_v43  ;;  %v1754_v45 = vpop.f32.mrb[9].mxu1 }
 0x3bd   : > { %v960_v46 = vpop.f32.mrb[10].mxu1 }
 0x3be   : > { %v1755_v47 = vpop.f32.mrb[11].mxu1  ;;  %v964_v48 = vadd.f32 %v963_v44, %v725_v28 }
 0x3c0   : > { %v965_v49 = vsel %vm673_vm2, %v964_v48, -inf }
 0x3c1   : > { %966 = vmax.xlane.f32.xlu0 %v965_v49  ;;  %v1974_v49 = vld [vmem:[#allocation11] sm:$0xff]  }
 0x3c2   : > { %1775 = vmatpush3.bf16.msra.mxu1 %v1974_v49 }
 0x3c3   : > { %v1078_v50 = vpop.f32.mrb[12].mxu1  ;;  %1776 = vmatprep.subr.bf16.mxu1 %v2452_v0 }
 0x3c4   : > { %v1084_v51 = vmul.f32 0.35355338, %v1078_v50  ;;  %v1766_v52 = vpop.f32.mrb[13].mxu1  ;;  %v1975_v50 = vld [vmem:[#allocation11 + $0x8] sm:$0xff]  }
 0x3c5   : > { %v1081_v53 = vpop.f32.mrb[14].mxu1 }
 0x3c6   : > { %v1767_v54 = vpop.f32.mrb[15].mxu1  ;;  %v1085_v55 = vadd.f32 %v1084_v51, %v725_v28  ;;  %1777 = vmatpush3.bf16.msra.mxu1 %v1975_v50 }
 0x3c7   : > { %1790 = vmatprep.subr.bf16.mxu1 %v2452_v0 }
 0x3c8   : > { %v1086_v56 = vsel %vm673_vm2, %v1085_v55, -inf }
 0x3c9   : > { %1087 = vmax.xlane.f32.xlu1 %v1086_v56 }
 0x43e   : > { %v730_v57 = vpop.xlane.xlu1 %729 }
 0x43f   : > { %v731_v58 = vsub.f32 %v727_v34, %v730_v57 }
 0x441   : > { %v732_v59 = vmul.f32 1.442695, %v731_v58 }
 0x443   : > { %1982 = vpow2.f32 %v732_v59 }
 0x446   : > { %v846_v60 = vpop.xlane.xlu0 %845 }
 0x447   : > { %v847_v61 = vsub.f32 %v843_v41, %v846_v60 }
 0x449   : > { %v848_v62 = vmul.f32 1.442695, %v847_v61 }
 0x44b   : > { %1984 = vpow2.f32 %v848_v62 }
 0x44d   : > { %v1983_v63 = vpop.eup %1982 }
 0x44e   : > { %v967_v1 = vpop.xlane.xlu0 %966  ;;  %v734_v2 = vsel %vm673_vm2, %v1983_v63, 0.0 }
 0x44f   : > { %v968_v4 = vsub.f32 %v964_v48, %v967_v1  ;;  %735 = vadd.xlane.f32.xlu0 %v734_v2  ;;  %v1665_v2 = vld [vmem:[#allocation12] ss:$0 sm:$0xff] }
 0x451   : > { %v969_v5 = vmul.f32 1.442695, %v968_v4 }
 0x453   : > { %1986 = vpow2.f32 %v969_v5 }
 0x455   : > { %v1985_v6 = vpop.eup %1984 }
 0x456   : > { %v850_v7 = vsel %vm673_vm2, %v1985_v6, 0.0  ;;  %v1088_v11 = vpop.xlane.xlu1 %1087 }
 0x457   : > { %851 = vadd.xlane.f32.xlu1 %v850_v7  ;;  %v1089_v12 = vsub.f32 %v1085_v55, %v1088_v11 }
 0x459   : > { %v1090_v13 = vmul.f32 1.442695, %v1089_v12 }
 0x45b   : > { %1988 = vpow2.f32 %v1090_v13 }
 0x45d   : > { %v1987_v8 = vpop.eup %1986 }
 0x45e   : > { %v971_v9 = vsel %vm673_vm2, %v1987_v8, 0.0 }
 0x45f   : > { %972 = vadd.xlane.f32.xlu0 %v971_v9 }
 0x465   : > { %v1989_v14 = vpop.eup %1988 }
 0x466   : > { %v1092_v15 = vsel %vm673_vm2, %v1989_v14, 0.0 }
 0x468   : > { %856 = vrot.lane.b32.xlu1 %v2960_v10, %s2461_s6  ;;  %s3046_s6 = scalar_lea.hbm %s3159_s2, %s1682_s0 }
 0x475   : > { %740 = vrot.lane.b32.xlu0 %v2960_v10, %s2462_s30  ;;  %s1423_s30 = scalar_lea.sflag [#allocation5], %s2905_s3 }
 0x479   : > { %1098 = vrot.lane.b32.xlu0 %v2960_v10, %s2463_s4  ;;  %s2342_s4 = scalar_lea.vmem %s3048_s28, 128 }
 0x47a   : > { %p2343_p0 = scmp.ne.s32.totalorder %s3048_s28, %s2342_s4 }
 0x47c   : > { %p2344_p11 = pnand %p2343_p0, %p3160_p6 }
 0x47e   : > { %p2345_p8 = pneg %p2344_p11 }
 0x48c   : > { %1093 = vadd.xlane.f32.xlu1 %v1092_v15 }
 0x49d   : > { %977 = vrot.lane.b32.xlu1 %v2960_v10, %s2464_s26  ;;  %s2348_s26 = scalar_lea.vmem %s2347_s1, 256 }
 0x49e   : > { %p2350_p12 = scmp.lt.s32.totalorder %s2348_s26, %s2342_s4 }
 0x4a0   : > { %p2351_p13 = por %p2350_p12, %p2349_p9 }
 0x4a2   : > { %p2352_p1 = pnand %p2351_p13, %p2345_p8 }
 0x4dc   : > { %v736_v16 = vpop.xlane.xlu0 %735 }
 0x4dd   : > { %1990 = vrcp.f32 %v736_v16 }
 0x4e4   : > { %v852_v17 = vpop.xlane.xlu1 %851 }
 0x4e5   : > { %1992 = vrcp.f32 %v852_v17  ;;  %v1976_v17 = vld [vmem:[#allocation17] sm:$0xff]  }
 0x4e7   : > { %v1991_v18 = vpop.eup %1990 }
 0x4e8   : > { %v738_v20 = vmul.f32 %v1991_v18, %v1983_v63  ;;  %v857_v23 = vpop.permute.xlu1 %856  ;;  %v1977_v18 = vld [vmem:[#allocation17 + $0x8] sm:$0xff]  }
 0x4e9   : > { %v862_v26 = vsel %vm745_vm4, %v857_v23, 0 }
 0x4ea   : > { %v739_v24 = vpack.c.bf16 %v738_v20, %v738_v20  ;;  %v1979_v20 = vld [vmem:[#allocation20 + $0x8] sm:$0xff]  }
 0x4ec   : > { %v973_v19 = vpop.xlane.xlu0 %972 }
 0x4ed   : > { %1994 = vrcp.f32 %v973_v19  ;;  %v1978_v19 = vld [vmem:[#allocation20] sm:$0xff]  }
 0x4ef   : > { %v1993_v25 = vpop.eup %1992 }
 0x4f0   : > { %v741_v21 = vpop.permute.xlu0 %740  ;;  %v854_v10 = vmul.f32 %v1993_v25, %v1985_v6 }
 0x4f1   : > { %v747_v22 = vsel %vm745_vm4, %v741_v21, 0 }
 0x4f2   : > { %1733 = vmatpush3.bf16.msra.mxu0 %v747_v22  ;;  %v855_v27 = vpack.c.bf16 %v854_v10, %v854_v10 }
 0x4f3   : > { %1744 = vmatprep.subr.bf16.mxu0 %v2452_v0 }
 0x4f4   : > { %v1099_v33 = vpop.permute.xlu0 %1098 }
 0x4f5   : > { %1735 = vmatmul.mubr.msk.bf16.vlgmr.msra.gmra.mrb[4].mxu0 %vm673_vm2, %v739_v24  ;;  %v1104_v35 = vsel %vm745_vm4, %v1099_v33, 0  ;;  %v1669_v24 = vld [vmem:[#allocation14] ss:$0 sm:$0xff] }
 0x4f6   : > { %1745 = vmatpush3.bf16.msra.mxu0 %v862_v26  ;;  %1746 = vmatprep.mubr.msk.bf16.mxu0 %vm2453_vm0, %v2452_v0  ;;  %v1670_v26 = vld [vmem:[#allocation15] ss:$0 sm:$0xff] }
 0x4f7   : > { %1756 = vmatprep.subr.bf16.mxu0 %v2452_v0  ;;  %v1995_v28 = vpop.eup %1994 }
 0x4f8   : > { %v975_v30 = vmul.f32 %v1995_v28, %v1987_v8 }
 0x4fa   : > { %v976_v34 = vpack.c.bf16 %v975_v30, %v975_v30  ;;  %v1981_v30 = vld [vmem:[#allocation20 + $0x18] sm:$0xff]  }
 0x4fd   : > { %1747 = vmatmul.mubr.msk.bf16.vlgmr.msra.gmra.mrb[8].mxu0 %vm673_vm2, %v855_v27 }
 0x4fe   : > { %1758 = vmatprep.mubr.msk.bf16.mxu0 %vm2453_vm0, %v2452_v0 }
 0x519   : > { %v1094_v29 = vpop.xlane.xlu1 %1093 }
 0x51a   : > { %1996 = vrcp.f32 %v1094_v29  ;;  %v1980_v29 = vld [vmem:[#allocation20 + $0x10] sm:$0xff]  }
 0x51d   : > { %v978_v31 = vpop.permute.xlu1 %977 }
 0x51e   : > { %v983_v32 = vsel %vm745_vm4, %v978_v31, 0  ;;  %v1671_v31 = vld [vmem:[#allocation18] ss:$0 sm:$0xff] }
 0x51f   : > { %1757 = vmatpush3.bf16.msra.mxu0 %v983_v32 }
 0x520   : > { %1768 = vmatprep.subr.bf16.mxu0 %v2452_v0 }
 0x522   : > { %1759 = vmatmul.mubr.msk.bf16.vlgmr.msra.gmra.mrb[12].mxu0 %vm673_vm2, %v976_v34 }
 0x523   : > { %1769 = vmatpush3.bf16.msra.mxu0 %v1104_v35  ;;  %1770 = vmatprep.mubr.msk.bf16.mxu0 %vm2453_vm0, %v2452_v0 }
 0x524   : > { %v1997_v36 = vpop.eup %1996  ;;  %1782 = vmatprep.subr.bf16.mxu0 %v2452_v0 }
 0x525   : > { %v1096_v37 = vmul.f32 %v1997_v36, %v1989_v14 }
 0x527   : > { %v1097_v38 = vpack.c.bf16 %v1096_v37, %v1096_v37 }
 0x52a   : > { %1771 = vmatmul.mubr.msk.bf16.vlgmr.msra.gmra.mrb[16].mxu0 %vm673_vm2, %v1097_v38 }
 0x52b   : > { %1786 = vmatprep.mubr.msk.bf16.mxu0 %vm2453_vm0, %v2452_v0  ;;  %1783 = vmatpush3.bf16.msra.mxu0 %v1976_v17 }
 0x52c   : > { %1784 = vmatprep.subr.bf16.mxu0 %v2452_v0 }
 0x52f   : > { %1785 = vmatpush3.bf16.msra.mxu0 %v1977_v18 }
 0x5c8   : > { %v783_v39 = vpop.f32.mrb[4].mxu0 }
 0x5c9   : > { %v789_v40 = vpack.c.bf16 %v783_v39, %v783_v39  ;;  %v1736_v41 = vpop.f32.mrb[5].mxu0  ;;  %v1675_v39 = vld [vmem:[#allocation21] ss:$0 sm:$0xff] }
 0x5ca   : > { %v786_v42 = vpop.f32.mrb[6].mxu0 }
 0x5cb   : > { %791 = vst.msk [vmem:[#allocation2] sm:$0xf] %vm790_vm5, %v789_v40  ;;  %v1737_v43 = vpop.f32.mrb[7].mxu0 }
 0x5d0   : > { %v898_v44 = vpop.f32.mrb[8].mxu0 }
 0x5d1   : > { %v1685_v45 = vpack.c.bf16 %v898_v44, %v898_v44  ;;  %v1748_v46 = vpop.f32.mrb[9].mxu0 }
 0x5d2   : > { %v901_v47 = vpop.f32.mrb[10].mxu0 }
 0x5d3   : > { %908 = vrot.lane.b32.xlu1 %v1685_v45, %s2465_s25  ;;  %v1749_v48 = vpop.f32.mrb[11].mxu0 }
 0x5f5   : > { %v1019_v51 = vpop.f32.mrb[12].mxu0 }
 0x5f6   : > { %v1686_v52 = vpack.c.bf16 %v1019_v51, %v1019_v51  ;;  %v1760_v53 = vpop.f32.mrb[13].mxu0 }
 0x5f7   : > { %v1022_v54 = vpop.f32.mrb[14].mxu0 }
 0x5f8   : > { %1029 = vrot.lane.b32.xlu0 %v1686_v52, %s2466_s16  ;;  %v1761_v55 = vpop.f32.mrb[15].mxu0 }
 0x5fd   : > { %v1140_v56 = vpop.f32.mrb[16].mxu0 }
 0x5fe   : > { %v1687_v57 = vpack.c.bf16 %v1140_v56, %v1140_v56  ;;  %v1772_v58 = vpop.f32.mrb[17].mxu0 }
 0x5ff   : > { %v1143_v59 = vpop.f32.mrb[18].mxu0 }
 0x600   : > { %1150 = vrot.lane.b32.xlu1 %v1687_v57, %s2467_s12  ;;  %v1773_v60 = vpop.f32.mrb[19].mxu0 }
 0x645   : > { %v909_v61 = vpop.permute.xlu1 %908 }
 0x646   : > { %912 = vst.msk [vmem:[#allocation2] sm:$0xf] %vm911_vm6, %v909_v61 }
 0x66a   : > { %v1030_v62 = vpop.permute.xlu0 %1029 }
 0x66b   : > { %1033 = vst.msk [vmem:[#allocation2] sm:$0xf] %vm1032_vm7, %v1030_v62 }
 0x672   : > { %v1151_v63 = vpop.permute.xlu1 %1150 }
 0x673   : > { %1154 = vst.msk [vmem:[#allocation2] sm:$0xf] %vm1153_vm8, %v1151_v63 }
 0x67a   : > { %v1155_v1 = vld [vmem:[#allocation2] sm:$0xf] }
 0x67b   : > { %1779 = vmatmul.mubr.msk.bf16.vlgmr.msra.gmra.mrb[16].mxu1 %vm622_vm1, %v1155_v1 }
 0x67c   : > { %1798 = vmatprep.mubr.msk.bf16.mxu1 %vm2453_vm0, %v2452_v0  ;;  %1791 = vmatpush3.bf16.msra.mxu1 %v1978_v19 }
 0x67d   : > { %1792 = vmatprep.subr.bf16.mxu1 %v2452_v0 }
 0x680   : > { %1793 = vmatpush3.bf16.msra.mxu1 %v1979_v20 }
 0x681   : > { %1794 = vmatprep.subr.bf16.mxu1 %v2452_v0 }
 0x684   : > { %1795 = vmatpush3.bf16.msra.mxu1 %v1980_v29 }
 0x685   : > { %1796 = vmatprep.subr.bf16.mxu1 %v2452_v0 }
 0x688   : > { %1797 = vmatpush3.bf16.msra.mxu1 %v1981_v30 }
 0x74e   : > { %v1216_v4 = vpop.f32.mrb[16].mxu1 }
 0x74f   : > { %v1217_v5 = vadd.f32 %v1665_v2, %v1216_v4  ;;  %v1780_v6 = vpop.f32.mrb[17].mxu1 }
 0x750   : > { %v1219_v7 = vpop.f32.mrb[18].mxu1 }
 0x751   : > { %v1781_v8 = vpop.f32.mrb[19].mxu1  ;;  %v1224_v9 = vadd.f32 %v1217_v5, %v2951_v3 }
 0x753   : > { %v1225_v11 = vsel %vm622_vm1, %v1224_v9, 0.0 }
 0x754   : > { %1226 = vadd.xlane.f32.xlu0 %v1225_v11 }
 0x7e1   : > { %v1227_v12 = vpop.xlane.xlu0 %1226 }
 0x7e2   : > { %v1229_v13 = vmul.f32 0.03125, %v1227_v12 }
 0x7e4   : > { %v1230_v14 = vsub.f32 %v1224_v9, %v1229_v13 }
 0x7e6   : > { %v1231_v15 = vmul.f32 %v1230_v14, %v1230_v14 }
 0x7e8   : > { %v1232_v16 = vsel %vm622_vm1, %v1231_v15, 0.0 }
 0x7e9   : > { %1233 = vadd.xlane.f32.xlu1 %v1232_v16 }
 0x876   : > { %v1234_v3 = vpop.xlane.xlu1 %1233 }
 0x877   : > { %v1235_v21 = vmul.f32 0.03125, %v1234_v3 }
 0x879   : > { %v1236_v22 = vadd.f32 1e-05, %v1235_v21 }
 0x87b   : > { %1998 = vrsqrt.f32 %v1236_v22 }
 0x885   : > { %v1999_v23 = vpop.eup %1998 }
 0x886   : > { %v1238_v25 = vmul.f32 %v1999_v23, %v1230_v14 }
 0x888   : > { %v1245_v10 = vmul.f32 %v1669_v24, %v1238_v25 }
 0x88a   : > { %v1252_v27 = vadd.f32 %v1670_v26, %v1245_v10 }
 0x88c   : > { %v1253_v28 = vpack.c.bf16 %v1252_v27, %v1252_v27 }
 0x88e   : > { %1787 = vmatmul.mubr.msk.bf16.vlgmr.msra.gmra.mrb[20].mxu0 %vm622_vm1, %v1253_v28 }
 0x961   : > { %v1314_v32 = vpop.f32.mrb[20].mxu0 }
 0x962   : > { %v1315_v33 = vadd.f32 %v1671_v31, %v1314_v32  ;;  %v1788_v34 = vpop.f32.mrb[21].mxu0 }
 0x963   : > { %v1317_v35 = vpop.f32.mrb[22].mxu0 }
 0x964   : > { %v1320_v36 = vmax.f32 %v1315_v33, 0.0  ;;  %v1789_v37 = vpop.f32.mrb[23].mxu0 }
 0x966   : > { %v1321_v38 = vpack.c.bf16 %v1320_v36, %v1320_v36 }
 0x968   : > { %1799 = vmatmul.mubr.msk.bf16.vlgmr.msra.gmra.mrb[20].mxu1 %vm1361_vm9, %v1321_v38 }
 0xa3b   : > { %v1399_v40 = vpop.f32.mrb[20].mxu1 }
 0xa3c   : > { %v1400_v41 = vadd.f32 %v1675_v39, %v1399_v40  ;;  %v1800_v42 = vpop.f32.mrb[21].mxu1 }
 0xa3d   : > { %v1402_v43 = vpop.f32.mrb[22].mxu1 }
 0xa3e   : > { %v1801_v44 = vpop.f32.mrb[23].mxu1  ;;  %v1405_v0 = vadd.f32 %v1400_v41, %v1252_v27 }
 0xa40   : > { %v1406_v45 = vsel %vm622_vm1, %v1405_v0, 0.0 }
 0xa41   : > { %1407 = vadd.xlane.f32.xlu0 %v1406_v45 }
 0xace   : > { %v1408_v46 = vpop.xlane.xlu0 %1407 }
 0xacf   : > { %v1409_v47 = vmul.f32 0.03125, %v1408_v46 }
 0xad1   : > { %v1410_v48 = vsub.f32 %v1405_v0, %v1409_v47 }
 0xad3   : > { %v1411_v49 = vmul.f32 %v1410_v48, %v1410_v48 }
 0xad5   : > { %v1412_v50 = vsel %vm622_vm1, %v1411_v49, 0.0 }
 0xad6   : > { %1413 = vadd.xlane.f32.xlu0 %v1412_v50 }
 0xb63   : > { %v1414_v51 = vpop.xlane.xlu0 %1413 }
 0xb64   : > { %v1415_v52 = vmul.f32 0.03125, %v1414_v51 }
 0xb66   : > { %v1416_v53 = vadd.f32 1e-05, %v1415_v52 }
 0xb68   : > { %2000 = vrsqrt.f32 %v1416_v53 }
 0xb72   : > { %v2001_v54 = vpop.eup %2000 }
 0xb73   : > { %v1418_v55 = vmul.f32 %v2001_v54, %v1410_v48 }
 0xb75   : > { %v1419_v56 = vmul.f32 %v1669_v24, %v1418_v55 }
 0xb77   : > { %v1420_v57 = vadd.f32 %v1670_v26, %v1419_v56 }
 0xb79   : > { %1421 = vst.msk [vmem:[%s595_s18] sm:$0xff] %vm622_vm1, %v1420_v57 }
 0xb7a   : > { %2355 = shalt.err (!%p2352_p1)
}
 0xb7b   : > { %s2356_s3 = scalar_lea.hbm %s3046_s6, 128  ;;  %s2360_s12 = scalar_lea.hbm %s3159_s2, 256 }
 0xb7c   : > { %p2357_p3 = scmp.ne.s32.totalorder %s3046_s6, %s2356_s3  ;;  %p2361_p10 = scmp.lt.u32.totalorder %s3046_s6, %s3159_s2 }
 0xb7d   : > { %p2362_p5 = scmp.lt.u32.totalorder %s2360_s12, %s2356_s3  ;;  %p2364_p0 = scmp.lt.u32.totalorder %s2356_s3, %s3046_s6 }
 0xb7e   : > { %p2358_p2 = pnand %p2357_p3, %p3160_p6 }
 0xb7f   : > { %p2363_p7 = por %p2362_p5, %p2361_p10 }
 0xb80   : > { %p2359_p4 = pneg %p2358_p2 }
 0xb81   : > { %p2365_p11 = por %p2364_p0, %p2363_p7 }
 0xb83   : > { %p2366_p8 = pnand %p2365_p11, %p2359_p4 }
 0xb85   : > { %2369 = shalt.err (!%p2366_p8)
}
 0xb86   : > { %1846 = dma.vmem_to_hbm [thread:$0]  (%p3160_p6), %s3048_s28, 128, %s3046_s6, %s1423_s30  }
 0xb87 PF: > { %s1448_s19 = sand.u32 1, %s2424_s21   ;;  %p3161_p9 = scmp.ne.s32.totalorder %s3139_s17, 0 }
 0xb88   : > { %p3162_p12 = scmp.ge.s32.totalorder %s2436_s24, 2  ;;  %s1449_s20 = scalar_lea.sflag [#allocation5], %s1448_s19 }
 0xb8a   : > { %p1887_p13 = pnand %p3162_p12, %p3161_p9 }
 0xb8c   : > { %2419 = dma.done.wait (!%p1887_p13), %s1449_s20, 128  }
 0xb8d   : > { %2421 = vsyncadd (!%p1887_p13), %s1449_s20, 4294967168  ;;  %p33_p1 = scmp.ge.s32.totalorder %s2796_s13, 4   ;;  %s3163_s21 = smov %s2428_s22 }
 0xb8e   : > { %s3164_s22 = smov %s2432_s23  ;;  %s3165_s23 = smov %s2807_s15 }
 0xb8f   : > { %s3166_s24 = smov %s2796_s13  ;;  %35 = sbr.rel (!%p33_p1) target bundleno = 21 (0x15), region = 166 }
 0xb96   :  { %1454 = vsyncpa [#allocation4], 1 }
 0xb97   :  { %1456 = vsyncpa [#allocation4 + $0x1], 1 }
 0xb98   :  { %1457 = vsyncpa [#allocation7], 1 }
 0xb99   :  { %1459 = vsyncpa [#allocation7 + $0x1], 1 }
 0xb9a   :  { %1460 = vsyncpa [#allocation10], 1 }
 0xb9b   :  { %1461 = vsyncpa [#allocation13], 1 }
 0xb9c   :  { %1462 = vsyncpa [#allocation16], 1 }
 0xb9d   :  { %1463 = vsyncpa [#allocation19], 1 }
 0xb9e   :  { %1464 = vsyncpa [#allocation22], 1 }
 0xb9f   :  { %1465 = vsyncpa [#allocation5], 1 }
 0xba0   :  { %1467 = vsyncpa [#allocation5 + $0x1], 1 }

</bundles_post_ra>
